<compile_context>
chip_gen: v5e
topology: v5e:2x2
jax: 0.10.0
libtpu: 0.0.40
codegen_flags: <defaults>
</compile_context>

<pallas_src>
import functools

import jax
import jax.numpy as jnp
from jax.experimental import pallas as pl
from jax.experimental.pallas import tpu as pltpu


# ----------------------------------------------------------------------------
# In-kernel LSTM layer (helper traced inside the fused kernel body)
# ----------------------------------------------------------------------------
def _lstm_layer(x2d_bf16, B, T, wih_ref, whh_ref, b_ref, collect_seq):
    """One LSTM layer over the in-register sequence. Gate order (i, f, o, g).

    x2d_bf16 : (B*T, Fin) bf16 value (row-major: batch-major, time-minor)
    wih_ref  : (Fin, 4H) bf16 fused input weights
    whh_ref  : (H, 4H)   bf16 fused recurrent weights
    b_ref    : (1, 4H)   f32  fused bias (b_ih + b_hh pre-summed)
    Returns (h_T f32 (B, H), seq bf16 (B*T, H) or None).
    """
    H = whh_ref.shape[0]

    # Hoisted input projection: ONE lane-dense MXU matmul per layer.
    gx = jnp.dot(x2d_bf16, wih_ref[...],
                 preferred_element_type=jnp.float32) + b_ref[...]
    gx = gx.reshape(B, T, 4 * H)                  # (B, T, 4H) f32

    whh = whh_ref[...]                            # load recurrent weights once

    h = jnp.zeros((B, H), jnp.float32)
    c = jnp.zeros((B, H), jnp.float32)
    hs = []
    # T is small & static -> fully unrolled; per-step critical path is a single
    # (B, H) @ (H, 4H) MXU dot + 2 wide EUP pushes + VPU gate math.
    for t in range(T):
        g = gx[:, t, :] + jnp.dot(h.astype(jnp.bfloat16), whh,
                                  preferred_element_type=jnp.float32)
        sig = jax.nn.sigmoid(g[:, :3 * H])        # i, f, o in one wide EUP pass
        tan = jnp.tanh(g[:, 3 * H:])              # g       in one EUP pass
        i_g = sig[:, 0:H]
        f_g = sig[:, H:2 * H]
        o_g = sig[:, 2 * H:3 * H]
        c = f_g * c + i_g * tan
        h = o_g * jnp.tanh(c)
        if collect_seq:
            hs.append(h.astype(jnp.bfloat16))

    if collect_seq:
        # Build the next layer's input directly in (B*T, H) bf16 layout.
        seq = jnp.stack(hs, axis=1).reshape(B * T, H)
        return h, seq
    return h, None


# ----------------------------------------------------------------------------
# Fused encoder kernel: LSTM stack + (optional) Linear, one launch
# ----------------------------------------------------------------------------
def _encoder_kernel(num_layers, no_latent, B, T, x_ref, *refs):
    n_w = 3 * num_layers + (0 if no_latent else 2)
    w_refs = refs[:n_w]
    out_ref = refs[n_w]

    Fin = x_ref.shape[-1]
    x2d = x_ref[...].reshape(B * T, Fin).astype(jnp.bfloat16)   # (B*T, F) bf16

    h_last = None
    for layer in range(num_layers):
        wih, whh, b = w_refs[3 * layer:3 * layer + 3]
        collect = layer < num_layers - 1
        h_last, seq = _lstm_layer(x2d, B, T, wih, whh, b, collect)
        if collect:
            x2d = seq                               # register-resident hand-off

    # enc = hidden_state[-1] of the last LSTM == final-step h of the top layer.
    if no_latent:
        out_ref[...] = h_last.astype(out_ref.dtype)
    else:
        wlin_ref, blin_ref = w_refs[3 * num_layers], w_refs[3 * num_layers + 1]
        out = jnp.dot(h_last.astype(jnp.bfloat16), wlin_ref[...],
                      preferred_element_type=jnp.float32) + blin_ref[...]
        out_ref[...] = out.astype(out_ref.dtype)


# ----------------------------------------------------------------------------
# Wrapper: single pallas_call, no grid, everything whole-array in VMEM
# ----------------------------------------------------------------------------
@functools.partial(jax.jit, static_argnames=("no_latent",))
def encoder_forward(x, lstm_params, enc_params=None, no_latent=False):
    """x: (B, T, n_features) batch_first, as in the PyTorch module.

    lstm_params: list of (w_ih (Fin,4H) bf16, w_hh (H,4H) bf16, b (1,4H) f32)
                 gate order (i, f, o, g); LSTMenc layers then LSTM1 layers.
    enc_params : (w (E, latent) bf16, b (1, latent) f32); ignored if no_latent.
    """
    B, T, _ = x.shape
    num_layers = len(lstm_params)

    flat = []
    for w_ih, w_hh, b in lstm_params:
        flat += [w_ih, w_hh, b]
    if no_latent:
        out_dim = lstm_params[-1][1].shape[0]
    else:
        w_lin, b_lin = enc_params
        flat += [w_lin, b_lin]
        out_dim = w_lin.shape[-1]

    # Whole-resident VMEM budget is ~100 KB at these shapes; set the scoped
    # limit explicitly so the same design stays budgeted on v7x (64 MiB phys).
    # TODO(synk): if B/T/H scale up, switch x and the layer hand-off to a T- or
    # B-tiled BlockSpec pipeline and/or add a core-parallel batch grid axis so
    # v7x's second TensorCore runs half the batch.
    kernel = functools.partial(_encoder_kernel, num_layers, no_latent, B, T)
    return pl.pallas_call(
        kernel,
        out_shape=jax.ShapeDtypeStruct((B, out_dim), jnp.float32),
        in_specs=[pl.BlockSpec(memory_space=pltpu.MemorySpace.VMEM)
                  for _ in range(1 + len(flat))],
        out_specs=pl.BlockSpec(memory_space=pltpu.MemorySpace.VMEM),
        compiler_params=pltpu.CompilerParams(vmem_limit_bytes=32 * 1024 * 1024),
    )(x, *flat)


# ----------------------------------------------------------------------------
# Parameter construction (deterministic, PyTorch-like distributions)
# ----------------------------------------------------------------------------
def init_lstm_params(key, input_size, hidden_size, num_layers):
    """PyTorch nn.LSTM default init U(-1/sqrt(H), 1/sqrt(H)).

    Weights are drawn in PyTorch gate order (i, f, g, o), then permuted to the
    kernel's fused order (i, f, o, g), transposed so the kernel computes x @ W,
    and packed as (Fin, 4H) / (H, 4H).  b_ih + b_hh are pre-summed into (1, 4H).
    Matmul weights are bf16 (MXU native), biases stay f32.
    """
    params = []
    k = 1.0 / float(hidden_size) ** 0.5
    perm = jnp.array([0, 1, 3, 2])        # (i, f, g, o) -> (i, f, o, g)
    for layer in range(num_layers):
        in_sz = input_size if layer == 0 else hidden_size
        key, k1, k2, k3, k4 = jax.random.split(key, 5)
        w_ih = jax.random.uniform(k1, (4, in_sz, hidden_size), jnp.float32, -k, k)
        w_hh = jax.random.uniform(k2, (4, hidden_size, hidden_size), jnp.float32, -k, k)
        b_ih = jax.random.uniform(k3, (4, hidden_size), jnp.float32, -k, k)
        b_hh = jax.random.uniform(k4, (4, hidden_size), jnp.float32, -k, k)
        w_ih_f = jnp.transpose(w_ih[perm], (1, 0, 2)).reshape(in_sz, 4 * hidden_size)
        w_hh_f = jnp.transpose(w_hh[perm], (1, 0, 2)).reshape(hidden_size, 4 * hidden_size)
        b_f = (b_ih + b_hh)[perm].reshape(1, 4 * hidden_size)
        params.append((w_ih_f.astype(jnp.bfloat16),
                       w_hh_f.astype(jnp.bfloat16),
                       b_f))
    return params, key


def init_linear_params(key, in_features, out_features):
    """kaiming_normal_ weights (std = sqrt(2 / fan_in)), zero bias."""
    key, k1 = jax.random.split(key)
    std = (2.0 / float(in_features)) ** 0.5
    w = std * jax.random.normal(k1, (in_features, out_features), jnp.float32)
    b = jnp.zeros((1, out_features), jnp.float32)
    return (w.astype(jnp.bfloat16), b), key


# ----------------------------------------------------------------------------
# Pure-JAX f32 reference (same fused-weight semantics) for correctness check
# ----------------------------------------------------------------------------
def reference_forward(x, lstm_params, enc_params=None, no_latent=False):
    B, T, _ = x.shape
    seq = x.astype(jnp.float32)
    h = None
    for w_ih, w_hh, b in lstm_params:
        w_ih = w_ih.astype(jnp.float32)
        w_hh = w_hh.astype(jnp.float32)
        H = w_hh.shape[0]
        h = jnp.zeros((B, H), jnp.float32)
        c = jnp.zeros((B, H), jnp.float32)
        outs = []
        for t in range(T):
            g = seq[:, t, :] @ w_ih + h @ w_hh + b
            i_g = jax.nn.sigmoid(g[:, 0:H])
            f_g = jax.nn.sigmoid(g[:, H:2 * H])
            o_g = jax.nn.sigmoid(g[:, 2 * H:3 * H])
            g_g = jnp.tanh(g[:, 3 * H:])
            c = f_g * c + i_g * g_g
            h = o_g * jnp.tanh(c)
            outs.append(h)
        seq = jnp.stack(outs, axis=1)
    enc = h
    if not no_latent:
        w_lin, b_lin = enc_params
        enc = enc @ w_lin.astype(jnp.float32) + b_lin
    return enc


# ----------------------------------------------------------------------------
# Demo / self-test
# ----------------------------------------------------------------------------
if __name__ == "__main__":
    # Small shapes implied by the module: (batch, seq_in, n_features)
    batch, seq_in, n_features = 2, 8, 4
    embedding_size = 32
    hidden_size = 2 * embedding_size                      # 64
    latent_dim = 16
    n_layers_1, n_layers_2 = 2, 1

    key = jax.random.PRNGKey(0)
    key, kx = jax.random.split(key)
    x = jax.random.normal(kx, (batch, seq_in, n_features), jnp.float32)

    lstmenc_params, key = init_lstm_params(key, n_features, hidden_size, n_layers_1)
    lstm1_params, key = init_lstm_params(key, hidden_size, embedding_size, n_layers_2)
    enc_params, key = init_linear_params(key, embedding_size, latent_dim)

    lstm_params = lstmenc_params + lstm1_params           # stacked in order

    out = encoder_forward(x, lstm_params, enc_params, no_latent=False)
    out = jax.block_until_ready(out)
    assert out.shape == (batch, latent_dim), out.shape
    assert bool(jnp.all(jnp.isfinite(out)))

    # Numerical check against a pure-JAX f32 reference (bf16 matmul operands in
    # the kernel -> lenient tolerance).
    ref = reference_forward(x, lstm_params, enc_params, no_latent=False)
    max_err = float(jnp.max(jnp.abs(out - ref)))
    assert max_err < 5e-2, f"max abs error vs f32 reference: {max_err}"

    print("KERNEL_OK")
</pallas_src>

<mosaic_0001>
module attributes {stable_mosaic.version = 11 : i64} {
  func.func @_encoder_kernel(%arg0: memref<2x8x4xf32, #tpu.memory_space<vmem>>, %arg1: memref<4x256xbf16, #tpu.memory_space<vmem>>, %arg2: memref<64x256xbf16, #tpu.memory_space<vmem>>, %arg3: memref<1x256xf32, #tpu.memory_space<vmem>>, %arg4: memref<64x256xbf16, #tpu.memory_space<vmem>>, %arg5: memref<64x256xbf16, #tpu.memory_space<vmem>>, %arg6: memref<1x256xf32, #tpu.memory_space<vmem>>, %arg7: memref<64x128xbf16, #tpu.memory_space<vmem>>, %arg8: memref<32x128xbf16, #tpu.memory_space<vmem>>, %arg9: memref<1x128xf32, #tpu.memory_space<vmem>>, %arg10: memref<32x16xbf16, #tpu.memory_space<vmem>>, %arg11: memref<1x16xf32, #tpu.memory_space<vmem>>, %arg12: memref<2x16xf32, #tpu.memory_space<vmem>>) attributes {dimension_semantics = [], scalar_prefetch = 0 : i64, scratch_operands = 0 : i64, tpu.core_type = #tpu.core_type<tc>} {
    %c0 = arith.constant 0 : index
    %c0_0 = arith.constant 0 : index
    %c0_1 = arith.constant 0 : index
    %0 = vector.load %arg0[%c0, %c0_0, %c0_1] : memref<2x8x4xf32, #tpu.memory_space<vmem>>, vector<2x8x4xf32>
    %1 = vector.shape_cast %0 : vector<2x8x4xf32> to vector<16x4xf32>
    %2 = arith.truncf %1 : vector<16x4xf32> to vector<16x4xbf16>
    %c0_2 = arith.constant 0 : index
    %c0_3 = arith.constant 0 : index
    %3 = vector.load %arg1[%c0_2, %c0_3] : memref<4x256xbf16, #tpu.memory_space<vmem>>, vector<4x256xbf16>
    %cst = arith.constant dense<0.000000e+00> : vector<16x256xf32>
    %4 = tpu.matmul %2, %3, %cst {dimension_numbers = #tpu.dot_dimension_numbers<[1], [0], [0], [1], [0, 0, 1, 1], [], []>} : vector<16x4xbf16>, vector<4x256xbf16>, vector<16x256xf32> -> vector<16x256xf32>
    %c0_4 = arith.constant 0 : index
    %c0_5 = arith.constant 0 : index
    %5 = vector.load %arg3[%c0_4, %c0_5] : memref<1x256xf32, #tpu.memory_space<vmem>>, vector<1x256xf32>
    %6 = vector.broadcast %5 : vector<1x256xf32> to vector<16x256xf32>
    %7 = arith.addf %4, %6 : vector<16x256xf32>
    %8 = vector.shape_cast %7 : vector<16x256xf32> to vector<2x8x256xf32>
    %c0_6 = arith.constant 0 : index
    %c0_7 = arith.constant 0 : index
    %9 = vector.load %arg2[%c0_6, %c0_7] : memref<64x256xbf16, #tpu.memory_space<vmem>>, vector<64x256xbf16>
    %cst_8 = arith.constant 0.000000e+00 : f32
    %10 = vector.broadcast %cst_8 : f32 to vector<2x64xf32>
    %cst_9 = arith.constant 0.000000e+00 : f32
    %11 = vector.broadcast %cst_9 : f32 to vector<2x64xf32>
    %12 = vector.extract_strided_slice %8 {offsets = [0, 0, 0], sizes = [2, 1, 256], strides = [1, 1, 1]} : vector<2x8x256xf32> to vector<2x1x256xf32>
    %13 = vector.shape_cast %12 : vector<2x1x256xf32> to vector<2x256xf32>
    %14 = arith.truncf %10 : vector<2x64xf32> to vector<2x64xbf16>
    %cst_10 = arith.constant dense<0.000000e+00> : vector<2x256xf32>
    %15 = tpu.matmul %14, %9, %cst_10 {dimension_numbers = #tpu.dot_dimension_numbers<[1], [0], [0], [1], [0, 0, 1, 1], [], []>} : vector<2x64xbf16>, vector<64x256xbf16>, vector<2x256xf32> -> vector<2x256xf32>
    %16 = arith.addf %13, %15 : vector<2x256xf32>
    %17 = vector.extract_strided_slice %16 {offsets = [0, 0], sizes = [2, 192], strides = [1, 1]} : vector<2x256xf32> to vector<2x192xf32>
    %18 = arith.negf %17 : vector<2x192xf32>
    %19 = math.exp %18 : vector<2x192xf32>
    %cst_11 = arith.constant 1.000000e+00 : f32
    %20 = vector.broadcast %cst_11 : f32 to vector<2x192xf32>
    %21 = arith.addf %20, %19 : vector<2x192xf32>
    %22 = arith.divf %20, %21 : vector<2x192xf32>
    %23 = vector.extract_strided_slice %16 {offsets = [0, 192], sizes = [2, 64], strides = [1, 1]} : vector<2x256xf32> to vector<2x64xf32>
    %24 = math.tanh %23 : vector<2x64xf32>
    %25 = vector.extract_strided_slice %22 {offsets = [0, 0], sizes = [2, 64], strides = [1, 1]} : vector<2x192xf32> to vector<2x64xf32>
    %26 = vector.extract_strided_slice %22 {offsets = [0, 64], sizes = [2, 64], strides = [1, 1]} : vector<2x192xf32> to vector<2x64xf32>
    %27 = vector.extract_strided_slice %22 {offsets = [0, 128], sizes = [2, 64], strides = [1, 1]} : vector<2x192xf32> to vector<2x64xf32>
    %28 = arith.mulf %26, %11 : vector<2x64xf32>
    %29 = arith.mulf %25, %24 : vector<2x64xf32>
    %30 = arith.addf %28, %29 : vector<2x64xf32>
    %31 = math.tanh %30 : vector<2x64xf32>
    %32 = arith.mulf %27, %31 : vector<2x64xf32>
    %33 = arith.truncf %32 : vector<2x64xf32> to vector<2x64xbf16>
    %34 = vector.extract_strided_slice %8 {offsets = [0, 1, 0], sizes = [2, 1, 256], strides = [1, 1, 1]} : vector<2x8x256xf32> to vector<2x1x256xf32>
    %35 = vector.shape_cast %34 : vector<2x1x256xf32> to vector<2x256xf32>
    %36 = arith.truncf %32 : vector<2x64xf32> to vector<2x64xbf16>
    %cst_12 = arith.constant dense<0.000000e+00> : vector<2x256xf32>
    %37 = tpu.matmul %36, %9, %cst_12 {dimension_numbers = #tpu.dot_dimension_numbers<[1], [0], [0], [1], [0, 0, 1, 1], [], []>} : vector<2x64xbf16>, vector<64x256xbf16>, vector<2x256xf32> -> vector<2x256xf32>
    %38 = arith.addf %35, %37 : vector<2x256xf32>
    %39 = vector.extract_strided_slice %38 {offsets = [0, 0], sizes = [2, 192], strides = [1, 1]} : vector<2x256xf32> to vector<2x192xf32>
    %40 = arith.negf %39 : vector<2x192xf32>
    %41 = math.exp %40 : vector<2x192xf32>
    %cst_13 = arith.constant 1.000000e+00 : f32
    %42 = vector.broadcast %cst_13 : f32 to vector<2x192xf32>
    %43 = arith.addf %42, %41 : vector<2x192xf32>
    %44 = arith.divf %42, %43 : vector<2x192xf32>
    %45 = vector.extract_strided_slice %38 {offsets = [0, 192], sizes = [2, 64], strides = [1, 1]} : vector<2x256xf32> to vector<2x64xf32>
    %46 = math.tanh %45 : vector<2x64xf32>
    %47 = vector.extract_strided_slice %44 {offsets = [0, 0], sizes = [2, 64], strides = [1, 1]} : vector<2x192xf32> to vector<2x64xf32>
    %48 = vector.extract_strided_slice %44 {offsets = [0, 64], sizes = [2, 64], strides = [1, 1]} : vector<2x192xf32> to vector<2x64xf32>
    %49 = vector.extract_strided_slice %44 {offsets = [0, 128], sizes = [2, 64], strides = [1, 1]} : vector<2x192xf32> to vector<2x64xf32>
    %50 = arith.mulf %48, %30 : vector<2x64xf32>
    %51 = arith.mulf %47, %46 : vector<2x64xf32>
    %52 = arith.addf %50, %51 : vector<2x64xf32>
    %53 = math.tanh %52 : vector<2x64xf32>
    %54 = arith.mulf %49, %53 : vector<2x64xf32>
    %55 = arith.truncf %54 : vector<2x64xf32> to vector<2x64xbf16>
    %56 = vector.extract_strided_slice %8 {offsets = [0, 2, 0], sizes = [2, 1, 256], strides = [1, 1, 1]} : vector<2x8x256xf32> to vector<2x1x256xf32>
    %57 = vector.shape_cast %56 : vector<2x1x256xf32> to vector<2x256xf32>
    %58 = arith.truncf %54 : vector<2x64xf32> to vector<2x64xbf16>
    %cst_14 = arith.constant dense<0.000000e+00> : vector<2x256xf32>
    %59 = tpu.matmul %58, %9, %cst_14 {dimension_numbers = #tpu.dot_dimension_numbers<[1], [0], [0], [1], [0, 0, 1, 1], [], []>} : vector<2x64xbf16>, vector<64x256xbf16>, vector<2x256xf32> -> vector<2x256xf32>
    %60 = arith.addf %57, %59 : vector<2x256xf32>
    %61 = vector.extract_strided_slice %60 {offsets = [0, 0], sizes = [2, 192], strides = [1, 1]} : vector<2x256xf32> to vector<2x192xf32>
    %62 = arith.negf %61 : vector<2x192xf32>
    %63 = math.exp %62 : vector<2x192xf32>
    %cst_15 = arith.constant 1.000000e+00 : f32
    %64 = vector.broadcast %cst_15 : f32 to vector<2x192xf32>
    %65 = arith.addf %64, %63 : vector<2x192xf32>
    %66 = arith.divf %64, %65 : vector<2x192xf32>
    %67 = vector.extract_strided_slice %60 {offsets = [0, 192], sizes = [2, 64], strides = [1, 1]} : vector<2x256xf32> to vector<2x64xf32>
    %68 = math.tanh %67 : vector<2x64xf32>
    %69 = vector.extract_strided_slice %66 {offsets = [0, 0], sizes = [2, 64], strides = [1, 1]} : vector<2x192xf32> to vector<2x64xf32>
    %70 = vector.extract_strided_slice %66 {offsets = [0, 64], sizes = [2, 64], strides = [1, 1]} : vector<2x192xf32> to vector<2x64xf32>
    %71 = vector.extract_strided_slice %66 {offsets = [0, 128], sizes = [2, 64], strides = [1, 1]} : vector<2x192xf32> to vector<2x64xf32>
    %72 = arith.mulf %70, %52 : vector<2x64xf32>
    %73 = arith.mulf %69, %68 : vector<2x64xf32>
    %74 = arith.addf %72, %73 : vector<2x64xf32>
    %75 = math.tanh %74 : vector<2x64xf32>
    %76 = arith.mulf %71, %75 : vector<2x64xf32>
    %77 = arith.truncf %76 : vector<2x64xf32> to vector<2x64xbf16>
    %78 = vector.extract_strided_slice %8 {offsets = [0, 3, 0], sizes = [2, 1, 256], strides = [1, 1, 1]} : vector<2x8x256xf32> to vector<2x1x256xf32>
    %79 = vector.shape_cast %78 : vector<2x1x256xf32> to vector<2x256xf32>
    %80 = arith.truncf %76 : vector<2x64xf32> to vector<2x64xbf16>
    %cst_16 = arith.constant dense<0.000000e+00> : vector<2x256xf32>
    %81 = tpu.matmul %80, %9, %cst_16 {dimension_numbers = #tpu.dot_dimension_numbers<[1], [0], [0], [1], [0, 0, 1, 1], [], []>} : vector<2x64xbf16>, vector<64x256xbf16>, vector<2x256xf32> -> vector<2x256xf32>
    %82 = arith.addf %79, %81 : vector<2x256xf32>
    %83 = vector.extract_strided_slice %82 {offsets = [0, 0], sizes = [2, 192], strides = [1, 1]} : vector<2x256xf32> to vector<2x192xf32>
    %84 = arith.negf %83 : vector<2x192xf32>
    %85 = math.exp %84 : vector<2x192xf32>
    %cst_17 = arith.constant 1.000000e+00 : f32
    %86 = vector.broadcast %cst_17 : f32 to vector<2x192xf32>
    %87 = arith.addf %86, %85 : vector<2x192xf32>
    %88 = arith.divf %86, %87 : vector<2x192xf32>
    %89 = vector.extract_strided_slice %82 {offsets = [0, 192], sizes = [2, 64], strides = [1, 1]} : vector<2x256xf32> to vector<2x64xf32>
    %90 = math.tanh %89 : vector<2x64xf32>
    %91 = vector.extract_strided_slice %88 {offsets = [0, 0], sizes = [2, 64], strides = [1, 1]} : vector<2x192xf32> to vector<2x64xf32>
    %92 = vector.extract_strided_slice %88 {offsets = [0, 64], sizes = [2, 64], strides = [1, 1]} : vector<2x192xf32> to vector<2x64xf32>
    %93 = vector.extract_strided_slice %88 {offsets = [0, 128], sizes = [2, 64], strides = [1, 1]} : vector<2x192xf32> to vector<2x64xf32>
    %94 = arith.mulf %92, %74 : vector<2x64xf32>
    %95 = arith.mulf %91, %90 : vector<2x64xf32>
    %96 = arith.addf %94, %95 : vector<2x64xf32>
    %97 = math.tanh %96 : vector<2x64xf32>
    %98 = arith.mulf %93, %97 : vector<2x64xf32>
    %99 = arith.truncf %98 : vector<2x64xf32> to vector<2x64xbf16>
    %100 = vector.extract_strided_slice %8 {offsets = [0, 4, 0], sizes = [2, 1, 256], strides = [1, 1, 1]} : vector<2x8x256xf32> to vector<2x1x256xf32>
    %101 = vector.shape_cast %100 : vector<2x1x256xf32> to vector<2x256xf32>
    %102 = arith.truncf %98 : vector<2x64xf32> to vector<2x64xbf16>
    %cst_18 = arith.constant dense<0.000000e+00> : vector<2x256xf32>
    %103 = tpu.matmul %102, %9, %cst_18 {dimension_numbers = #tpu.dot_dimension_numbers<[1], [0], [0], [1], [0, 0, 1, 1], [], []>} : vector<2x64xbf16>, vector<64x256xbf16>, vector<2x256xf32> -> vector<2x256xf32>
    %104 = arith.addf %101, %103 : vector<2x256xf32>
    %105 = vector.extract_strided_slice %104 {offsets = [0, 0], sizes = [2, 192], strides = [1, 1]} : vector<2x256xf32> to vector<2x192xf32>
    %106 = arith.negf %105 : vector<2x192xf32>
    %107 = math.exp %106 : vector<2x192xf32>
    %cst_19 = arith.constant 1.000000e+00 : f32
    %108 = vector.broadcast %cst_19 : f32 to vector<2x192xf32>
    %109 = arith.addf %108, %107 : vector<2x192xf32>
    %110 = arith.divf %108, %109 : vector<2x192xf32>
    %111 = vector.extract_strided_slice %104 {offsets = [0, 192], sizes = [2, 64], strides = [1, 1]} : vector<2x256xf32> to vector<2x64xf32>
    %112 = math.tanh %111 : vector<2x64xf32>
    %113 = vector.extract_strided_slice %110 {offsets = [0, 0], sizes = [2, 64], strides = [1, 1]} : vector<2x192xf32> to vector<2x64xf32>
    %114 = vector.extract_strided_slice %110 {offsets = [0, 64], sizes = [2, 64], strides = [1, 1]} : vector<2x192xf32> to vector<2x64xf32>
    %115 = vector.extract_strided_slice %110 {offsets = [0, 128], sizes = [2, 64], strides = [1, 1]} : vector<2x192xf32> to vector<2x64xf32>
    %116 = arith.mulf %114, %96 : vector<2x64xf32>
    %117 = arith.mulf %113, %112 : vector<2x64xf32>
    %118 = arith.addf %116, %117 : vector<2x64xf32>
    %119 = math.tanh %118 : vector<2x64xf32>
    %120 = arith.mulf %115, %119 : vector<2x64xf32>
    %121 = arith.truncf %120 : vector<2x64xf32> to vector<2x64xbf16>
    %122 = vector.extract_strided_slice %8 {offsets = [0, 5, 0], sizes = [2, 1, 256], strides = [1, 1, 1]} : vector<2x8x256xf32> to vector<2x1x256xf32>
    %123 = vector.shape_cast %122 : vector<2x1x256xf32> to vector<2x256xf32>
    %124 = arith.truncf %120 : vector<2x64xf32> to vector<2x64xbf16>
    %cst_20 = arith.constant dense<0.000000e+00> : vector<2x256xf32>
    %125 = tpu.matmul %124, %9, %cst_20 {dimension_numbers = #tpu.dot_dimension_numbers<[1], [0], [0], [1], [0, 0, 1, 1], [], []>} : vector<2x64xbf16>, vector<64x256xbf16>, vector<2x256xf32> -> vector<2x256xf32>
    %126 = arith.addf %123, %125 : vector<2x256xf32>
    %127 = vector.extract_strided_slice %126 {offsets = [0, 0], sizes = [2, 192], strides = [1, 1]} : vector<2x256xf32> to vector<2x192xf32>
    %128 = arith.negf %127 : vector<2x192xf32>
    %129 = math.exp %128 : vector<2x192xf32>
    %cst_21 = arith.constant 1.000000e+00 : f32
    %130 = vector.broadcast %cst_21 : f32 to vector<2x192xf32>
    %131 = arith.addf %130, %129 : vector<2x192xf32>
    %132 = arith.divf %130, %131 : vector<2x192xf32>
    %133 = vector.extract_strided_slice %126 {offsets = [0, 192], sizes = [2, 64], strides = [1, 1]} : vector<2x256xf32> to vector<2x64xf32>
    %134 = math.tanh %133 : vector<2x64xf32>
    %135 = vector.extract_strided_slice %132 {offsets = [0, 0], sizes = [2, 64], strides = [1, 1]} : vector<2x192xf32> to vector<2x64xf32>
    %136 = vector.extract_strided_slice %132 {offsets = [0, 64], sizes = [2, 64], strides = [1, 1]} : vector<2x192xf32> to vector<2x64xf32>
    %137 = vector.extract_strided_slice %132 {offsets = [0, 128], sizes = [2, 64], strides = [1, 1]} : vector<2x192xf32> to vector<2x64xf32>
    %138 = arith.mulf %136, %118 : vector<2x64xf32>
    %139 = arith.mulf %135, %134 : vector<2x64xf32>
    %140 = arith.addf %138, %139 : vector<2x64xf32>
    %141 = math.tanh %140 : vector<2x64xf32>
    %142 = arith.mulf %137, %141 : vector<2x64xf32>
    %143 = arith.truncf %142 : vector<2x64xf32> to vector<2x64xbf16>
    %144 = vector.extract_strided_slice %8 {offsets = [0, 6, 0], sizes = [2, 1, 256], strides = [1, 1, 1]} : vector<2x8x256xf32> to vector<2x1x256xf32>
    %145 = vector.shape_cast %144 : vector<2x1x256xf32> to vector<2x256xf32>
    %146 = arith.truncf %142 : vector<2x64xf32> to vector<2x64xbf16>
    %cst_22 = arith.constant dense<0.000000e+00> : vector<2x256xf32>
    %147 = tpu.matmul %146, %9, %cst_22 {dimension_numbers = #tpu.dot_dimension_numbers<[1], [0], [0], [1], [0, 0, 1, 1], [], []>} : vector<2x64xbf16>, vector<64x256xbf16>, vector<2x256xf32> -> vector<2x256xf32>
    %148 = arith.addf %145, %147 : vector<2x256xf32>
    %149 = vector.extract_strided_slice %148 {offsets = [0, 0], sizes = [2, 192], strides = [1, 1]} : vector<2x256xf32> to vector<2x192xf32>
    %150 = arith.negf %149 : vector<2x192xf32>
    %151 = math.exp %150 : vector<2x192xf32>
    %cst_23 = arith.constant 1.000000e+00 : f32
    %152 = vector.broadcast %cst_23 : f32 to vector<2x192xf32>
    %153 = arith.addf %152, %151 : vector<2x192xf32>
    %154 = arith.divf %152, %153 : vector<2x192xf32>
    %155 = vector.extract_strided_slice %148 {offsets = [0, 192], sizes = [2, 64], strides = [1, 1]} : vector<2x256xf32> to vector<2x64xf32>
    %156 = math.tanh %155 : vector<2x64xf32>
    %157 = vector.extract_strided_slice %154 {offsets = [0, 0], sizes = [2, 64], strides = [1, 1]} : vector<2x192xf32> to vector<2x64xf32>
    %158 = vector.extract_strided_slice %154 {offsets = [0, 64], sizes = [2, 64], strides = [1, 1]} : vector<2x192xf32> to vector<2x64xf32>
    %159 = vector.extract_strided_slice %154 {offsets = [0, 128], sizes = [2, 64], strides = [1, 1]} : vector<2x192xf32> to vector<2x64xf32>
    %160 = arith.mulf %158, %140 : vector<2x64xf32>
    %161 = arith.mulf %157, %156 : vector<2x64xf32>
    %162 = arith.addf %160, %161 : vector<2x64xf32>
    %163 = math.tanh %162 : vector<2x64xf32>
    %164 = arith.mulf %159, %163 : vector<2x64xf32>
    %165 = arith.truncf %164 : vector<2x64xf32> to vector<2x64xbf16>
    %166 = vector.extract_strided_slice %8 {offsets = [0, 7, 0], sizes = [2, 1, 256], strides = [1, 1, 1]} : vector<2x8x256xf32> to vector<2x1x256xf32>
    %167 = vector.shape_cast %166 : vector<2x1x256xf32> to vector<2x256xf32>
    %168 = arith.truncf %164 : vector<2x64xf32> to vector<2x64xbf16>
    %cst_24 = arith.constant dense<0.000000e+00> : vector<2x256xf32>
    %169 = tpu.matmul %168, %9, %cst_24 {dimension_numbers = #tpu.dot_dimension_numbers<[1], [0], [0], [1], [0, 0, 1, 1], [], []>} : vector<2x64xbf16>, vector<64x256xbf16>, vector<2x256xf32> -> vector<2x256xf32>
    %170 = arith.addf %167, %169 : vector<2x256xf32>
    %171 = vector.extract_strided_slice %170 {offsets = [0, 0], sizes = [2, 192], strides = [1, 1]} : vector<2x256xf32> to vector<2x192xf32>
    %172 = arith.negf %171 : vector<2x192xf32>
    %173 = math.exp %172 : vector<2x192xf32>
    %cst_25 = arith.constant 1.000000e+00 : f32
    %174 = vector.broadcast %cst_25 : f32 to vector<2x192xf32>
    %175 = arith.addf %174, %173 : vector<2x192xf32>
    %176 = arith.divf %174, %175 : vector<2x192xf32>
    %177 = vector.extract_strided_slice %170 {offsets = [0, 192], sizes = [2, 64], strides = [1, 1]} : vector<2x256xf32> to vector<2x64xf32>
    %178 = math.tanh %177 : vector<2x64xf32>
    %179 = vector.extract_strided_slice %176 {offsets = [0, 0], sizes = [2, 64], strides = [1, 1]} : vector<2x192xf32> to vector<2x64xf32>
    %180 = vector.extract_strided_slice %176 {offsets = [0, 64], sizes = [2, 64], strides = [1, 1]} : vector<2x192xf32> to vector<2x64xf32>
    %181 = vector.extract_strided_slice %176 {offsets = [0, 128], sizes = [2, 64], strides = [1, 1]} : vector<2x192xf32> to vector<2x64xf32>
    %182 = arith.mulf %180, %162 : vector<2x64xf32>
    %183 = arith.mulf %179, %178 : vector<2x64xf32>
    %184 = arith.addf %182, %183 : vector<2x64xf32>
    %185 = math.tanh %184 : vector<2x64xf32>
    %186 = arith.mulf %181, %185 : vector<2x64xf32>
    %187 = arith.truncf %186 : vector<2x64xf32> to vector<2x64xbf16>
    %188 = vector.shape_cast %33 : vector<2x64xbf16> to vector<2x1x64xbf16>
    %189 = vector.shape_cast %55 : vector<2x64xbf16> to vector<2x1x64xbf16>
    %190 = vector.shape_cast %77 : vector<2x64xbf16> to vector<2x1x64xbf16>
    %191 = vector.shape_cast %99 : vector<2x64xbf16> to vector<2x1x64xbf16>
    %192 = vector.shape_cast %121 : vector<2x64xbf16> to vector<2x1x64xbf16>
    %193 = vector.shape_cast %143 : vector<2x64xbf16> to vector<2x1x64xbf16>
    %194 = vector.shape_cast %165 : vector<2x64xbf16> to vector<2x1x64xbf16>
    %195 = vector.shape_cast %187 : vector<2x64xbf16> to vector<2x1x64xbf16>
    %196 = tpu.concatenate %188, %189, %190, %191, %192, %193, %194, %195 in 1 : vector<2x1x64xbf16>, vector<2x1x64xbf16>, vector<2x1x64xbf16>, vector<2x1x64xbf16>, vector<2x1x64xbf16>, vector<2x1x64xbf16>, vector<2x1x64xbf16>, vector<2x1x64xbf16> -> vector<2x8x64xbf16>
    %197 = vector.shape_cast %196 : vector<2x8x64xbf16> to vector<16x64xbf16>
    %c0_26 = arith.constant 0 : index
    %c0_27 = arith.constant 0 : index
    %198 = vector.load %arg4[%c0_26, %c0_27] : memref<64x256xbf16, #tpu.memory_space<vmem>>, vector<64x256xbf16>
    %cst_28 = arith.constant dense<0.000000e+00> : vector<16x256xf32>
    %199 = tpu.matmul %197, %198, %cst_28 {dimension_numbers = #tpu.dot_dimension_numbers<[1], [0], [0], [1], [0, 0, 1, 1], [], []>} : vector<16x64xbf16>, vector<64x256xbf16>, vector<16x256xf32> -> vector<16x256xf32>
    %c0_29 = arith.constant 0 : index
    %c0_30 = arith.constant 0 : index
    %200 = vector.load %arg6[%c0_29, %c0_30] : memref<1x256xf32, #tpu.memory_space<vmem>>, vector<1x256xf32>
    %201 = vector.broadcast %200 : vector<1x256xf32> to vector<16x256xf32>
    %202 = arith.addf %199, %201 : vector<16x256xf32>
    %203 = vector.shape_cast %202 : vector<16x256xf32> to vector<2x8x256xf32>
    %c0_31 = arith.constant 0 : index
    %c0_32 = arith.constant 0 : index
    %204 = vector.load %arg5[%c0_31, %c0_32] : memref<64x256xbf16, #tpu.memory_space<vmem>>, vector<64x256xbf16>
    %cst_33 = arith.constant 0.000000e+00 : f32
    %205 = vector.broadcast %cst_33 : f32 to vector<2x64xf32>
    %cst_34 = arith.constant 0.000000e+00 : f32
    %206 = vector.broadcast %cst_34 : f32 to vector<2x64xf32>
    %207 = vector.extract_strided_slice %203 {offsets = [0, 0, 0], sizes = [2, 1, 256], strides = [1, 1, 1]} : vector<2x8x256xf32> to vector<2x1x256xf32>
    %208 = vector.shape_cast %207 : vector<2x1x256xf32> to vector<2x256xf32>
    %209 = arith.truncf %205 : vector<2x64xf32> to vector<2x64xbf16>
    %cst_35 = arith.constant dense<0.000000e+00> : vector<2x256xf32>
    %210 = tpu.matmul %209, %204, %cst_35 {dimension_numbers = #tpu.dot_dimension_numbers<[1], [0], [0], [1], [0, 0, 1, 1], [], []>} : vector<2x64xbf16>, vector<64x256xbf16>, vector<2x256xf32> -> vector<2x256xf32>
    %211 = arith.addf %208, %210 : vector<2x256xf32>
    %212 = vector.extract_strided_slice %211 {offsets = [0, 0], sizes = [2, 192], strides = [1, 1]} : vector<2x256xf32> to vector<2x192xf32>
    %213 = arith.negf %212 : vector<2x192xf32>
    %214 = math.exp %213 : vector<2x192xf32>
    %cst_36 = arith.constant 1.000000e+00 : f32
    %215 = vector.broadcast %cst_36 : f32 to vector<2x192xf32>
    %216 = arith.addf %215, %214 : vector<2x192xf32>
    %217 = arith.divf %215, %216 : vector<2x192xf32>
    %218 = vector.extract_strided_slice %211 {offsets = [0, 192], sizes = [2, 64], strides = [1, 1]} : vector<2x256xf32> to vector<2x64xf32>
    %219 = math.tanh %218 : vector<2x64xf32>
    %220 = vector.extract_strided_slice %217 {offsets = [0, 0], sizes = [2, 64], strides = [1, 1]} : vector<2x192xf32> to vector<2x64xf32>
    %221 = vector.extract_strided_slice %217 {offsets = [0, 64], sizes = [2, 64], strides = [1, 1]} : vector<2x192xf32> to vector<2x64xf32>
    %222 = vector.extract_strided_slice %217 {offsets = [0, 128], sizes = [2, 64], strides = [1, 1]} : vector<2x192xf32> to vector<2x64xf32>
    %223 = arith.mulf %221, %206 : vector<2x64xf32>
    %224 = arith.mulf %220, %219 : vector<2x64xf32>
    %225 = arith.addf %223, %224 : vector<2x64xf32>
    %226 = math.tanh %225 : vector<2x64xf32>
    %227 = arith.mulf %222, %226 : vector<2x64xf32>
    %228 = arith.truncf %227 : vector<2x64xf32> to vector<2x64xbf16>
    %229 = vector.extract_strided_slice %203 {offsets = [0, 1, 0], sizes = [2, 1, 256], strides = [1, 1, 1]} : vector<2x8x256xf32> to vector<2x1x256xf32>
    %230 = vector.shape_cast %229 : vector<2x1x256xf32> to vector<2x256xf32>
    %231 = arith.truncf %227 : vector<2x64xf32> to vector<2x64xbf16>
    %cst_37 = arith.constant dense<0.000000e+00> : vector<2x256xf32>
    %232 = tpu.matmul %231, %204, %cst_37 {dimension_numbers = #tpu.dot_dimension_numbers<[1], [0], [0], [1], [0, 0, 1, 1], [], []>} : vector<2x64xbf16>, vector<64x256xbf16>, vector<2x256xf32> -> vector<2x256xf32>
    %233 = arith.addf %230, %232 : vector<2x256xf32>
    %234 = vector.extract_strided_slice %233 {offsets = [0, 0], sizes = [2, 192], strides = [1, 1]} : vector<2x256xf32> to vector<2x192xf32>
    %235 = arith.negf %234 : vector<2x192xf32>
    %236 = math.exp %235 : vector<2x192xf32>
    %cst_38 = arith.constant 1.000000e+00 : f32
    %237 = vector.broadcast %cst_38 : f32 to vector<2x192xf32>
    %238 = arith.addf %237, %236 : vector<2x192xf32>
    %239 = arith.divf %237, %238 : vector<2x192xf32>
    %240 = vector.extract_strided_slice %233 {offsets = [0, 192], sizes = [2, 64], strides = [1, 1]} : vector<2x256xf32> to vector<2x64xf32>
    %241 = math.tanh %240 : vector<2x64xf32>
    %242 = vector.extract_strided_slice %239 {offsets = [0, 0], sizes = [2, 64], strides = [1, 1]} : vector<2x192xf32> to vector<2x64xf32>
    %243 = vector.extract_strided_slice %239 {offsets = [0, 64], sizes = [2, 64], strides = [1, 1]} : vector<2x192xf32> to vector<2x64xf32>
    %244 = vector.extract_strided_slice %239 {offsets = [0, 128], sizes = [2, 64], strides = [1, 1]} : vector<2x192xf32> to vector<2x64xf32>
    %245 = arith.mulf %243, %225 : vector<2x64xf32>
    %246 = arith.mulf %242, %241 : vector<2x64xf32>
    %247 = arith.addf %245, %246 : vector<2x64xf32>
    %248 = math.tanh %247 : vector<2x64xf32>
    %249 = arith.mulf %244, %248 : vector<2x64xf32>
    %250 = arith.truncf %249 : vector<2x64xf32> to vector<2x64xbf16>
    %251 = vector.extract_strided_slice %203 {offsets = [0, 2, 0], sizes = [2, 1, 256], strides = [1, 1, 1]} : vector<2x8x256xf32> to vector<2x1x256xf32>
    %252 = vector.shape_cast %251 : vector<2x1x256xf32> to vector<2x256xf32>
    %253 = arith.truncf %249 : vector<2x64xf32> to vector<2x64xbf16>
    %cst_39 = arith.constant dense<0.000000e+00> : vector<2x256xf32>
    %254 = tpu.matmul %253, %204, %cst_39 {dimension_numbers = #tpu.dot_dimension_numbers<[1], [0], [0], [1], [0, 0, 1, 1], [], []>} : vector<2x64xbf16>, vector<64x256xbf16>, vector<2x256xf32> -> vector<2x256xf32>
    %255 = arith.addf %252, %254 : vector<2x256xf32>
    %256 = vector.extract_strided_slice %255 {offsets = [0, 0], sizes = [2, 192], strides = [1, 1]} : vector<2x256xf32> to vector<2x192xf32>
    %257 = arith.negf %256 : vector<2x192xf32>
    %258 = math.exp %257 : vector<2x192xf32>
    %cst_40 = arith.constant 1.000000e+00 : f32
    %259 = vector.broadcast %cst_40 : f32 to vector<2x192xf32>
    %260 = arith.addf %259, %258 : vector<2x192xf32>
    %261 = arith.divf %259, %260 : vector<2x192xf32>
    %262 = vector.extract_strided_slice %255 {offsets = [0, 192], sizes = [2, 64], strides = [1, 1]} : vector<2x256xf32> to vector<2x64xf32>
    %263 = math.tanh %262 : vector<2x64xf32>
    %264 = vector.extract_strided_slice %261 {offsets = [0, 0], sizes = [2, 64], strides = [1, 1]} : vector<2x192xf32> to vector<2x64xf32>
    %265 = vector.extract_strided_slice %261 {offsets = [0, 64], sizes = [2, 64], strides = [1, 1]} : vector<2x192xf32> to vector<2x64xf32>
    %266 = vector.extract_strided_slice %261 {offsets = [0, 128], sizes = [2, 64], strides = [1, 1]} : vector<2x192xf32> to vector<2x64xf32>
    %267 = arith.mulf %265, %247 : vector<2x64xf32>
    %268 = arith.mulf %264, %263 : vector<2x64xf32>
    %269 = arith.addf %267, %268 : vector<2x64xf32>
    %270 = math.tanh %269 : vector<2x64xf32>
    %271 = arith.mulf %266, %270 : vector<2x64xf32>
    %272 = arith.truncf %271 : vector<2x64xf32> to vector<2x64xbf16>
    %273 = vector.extract_strided_slice %203 {offsets = [0, 3, 0], sizes = [2, 1, 256], strides = [1, 1, 1]} : vector<2x8x256xf32> to vector<2x1x256xf32>
    %274 = vector.shape_cast %273 : vector<2x1x256xf32> to vector<2x256xf32>
    %275 = arith.truncf %271 : vector<2x64xf32> to vector<2x64xbf16>
    %cst_41 = arith.constant dense<0.000000e+00> : vector<2x256xf32>
    %276 = tpu.matmul %275, %204, %cst_41 {dimension_numbers = #tpu.dot_dimension_numbers<[1], [0], [0], [1], [0, 0, 1, 1], [], []>} : vector<2x64xbf16>, vector<64x256xbf16>, vector<2x256xf32> -> vector<2x256xf32>
    %277 = arith.addf %274, %276 : vector<2x256xf32>
    %278 = vector.extract_strided_slice %277 {offsets = [0, 0], sizes = [2, 192], strides = [1, 1]} : vector<2x256xf32> to vector<2x192xf32>
    %279 = arith.negf %278 : vector<2x192xf32>
    %280 = math.exp %279 : vector<2x192xf32>
    %cst_42 = arith.constant 1.000000e+00 : f32
    %281 = vector.broadcast %cst_42 : f32 to vector<2x192xf32>
    %282 = arith.addf %281, %280 : vector<2x192xf32>
    %283 = arith.divf %281, %282 : vector<2x192xf32>
    %284 = vector.extract_strided_slice %277 {offsets = [0, 192], sizes = [2, 64], strides = [1, 1]} : vector<2x256xf32> to vector<2x64xf32>
    %285 = math.tanh %284 : vector<2x64xf32>
    %286 = vector.extract_strided_slice %283 {offsets = [0, 0], sizes = [2, 64], strides = [1, 1]} : vector<2x192xf32> to vector<2x64xf32>
    %287 = vector.extract_strided_slice %283 {offsets = [0, 64], sizes = [2, 64], strides = [1, 1]} : vector<2x192xf32> to vector<2x64xf32>
    %288 = vector.extract_strided_slice %283 {offsets = [0, 128], sizes = [2, 64], strides = [1, 1]} : vector<2x192xf32> to vector<2x64xf32>
    %289 = arith.mulf %287, %269 : vector<2x64xf32>
    %290 = arith.mulf %286, %285 : vector<2x64xf32>
    %291 = arith.addf %289, %290 : vector<2x64xf32>
    %292 = math.tanh %291 : vector<2x64xf32>
    %293 = arith.mulf %288, %292 : vector<2x64xf32>
    %294 = arith.truncf %293 : vector<2x64xf32> to vector<2x64xbf16>
    %295 = vector.extract_strided_slice %203 {offsets = [0, 4, 0], sizes = [2, 1, 256], strides = [1, 1, 1]} : vector<2x8x256xf32> to vector<2x1x256xf32>
    %296 = vector.shape_cast %295 : vector<2x1x256xf32> to vector<2x256xf32>
    %297 = arith.truncf %293 : vector<2x64xf32> to vector<2x64xbf16>
    %cst_43 = arith.constant dense<0.000000e+00> : vector<2x256xf32>
    %298 = tpu.matmul %297, %204, %cst_43 {dimension_numbers = #tpu.dot_dimension_numbers<[1], [0], [0], [1], [0, 0, 1, 1], [], []>} : vector<2x64xbf16>, vector<64x256xbf16>, vector<2x256xf32> -> vector<2x256xf32>
    %299 = arith.addf %296, %298 : vector<2x256xf32>
    %300 = vector.extract_strided_slice %299 {offsets = [0, 0], sizes = [2, 192], strides = [1, 1]} : vector<2x256xf32> to vector<2x192xf32>
    %301 = arith.negf %300 : vector<2x192xf32>
    %302 = math.exp %301 : vector<2x192xf32>
    %cst_44 = arith.constant 1.000000e+00 : f32
    %303 = vector.broadcast %cst_44 : f32 to vector<2x192xf32>
    %304 = arith.addf %303, %302 : vector<2x192xf32>
    %305 = arith.divf %303, %304 : vector<2x192xf32>
    %306 = vector.extract_strided_slice %299 {offsets = [0, 192], sizes = [2, 64], strides = [1, 1]} : vector<2x256xf32> to vector<2x64xf32>
    %307 = math.tanh %306 : vector<2x64xf32>
    %308 = vector.extract_strided_slice %305 {offsets = [0, 0], sizes = [2, 64], strides = [1, 1]} : vector<2x192xf32> to vector<2x64xf32>
    %309 = vector.extract_strided_slice %305 {offsets = [0, 64], sizes = [2, 64], strides = [1, 1]} : vector<2x192xf32> to vector<2x64xf32>
    %310 = vector.extract_strided_slice %305 {offsets = [0, 128], sizes = [2, 64], strides = [1, 1]} : vector<2x192xf32> to vector<2x64xf32>
    %311 = arith.mulf %309, %291 : vector<2x64xf32>
    %312 = arith.mulf %308, %307 : vector<2x64xf32>
    %313 = arith.addf %311, %312 : vector<2x64xf32>
    %314 = math.tanh %313 : vector<2x64xf32>
    %315 = arith.mulf %310, %314 : vector<2x64xf32>
    %316 = arith.truncf %315 : vector<2x64xf32> to vector<2x64xbf16>
    %317 = vector.extract_strided_slice %203 {offsets = [0, 5, 0], sizes = [2, 1, 256], strides = [1, 1, 1]} : vector<2x8x256xf32> to vector<2x1x256xf32>
    %318 = vector.shape_cast %317 : vector<2x1x256xf32> to vector<2x256xf32>
    %319 = arith.truncf %315 : vector<2x64xf32> to vector<2x64xbf16>
    %cst_45 = arith.constant dense<0.000000e+00> : vector<2x256xf32>
    %320 = tpu.matmul %319, %204, %cst_45 {dimension_numbers = #tpu.dot_dimension_numbers<[1], [0], [0], [1], [0, 0, 1, 1], [], []>} : vector<2x64xbf16>, vector<64x256xbf16>, vector<2x256xf32> -> vector<2x256xf32>
    %321 = arith.addf %318, %320 : vector<2x256xf32>
    %322 = vector.extract_strided_slice %321 {offsets = [0, 0], sizes = [2, 192], strides = [1, 1]} : vector<2x256xf32> to vector<2x192xf32>
    %323 = arith.negf %322 : vector<2x192xf32>
    %324 = math.exp %323 : vector<2x192xf32>
    %cst_46 = arith.constant 1.000000e+00 : f32
    %325 = vector.broadcast %cst_46 : f32 to vector<2x192xf32>
    %326 = arith.addf %325, %324 : vector<2x192xf32>
    %327 = arith.divf %325, %326 : vector<2x192xf32>
    %328 = vector.extract_strided_slice %321 {offsets = [0, 192], sizes = [2, 64], strides = [1, 1]} : vector<2x256xf32> to vector<2x64xf32>
    %329 = math.tanh %328 : vector<2x64xf32>
    %330 = vector.extract_strided_slice %327 {offsets = [0, 0], sizes = [2, 64], strides = [1, 1]} : vector<2x192xf32> to vector<2x64xf32>
    %331 = vector.extract_strided_slice %327 {offsets = [0, 64], sizes = [2, 64], strides = [1, 1]} : vector<2x192xf32> to vector<2x64xf32>
    %332 = vector.extract_strided_slice %327 {offsets = [0, 128], sizes = [2, 64], strides = [1, 1]} : vector<2x192xf32> to vector<2x64xf32>
    %333 = arith.mulf %331, %313 : vector<2x64xf32>
    %334 = arith.mulf %330, %329 : vector<2x64xf32>
    %335 = arith.addf %333, %334 : vector<2x64xf32>
    %336 = math.tanh %335 : vector<2x64xf32>
    %337 = arith.mulf %332, %336 : vector<2x64xf32>
    %338 = arith.truncf %337 : vector<2x64xf32> to vector<2x64xbf16>
    %339 = vector.extract_strided_slice %203 {offsets = [0, 6, 0], sizes = [2, 1, 256], strides = [1, 1, 1]} : vector<2x8x256xf32> to vector<2x1x256xf32>
    %340 = vector.shape_cast %339 : vector<2x1x256xf32> to vector<2x256xf32>
    %341 = arith.truncf %337 : vector<2x64xf32> to vector<2x64xbf16>
    %cst_47 = arith.constant dense<0.000000e+00> : vector<2x256xf32>
    %342 = tpu.matmul %341, %204, %cst_47 {dimension_numbers = #tpu.dot_dimension_numbers<[1], [0], [0], [1], [0, 0, 1, 1], [], []>} : vector<2x64xbf16>, vector<64x256xbf16>, vector<2x256xf32> -> vector<2x256xf32>
    %343 = arith.addf %340, %342 : vector<2x256xf32>
    %344 = vector.extract_strided_slice %343 {offsets = [0, 0], sizes = [2, 192], strides = [1, 1]} : vector<2x256xf32> to vector<2x192xf32>
    %345 = arith.negf %344 : vector<2x192xf32>
    %346 = math.exp %345 : vector<2x192xf32>
    %cst_48 = arith.constant 1.000000e+00 : f32
    %347 = vector.broadcast %cst_48 : f32 to vector<2x192xf32>
    %348 = arith.addf %347, %346 : vector<2x192xf32>
    %349 = arith.divf %347, %348 : vector<2x192xf32>
    %350 = vector.extract_strided_slice %343 {offsets = [0, 192], sizes = [2, 64], strides = [1, 1]} : vector<2x256xf32> to vector<2x64xf32>
    %351 = math.tanh %350 : vector<2x64xf32>
    %352 = vector.extract_strided_slice %349 {offsets = [0, 0], sizes = [2, 64], strides = [1, 1]} : vector<2x192xf32> to vector<2x64xf32>
    %353 = vector.extract_strided_slice %349 {offsets = [0, 64], sizes = [2, 64], strides = [1, 1]} : vector<2x192xf32> to vector<2x64xf32>
    %354 = vector.extract_strided_slice %349 {offsets = [0, 128], sizes = [2, 64], strides = [1, 1]} : vector<2x192xf32> to vector<2x64xf32>
    %355 = arith.mulf %353, %335 : vector<2x64xf32>
    %356 = arith.mulf %352, %351 : vector<2x64xf32>
    %357 = arith.addf %355, %356 : vector<2x64xf32>
    %358 = math.tanh %357 : vector<2x64xf32>
    %359 = arith.mulf %354, %358 : vector<2x64xf32>
    %360 = arith.truncf %359 : vector<2x64xf32> to vector<2x64xbf16>
    %361 = vector.extract_strided_slice %203 {offsets = [0, 7, 0], sizes = [2, 1, 256], strides = [1, 1, 1]} : vector<2x8x256xf32> to vector<2x1x256xf32>
    %362 = vector.shape_cast %361 : vector<2x1x256xf32> to vector<2x256xf32>
    %363 = arith.truncf %359 : vector<2x64xf32> to vector<2x64xbf16>
    %cst_49 = arith.constant dense<0.000000e+00> : vector<2x256xf32>
    %364 = tpu.matmul %363, %204, %cst_49 {dimension_numbers = #tpu.dot_dimension_numbers<[1], [0], [0], [1], [0, 0, 1, 1], [], []>} : vector<2x64xbf16>, vector<64x256xbf16>, vector<2x256xf32> -> vector<2x256xf32>
    %365 = arith.addf %362, %364 : vector<2x256xf32>
    %366 = vector.extract_strided_slice %365 {offsets = [0, 0], sizes = [2, 192], strides = [1, 1]} : vector<2x256xf32> to vector<2x192xf32>
    %367 = arith.negf %366 : vector<2x192xf32>
    %368 = math.exp %367 : vector<2x192xf32>
    %cst_50 = arith.constant 1.000000e+00 : f32
    %369 = vector.broadcast %cst_50 : f32 to vector<2x192xf32>
    %370 = arith.addf %369, %368 : vector<2x192xf32>
    %371 = arith.divf %369, %370 : vector<2x192xf32>
    %372 = vector.extract_strided_slice %365 {offsets = [0, 192], sizes = [2, 64], strides = [1, 1]} : vector<2x256xf32> to vector<2x64xf32>
    %373 = math.tanh %372 : vector<2x64xf32>
    %374 = vector.extract_strided_slice %371 {offsets = [0, 0], sizes = [2, 64], strides = [1, 1]} : vector<2x192xf32> to vector<2x64xf32>
    %375 = vector.extract_strided_slice %371 {offsets = [0, 64], sizes = [2, 64], strides = [1, 1]} : vector<2x192xf32> to vector<2x64xf32>
    %376 = vector.extract_strided_slice %371 {offsets = [0, 128], sizes = [2, 64], strides = [1, 1]} : vector<2x192xf32> to vector<2x64xf32>
    %377 = arith.mulf %375, %357 : vector<2x64xf32>
    %378 = arith.mulf %374, %373 : vector<2x64xf32>
    %379 = arith.addf %377, %378 : vector<2x64xf32>
    %380 = math.tanh %379 : vector<2x64xf32>
    %381 = arith.mulf %376, %380 : vector<2x64xf32>
    %382 = arith.truncf %381 : vector<2x64xf32> to vector<2x64xbf16>
    %383 = vector.shape_cast %228 : vector<2x64xbf16> to vector<2x1x64xbf16>
    %384 = vector.shape_cast %250 : vector<2x64xbf16> to vector<2x1x64xbf16>
    %385 = vector.shape_cast %272 : vector<2x64xbf16> to vector<2x1x64xbf16>
    %386 = vector.shape_cast %294 : vector<2x64xbf16> to vector<2x1x64xbf16>
    %387 = vector.shape_cast %316 : vector<2x64xbf16> to vector<2x1x64xbf16>
    %388 = vector.shape_cast %338 : vector<2x64xbf16> to vector<2x1x64xbf16>
    %389 = vector.shape_cast %360 : vector<2x64xbf16> to vector<2x1x64xbf16>
    %390 = vector.shape_cast %382 : vector<2x64xbf16> to vector<2x1x64xbf16>
    %391 = tpu.concatenate %383, %384, %385, %386, %387, %388, %389, %390 in 1 : vector<2x1x64xbf16>, vector<2x1x64xbf16>, vector<2x1x64xbf16>, vector<2x1x64xbf16>, vector<2x1x64xbf16>, vector<2x1x64xbf16>, vector<2x1x64xbf16>, vector<2x1x64xbf16> -> vector<2x8x64xbf16>
    %392 = vector.shape_cast %391 : vector<2x8x64xbf16> to vector<16x64xbf16>
    %c0_51 = arith.constant 0 : index
    %c0_52 = arith.constant 0 : index
    %393 = vector.load %arg7[%c0_51, %c0_52] : memref<64x128xbf16, #tpu.memory_space<vmem>>, vector<64x128xbf16>
    %cst_53 = arith.constant dense<0.000000e+00> : vector<16x128xf32>
    %394 = tpu.matmul %392, %393, %cst_53 {dimension_numbers = #tpu.dot_dimension_numbers<[1], [0], [0], [1], [0, 0, 1, 1], [], []>} : vector<16x64xbf16>, vector<64x128xbf16>, vector<16x128xf32> -> vector<16x128xf32>
    %c0_54 = arith.constant 0 : index
    %c0_55 = arith.constant 0 : index
    %395 = vector.load %arg9[%c0_54, %c0_55] : memref<1x128xf32, #tpu.memory_space<vmem>>, vector<1x128xf32>
    %396 = vector.broadcast %395 : vector<1x128xf32> to vector<16x128xf32>
    %397 = arith.addf %394, %396 : vector<16x128xf32>
    %398 = vector.shape_cast %397 : vector<16x128xf32> to vector<2x8x128xf32>
    %c0_56 = arith.constant 0 : index
    %c0_57 = arith.constant 0 : index
    %399 = vector.load %arg8[%c0_56, %c0_57] : memref<32x128xbf16, #tpu.memory_space<vmem>>, vector<32x128xbf16>
    %cst_58 = arith.constant 0.000000e+00 : f32
    %400 = vector.broadcast %cst_58 : f32 to vector<2x32xf32>
    %cst_59 = arith.constant 0.000000e+00 : f32
    %401 = vector.broadcast %cst_59 : f32 to vector<2x32xf32>
    %402 = vector.extract_strided_slice %398 {offsets = [0, 0, 0], sizes = [2, 1, 128], strides = [1, 1, 1]} : vector<2x8x128xf32> to vector<2x1x128xf32>
    %403 = vector.shape_cast %402 : vector<2x1x128xf32> to vector<2x128xf32>
    %404 = arith.truncf %400 : vector<2x32xf32> to vector<2x32xbf16>
    %cst_60 = arith.constant dense<0.000000e+00> : vector<2x128xf32>
    %405 = tpu.matmul %404, %399, %cst_60 {dimension_numbers = #tpu.dot_dimension_numbers<[1], [0], [0], [1], [0, 0, 1, 1], [], []>} : vector<2x32xbf16>, vector<32x128xbf16>, vector<2x128xf32> -> vector<2x128xf32>
    %406 = arith.addf %403, %405 : vector<2x128xf32>
    %407 = vector.extract_strided_slice %406 {offsets = [0, 0], sizes = [2, 96], strides = [1, 1]} : vector<2x128xf32> to vector<2x96xf32>
    %408 = arith.negf %407 : vector<2x96xf32>
    %409 = math.exp %408 : vector<2x96xf32>
    %cst_61 = arith.constant 1.000000e+00 : f32
    %410 = vector.broadcast %cst_61 : f32 to vector<2x96xf32>
    %411 = arith.addf %410, %409 : vector<2x96xf32>
    %412 = arith.divf %410, %411 : vector<2x96xf32>
    %413 = vector.extract_strided_slice %406 {offsets = [0, 96], sizes = [2, 32], strides = [1, 1]} : vector<2x128xf32> to vector<2x32xf32>
    %414 = math.tanh %413 : vector<2x32xf32>
    %415 = vector.extract_strided_slice %412 {offsets = [0, 0], sizes = [2, 32], strides = [1, 1]} : vector<2x96xf32> to vector<2x32xf32>
    %416 = vector.extract_strided_slice %412 {offsets = [0, 32], sizes = [2, 32], strides = [1, 1]} : vector<2x96xf32> to vector<2x32xf32>
    %417 = vector.extract_strided_slice %412 {offsets = [0, 64], sizes = [2, 32], strides = [1, 1]} : vector<2x96xf32> to vector<2x32xf32>
    %418 = arith.mulf %416, %401 : vector<2x32xf32>
    %419 = arith.mulf %415, %414 : vector<2x32xf32>
    %420 = arith.addf %418, %419 : vector<2x32xf32>
    %421 = math.tanh %420 : vector<2x32xf32>
    %422 = arith.mulf %417, %421 : vector<2x32xf32>
    %423 = vector.extract_strided_slice %398 {offsets = [0, 1, 0], sizes = [2, 1, 128], strides = [1, 1, 1]} : vector<2x8x128xf32> to vector<2x1x128xf32>
    %424 = vector.shape_cast %423 : vector<2x1x128xf32> to vector<2x128xf32>
    %425 = arith.truncf %422 : vector<2x32xf32> to vector<2x32xbf16>
    %cst_62 = arith.constant dense<0.000000e+00> : vector<2x128xf32>
    %426 = tpu.matmul %425, %399, %cst_62 {dimension_numbers = #tpu.dot_dimension_numbers<[1], [0], [0], [1], [0, 0, 1, 1], [], []>} : vector<2x32xbf16>, vector<32x128xbf16>, vector<2x128xf32> -> vector<2x128xf32>
    %427 = arith.addf %424, %426 : vector<2x128xf32>
    %428 = vector.extract_strided_slice %427 {offsets = [0, 0], sizes = [2, 96], strides = [1, 1]} : vector<2x128xf32> to vector<2x96xf32>
    %429 = arith.negf %428 : vector<2x96xf32>
    %430 = math.exp %429 : vector<2x96xf32>
    %cst_63 = arith.constant 1.000000e+00 : f32
    %431 = vector.broadcast %cst_63 : f32 to vector<2x96xf32>
    %432 = arith.addf %431, %430 : vector<2x96xf32>
    %433 = arith.divf %431, %432 : vector<2x96xf32>
    %434 = vector.extract_strided_slice %427 {offsets = [0, 96], sizes = [2, 32], strides = [1, 1]} : vector<2x128xf32> to vector<2x32xf32>
    %435 = math.tanh %434 : vector<2x32xf32>
    %436 = vector.extract_strided_slice %433 {offsets = [0, 0], sizes = [2, 32], strides = [1, 1]} : vector<2x96xf32> to vector<2x32xf32>
    %437 = vector.extract_strided_slice %433 {offsets = [0, 32], sizes = [2, 32], strides = [1, 1]} : vector<2x96xf32> to vector<2x32xf32>
    %438 = vector.extract_strided_slice %433 {offsets = [0, 64], sizes = [2, 32], strides = [1, 1]} : vector<2x96xf32> to vector<2x32xf32>
    %439 = arith.mulf %437, %420 : vector<2x32xf32>
    %440 = arith.mulf %436, %435 : vector<2x32xf32>
    %441 = arith.addf %439, %440 : vector<2x32xf32>
    %442 = math.tanh %441 : vector<2x32xf32>
    %443 = arith.mulf %438, %442 : vector<2x32xf32>
    %444 = vector.extract_strided_slice %398 {offsets = [0, 2, 0], sizes = [2, 1, 128], strides = [1, 1, 1]} : vector<2x8x128xf32> to vector<2x1x128xf32>
    %445 = vector.shape_cast %444 : vector<2x1x128xf32> to vector<2x128xf32>
    %446 = arith.truncf %443 : vector<2x32xf32> to vector<2x32xbf16>
    %cst_64 = arith.constant dense<0.000000e+00> : vector<2x128xf32>
    %447 = tpu.matmul %446, %399, %cst_64 {dimension_numbers = #tpu.dot_dimension_numbers<[1], [0], [0], [1], [0, 0, 1, 1], [], []>} : vector<2x32xbf16>, vector<32x128xbf16>, vector<2x128xf32> -> vector<2x128xf32>
    %448 = arith.addf %445, %447 : vector<2x128xf32>
    %449 = vector.extract_strided_slice %448 {offsets = [0, 0], sizes = [2, 96], strides = [1, 1]} : vector<2x128xf32> to vector<2x96xf32>
    %450 = arith.negf %449 : vector<2x96xf32>
    %451 = math.exp %450 : vector<2x96xf32>
    %cst_65 = arith.constant 1.000000e+00 : f32
    %452 = vector.broadcast %cst_65 : f32 to vector<2x96xf32>
    %453 = arith.addf %452, %451 : vector<2x96xf32>
    %454 = arith.divf %452, %453 : vector<2x96xf32>
    %455 = vector.extract_strided_slice %448 {offsets = [0, 96], sizes = [2, 32], strides = [1, 1]} : vector<2x128xf32> to vector<2x32xf32>
    %456 = math.tanh %455 : vector<2x32xf32>
    %457 = vector.extract_strided_slice %454 {offsets = [0, 0], sizes = [2, 32], strides = [1, 1]} : vector<2x96xf32> to vector<2x32xf32>
    %458 = vector.extract_strided_slice %454 {offsets = [0, 32], sizes = [2, 32], strides = [1, 1]} : vector<2x96xf32> to vector<2x32xf32>
    %459 = vector.extract_strided_slice %454 {offsets = [0, 64], sizes = [2, 32], strides = [1, 1]} : vector<2x96xf32> to vector<2x32xf32>
    %460 = arith.mulf %458, %441 : vector<2x32xf32>
    %461 = arith.mulf %457, %456 : vector<2x32xf32>
    %462 = arith.addf %460, %461 : vector<2x32xf32>
    %463 = math.tanh %462 : vector<2x32xf32>
    %464 = arith.mulf %459, %463 : vector<2x32xf32>
    %465 = vector.extract_strided_slice %398 {offsets = [0, 3, 0], sizes = [2, 1, 128], strides = [1, 1, 1]} : vector<2x8x128xf32> to vector<2x1x128xf32>
    %466 = vector.shape_cast %465 : vector<2x1x128xf32> to vector<2x128xf32>
    %467 = arith.truncf %464 : vector<2x32xf32> to vector<2x32xbf16>
    %cst_66 = arith.constant dense<0.000000e+00> : vector<2x128xf32>
    %468 = tpu.matmul %467, %399, %cst_66 {dimension_numbers = #tpu.dot_dimension_numbers<[1], [0], [0], [1], [0, 0, 1, 1], [], []>} : vector<2x32xbf16>, vector<32x128xbf16>, vector<2x128xf32> -> vector<2x128xf32>
    %469 = arith.addf %466, %468 : vector<2x128xf32>
    %470 = vector.extract_strided_slice %469 {offsets = [0, 0], sizes = [2, 96], strides = [1, 1]} : vector<2x128xf32> to vector<2x96xf32>
    %471 = arith.negf %470 : vector<2x96xf32>
    %472 = math.exp %471 : vector<2x96xf32>
    %cst_67 = arith.constant 1.000000e+00 : f32
    %473 = vector.broadcast %cst_67 : f32 to vector<2x96xf32>
    %474 = arith.addf %473, %472 : vector<2x96xf32>
    %475 = arith.divf %473, %474 : vector<2x96xf32>
    %476 = vector.extract_strided_slice %469 {offsets = [0, 96], sizes = [2, 32], strides = [1, 1]} : vector<2x128xf32> to vector<2x32xf32>
    %477 = math.tanh %476 : vector<2x32xf32>
    %478 = vector.extract_strided_slice %475 {offsets = [0, 0], sizes = [2, 32], strides = [1, 1]} : vector<2x96xf32> to vector<2x32xf32>
    %479 = vector.extract_strided_slice %475 {offsets = [0, 32], sizes = [2, 32], strides = [1, 1]} : vector<2x96xf32> to vector<2x32xf32>
    %480 = vector.extract_strided_slice %475 {offsets = [0, 64], sizes = [2, 32], strides = [1, 1]} : vector<2x96xf32> to vector<2x32xf32>
    %481 = arith.mulf %479, %462 : vector<2x32xf32>
    %482 = arith.mulf %478, %477 : vector<2x32xf32>
    %483 = arith.addf %481, %482 : vector<2x32xf32>
    %484 = math.tanh %483 : vector<2x32xf32>
    %485 = arith.mulf %480, %484 : vector<2x32xf32>
    %486 = vector.extract_strided_slice %398 {offsets = [0, 4, 0], sizes = [2, 1, 128], strides = [1, 1, 1]} : vector<2x8x128xf32> to vector<2x1x128xf32>
    %487 = vector.shape_cast %486 : vector<2x1x128xf32> to vector<2x128xf32>
    %488 = arith.truncf %485 : vector<2x32xf32> to vector<2x32xbf16>
    %cst_68 = arith.constant dense<0.000000e+00> : vector<2x128xf32>
    %489 = tpu.matmul %488, %399, %cst_68 {dimension_numbers = #tpu.dot_dimension_numbers<[1], [0], [0], [1], [0, 0, 1, 1], [], []>} : vector<2x32xbf16>, vector<32x128xbf16>, vector<2x128xf32> -> vector<2x128xf32>
    %490 = arith.addf %487, %489 : vector<2x128xf32>
    %491 = vector.extract_strided_slice %490 {offsets = [0, 0], sizes = [2, 96], strides = [1, 1]} : vector<2x128xf32> to vector<2x96xf32>
    %492 = arith.negf %491 : vector<2x96xf32>
    %493 = math.exp %492 : vector<2x96xf32>
    %cst_69 = arith.constant 1.000000e+00 : f32
    %494 = vector.broadcast %cst_69 : f32 to vector<2x96xf32>
    %495 = arith.addf %494, %493 : vector<2x96xf32>
    %496 = arith.divf %494, %495 : vector<2x96xf32>
    %497 = vector.extract_strided_slice %490 {offsets = [0, 96], sizes = [2, 32], strides = [1, 1]} : vector<2x128xf32> to vector<2x32xf32>
    %498 = math.tanh %497 : vector<2x32xf32>
    %499 = vector.extract_strided_slice %496 {offsets = [0, 0], sizes = [2, 32], strides = [1, 1]} : vector<2x96xf32> to vector<2x32xf32>
    %500 = vector.extract_strided_slice %496 {offsets = [0, 32], sizes = [2, 32], strides = [1, 1]} : vector<2x96xf32> to vector<2x32xf32>
    %501 = vector.extract_strided_slice %496 {offsets = [0, 64], sizes = [2, 32], strides = [1, 1]} : vector<2x96xf32> to vector<2x32xf32>
    %502 = arith.mulf %500, %483 : vector<2x32xf32>
    %503 = arith.mulf %499, %498 : vector<2x32xf32>
    %504 = arith.addf %502, %503 : vector<2x32xf32>
    %505 = math.tanh %504 : vector<2x32xf32>
    %506 = arith.mulf %501, %505 : vector<2x32xf32>
    %507 = vector.extract_strided_slice %398 {offsets = [0, 5, 0], sizes = [2, 1, 128], strides = [1, 1, 1]} : vector<2x8x128xf32> to vector<2x1x128xf32>
    %508 = vector.shape_cast %507 : vector<2x1x128xf32> to vector<2x128xf32>
    %509 = arith.truncf %506 : vector<2x32xf32> to vector<2x32xbf16>
    %cst_70 = arith.constant dense<0.000000e+00> : vector<2x128xf32>
    %510 = tpu.matmul %509, %399, %cst_70 {dimension_numbers = #tpu.dot_dimension_numbers<[1], [0], [0], [1], [0, 0, 1, 1], [], []>} : vector<2x32xbf16>, vector<32x128xbf16>, vector<2x128xf32> -> vector<2x128xf32>
    %511 = arith.addf %508, %510 : vector<2x128xf32>
    %512 = vector.extract_strided_slice %511 {offsets = [0, 0], sizes = [2, 96], strides = [1, 1]} : vector<2x128xf32> to vector<2x96xf32>
    %513 = arith.negf %512 : vector<2x96xf32>
    %514 = math.exp %513 : vector<2x96xf32>
    %cst_71 = arith.constant 1.000000e+00 : f32
    %515 = vector.broadcast %cst_71 : f32 to vector<2x96xf32>
    %516 = arith.addf %515, %514 : vector<2x96xf32>
    %517 = arith.divf %515, %516 : vector<2x96xf32>
    %518 = vector.extract_strided_slice %511 {offsets = [0, 96], sizes = [2, 32], strides = [1, 1]} : vector<2x128xf32> to vector<2x32xf32>
    %519 = math.tanh %518 : vector<2x32xf32>
    %520 = vector.extract_strided_slice %517 {offsets = [0, 0], sizes = [2, 32], strides = [1, 1]} : vector<2x96xf32> to vector<2x32xf32>
    %521 = vector.extract_strided_slice %517 {offsets = [0, 32], sizes = [2, 32], strides = [1, 1]} : vector<2x96xf32> to vector<2x32xf32>
    %522 = vector.extract_strided_slice %517 {offsets = [0, 64], sizes = [2, 32], strides = [1, 1]} : vector<2x96xf32> to vector<2x32xf32>
    %523 = arith.mulf %521, %504 : vector<2x32xf32>
    %524 = arith.mulf %520, %519 : vector<2x32xf32>
    %525 = arith.addf %523, %524 : vector<2x32xf32>
    %526 = math.tanh %525 : vector<2x32xf32>
    %527 = arith.mulf %522, %526 : vector<2x32xf32>
    %528 = vector.extract_strided_slice %398 {offsets = [0, 6, 0], sizes = [2, 1, 128], strides = [1, 1, 1]} : vector<2x8x128xf32> to vector<2x1x128xf32>
    %529 = vector.shape_cast %528 : vector<2x1x128xf32> to vector<2x128xf32>
    %530 = arith.truncf %527 : vector<2x32xf32> to vector<2x32xbf16>
    %cst_72 = arith.constant dense<0.000000e+00> : vector<2x128xf32>
    %531 = tpu.matmul %530, %399, %cst_72 {dimension_numbers = #tpu.dot_dimension_numbers<[1], [0], [0], [1], [0, 0, 1, 1], [], []>} : vector<2x32xbf16>, vector<32x128xbf16>, vector<2x128xf32> -> vector<2x128xf32>
    %532 = arith.addf %529, %531 : vector<2x128xf32>
    %533 = vector.extract_strided_slice %532 {offsets = [0, 0], sizes = [2, 96], strides = [1, 1]} : vector<2x128xf32> to vector<2x96xf32>
    %534 = arith.negf %533 : vector<2x96xf32>
    %535 = math.exp %534 : vector<2x96xf32>
    %cst_73 = arith.constant 1.000000e+00 : f32
    %536 = vector.broadcast %cst_73 : f32 to vector<2x96xf32>
    %537 = arith.addf %536, %535 : vector<2x96xf32>
    %538 = arith.divf %536, %537 : vector<2x96xf32>
    %539 = vector.extract_strided_slice %532 {offsets = [0, 96], sizes = [2, 32], strides = [1, 1]} : vector<2x128xf32> to vector<2x32xf32>
    %540 = math.tanh %539 : vector<2x32xf32>
    %541 = vector.extract_strided_slice %538 {offsets = [0, 0], sizes = [2, 32], strides = [1, 1]} : vector<2x96xf32> to vector<2x32xf32>
    %542 = vector.extract_strided_slice %538 {offsets = [0, 32], sizes = [2, 32], strides = [1, 1]} : vector<2x96xf32> to vector<2x32xf32>
    %543 = vector.extract_strided_slice %538 {offsets = [0, 64], sizes = [2, 32], strides = [1, 1]} : vector<2x96xf32> to vector<2x32xf32>
    %544 = arith.mulf %542, %525 : vector<2x32xf32>
    %545 = arith.mulf %541, %540 : vector<2x32xf32>
    %546 = arith.addf %544, %545 : vector<2x32xf32>
    %547 = math.tanh %546 : vector<2x32xf32>
    %548 = arith.mulf %543, %547 : vector<2x32xf32>
    %549 = vector.extract_strided_slice %398 {offsets = [0, 7, 0], sizes = [2, 1, 128], strides = [1, 1, 1]} : vector<2x8x128xf32> to vector<2x1x128xf32>
    %550 = vector.shape_cast %549 : vector<2x1x128xf32> to vector<2x128xf32>
    %551 = arith.truncf %548 : vector<2x32xf32> to vector<2x32xbf16>
    %cst_74 = arith.constant dense<0.000000e+00> : vector<2x128xf32>
    %552 = tpu.matmul %551, %399, %cst_74 {dimension_numbers = #tpu.dot_dimension_numbers<[1], [0], [0], [1], [0, 0, 1, 1], [], []>} : vector<2x32xbf16>, vector<32x128xbf16>, vector<2x128xf32> -> vector<2x128xf32>
    %553 = arith.addf %550, %552 : vector<2x128xf32>
    %554 = vector.extract_strided_slice %553 {offsets = [0, 0], sizes = [2, 96], strides = [1, 1]} : vector<2x128xf32> to vector<2x96xf32>
    %555 = arith.negf %554 : vector<2x96xf32>
    %556 = math.exp %555 : vector<2x96xf32>
    %cst_75 = arith.constant 1.000000e+00 : f32
    %557 = vector.broadcast %cst_75 : f32 to vector<2x96xf32>
    %558 = arith.addf %557, %556 : vector<2x96xf32>
    %559 = arith.divf %557, %558 : vector<2x96xf32>
    %560 = vector.extract_strided_slice %553 {offsets = [0, 96], sizes = [2, 32], strides = [1, 1]} : vector<2x128xf32> to vector<2x32xf32>
    %561 = math.tanh %560 : vector<2x32xf32>
    %562 = vector.extract_strided_slice %559 {offsets = [0, 0], sizes = [2, 32], strides = [1, 1]} : vector<2x96xf32> to vector<2x32xf32>
    %563 = vector.extract_strided_slice %559 {offsets = [0, 32], sizes = [2, 32], strides = [1, 1]} : vector<2x96xf32> to vector<2x32xf32>
    %564 = vector.extract_strided_slice %559 {offsets = [0, 64], sizes = [2, 32], strides = [1, 1]} : vector<2x96xf32> to vector<2x32xf32>
    %565 = arith.mulf %563, %546 : vector<2x32xf32>
    %566 = arith.mulf %562, %561 : vector<2x32xf32>
    %567 = arith.addf %565, %566 : vector<2x32xf32>
    %568 = math.tanh %567 : vector<2x32xf32>
    %569 = arith.mulf %564, %568 : vector<2x32xf32>
    %570 = arith.truncf %569 : vector<2x32xf32> to vector<2x32xbf16>
    %c0_76 = arith.constant 0 : index
    %c0_77 = arith.constant 0 : index
    %571 = vector.load %arg10[%c0_76, %c0_77] : memref<32x16xbf16, #tpu.memory_space<vmem>>, vector<32x16xbf16>
    %cst_78 = arith.constant dense<0.000000e+00> : vector<2x16xf32>
    %572 = tpu.matmul %570, %571, %cst_78 {dimension_numbers = #tpu.dot_dimension_numbers<[1], [0], [0], [1], [0, 0, 1, 1], [], []>} : vector<2x32xbf16>, vector<32x16xbf16>, vector<2x16xf32> -> vector<2x16xf32>
    %c0_79 = arith.constant 0 : index
    %c0_80 = arith.constant 0 : index
    %573 = vector.load %arg11[%c0_79, %c0_80] : memref<1x16xf32, #tpu.memory_space<vmem>>, vector<1x16xf32>
    %574 = vector.broadcast %573 : vector<1x16xf32> to vector<2x16xf32>
    %575 = arith.addf %572, %574 : vector<2x16xf32>
    %c0_81 = arith.constant 0 : index
    %c0_82 = arith.constant 0 : index
    %576 = vector.load %arg12[%c0_81, %c0_82] : memref<2x16xf32, #tpu.memory_space<vmem>>, vector<2x16xf32>
    tpu.vector_store %arg12[%c0_81, %c0_82], %575 {strides = array<i32>} : memref<2x16xf32, #tpu.memory_space<vmem>>, vector<2x16xf32>,
    return
  }
}

</mosaic_0001>

<bundles_post_ra>
// kernel: encoder_forward.1
= control target key start
LH: loop header
LB: loop body
LE: loop exit
PB: predicated region body
PF: predicated region fallthrough
CT: control target
= control target key end

     0   :  { %17 = vsyncpa [#allocation3], 0  ;;  %s6314_s0 = inlined_call_operand.vmem [shape: f32[2,8,4], index: 0, kind: input, shape index: {}]   ;;  %s6315_s1 = inlined_call_operand.vmem [shape: bf16[4,256], index: 1, kind: input, shape index: {}]   ;;  %s6316_s2 = inlined_call_operand.hbm [shape: bf16[64,256], index: 2, kind: input, shape index: {}]   ;;  %s6317_s3 = inlined_call_operand.vmem [shape: f32[1,256], index: 3, kind: input, shape index: {}]   ;;  %s6318_s4 = inlined_call_operand.hbm [shape: bf16[64,256], index: 4, kind: input, shape index: {}]   ;;  %s6319_s5 = inlined_call_operand.hbm [shape: bf16[64,256], index: 5, kind: input, shape index: {}]   ;;  %s6320_s6 = inlined_call_operand.vmem [shape: f32[1,256], index: 6, kind: input, shape index: {}]   ;;  %s6321_s7 = inlined_call_operand.vmem [shape: bf16[64,128], index: 7, kind: input, shape index: {}]   ;;  %s6322_s8 = inlined_call_operand.hbm [shape: bf16[32,128], index: 8, kind: input, shape index: {}]   ;;  %s6323_s9 = inlined_call_operand.vmem [shape: f32[1,128], index: 9, kind: input, shape index: {}]   ;;  %s6324_s10 = inlined_call_operand.vmem [shape: bf16[32,16], index: 10, kind: input, shape index: {}]   ;;  %s6325_s11 = inlined_call_operand.vmem [shape: f32[1,16], index: 11, kind: input, shape index: {}]   ;;  %s6326_s12 = inlined_call_operand.hbm [shape: f32[2,16], index: 12, kind: output, shape index: {}]  }
   0x1   :  { %18 = vsyncpa [#allocation6], 0 }
   0x2   :  { %19 = vsyncpa [#allocation9], 0 }
   0x3   :  { %20 = vsyncpa [#allocation4], 0  ;;  %s44_s23 = sshll.u32 %s6318_s4, 4  ;;  %s5175_s24 = smov [#allocation5]   ;;  %s45_s23 = int_to_ptr.hbm [resolvable:$true] %s44_s23 }
   0x4   :  { %s46_s25 = sshll.u32 %s5175_s24, 4  ;;  %s29_s28 = sshll.u32 %s6316_s2, 4  ;;  %s47_s25 = int_to_ptr.vmem [resolvable:$true] %s46_s25  ;;  %s30_s28 = int_to_ptr.hbm [resolvable:$true] %s29_s28 }
   0x5   :  { %s5176_s29 = smov 128   ;;  %s5177_s30 = smov 8  }
   0x6   :  { %52 = dma.hbm_to_vmem [thread:$0]  %s45_s23, 1024, %s47_s25, [#allocation6], %s5176_s29, %s5176_s29, %s5177_s30  }
   0x7   :  { %s5178_s13 = smov [#allocation2]   ;;  %s57_s17 = sshll.u32 %s6319_s5, 4  ;;  %s58_s17 = int_to_ptr.hbm [resolvable:$true] %s57_s17 }
   0x8   :  { %s31_s14 = sshll.u32 %s5178_s13, 4  ;;  %s74_s19 = sshll.u32 %s6322_s8, 4  ;;  %s32_s14 = int_to_ptr.vmem [resolvable:$true] %s31_s14  ;;  %s75_s19 = int_to_ptr.hbm [resolvable:$true] %s74_s19 }
   0x9   :  { %37 = dma.hbm_to_vmem [thread:$0]  %s30_s28, 1024, %s32_s14, [#allocation3], %s5176_s29, %s5176_s29, %s5177_s30  }
   0xa   :  { %s5179_s20 = smov [#allocation7]   ;;  %s5180_s2 = smov [#allocation8]  }
   0xb   :  { %s59_s21 = sshll.u32 %s5179_s20, 4  ;;  %s76_s22 = sshll.u32 %s5180_s2, 4  ;;  %s60_s21 = int_to_ptr.vmem [resolvable:$true] %s59_s21  ;;  %s77_s22 = int_to_ptr.vmem [resolvable:$true] %s76_s22 }
   0xc   :  { %65 = dma.hbm_to_vmem [thread:$0]  %s58_s17, 1024, %s60_s21, [#allocation6], %s5176_s29, %s5176_s29, %s5177_s30  }
   0xd   :  { %s5181_s23 = smov 64   ;;  %s5182_s24 = smov 4  }
   0xe   :  { %82 = dma.hbm_to_vmem [thread:$0]  %s75_s19, 256, %s77_s22, [#allocation9], %s5181_s23, %s5181_s23, %s5182_s24  }
   0xf   :  { %5167 = dma.done.wait [#allocation3], 1024  }
  0x10   :  { %5168 = vsyncadd [#allocation3], 4294966272 }
  0x11   :  { %5169 = dma.done.wait [#allocation6], 2048  }
  0x12   :  { %5170 = vsyncadd [#allocation6], 4294965248 }
  0x13   :  { %5171 = dma.done.wait [#allocation9], 256  }
  0x14   :  { %5172 = vsyncadd [#allocation9], 4294967040  ;;  %v4496_v0 = vld [vmem:[#allocation2 + $0x34] sm:$0xf]  ;;  %v4243_v1 = vld [vmem:[#allocation2 + $0x38] sm:$0xf0] }
  0x15   :  { %v4494_v2 = vld [vmem:[#allocation2 + $0x24] sm:$0xf]  ;;  %v5265_v3 = vor.u32 %v4496_v0, %v4243_v1  ;;  %v4235_v4 = vld [vmem:[#allocation2 + $0x28] sm:$0xf0]  ;;  %v109_v5 = vld [vmem:[%s6315_s1] sm:$0xf] }
  0x16   :  { %117 = vst [vmem:[#allocation1] ss:$4 sm:$0xff] %v109_v5  ;;  %v5271_v6 = vor.u32 %v4494_v2, %v4235_v4  ;;  %v4241_v7 = vld [vmem:[#allocation2 + $0x30] sm:$0xf]  ;;  %v4492_v8 = vld [vmem:[#allocation2 + $0x14] sm:$0xf] }
  0x17   :  { %226 = vmatpush.bf16.msra.mxu3 %v5265_v3  ;;  %v4227_v9 = vld [vmem:[#allocation2 + $0x18] sm:$0xf0]  ;;  %v4497_v10 = vld [vmem:[#allocation2 + $0x34] sm:$0xf0]  ;;  %v4233_v12 = vld [vmem:[#allocation2 + $0x20] sm:$0xf] }
  0x18   :  { %v5273_v11 = vor.u32 %v4497_v10, %v4241_v7  ;;  %v4495_v13 = vld [vmem:[#allocation2 + $0x24] sm:$0xf0]  ;;  %v106_v14 = vld [vmem:[%s6314_s0] sm:$0xff]  ;;  %vm6327_vm0 = vcmask 1041408   ;;  %v5279_v15 = vor.u32 %v4492_v8, %v4227_v9  ;;  %v107_v16 = vld [vmem:[%s6314_s0 + $0x8] sm:$0xff]  ;;  %vm120_vm1 = vcmask 31744  }
  0x19   :  { %v4490_v17 = vld [vmem:[#allocation2 + $0x4] sm:$0xf]  ;;  %v4219_v18 = vld [vmem:[#allocation2 + $0x8] sm:$0xf0]  ;;  %v5285_v19 = vor.u32 %v4495_v13, %v4233_v12  ;;  %v4225_v20 = vld [vmem:[#allocation2 + $0x10] sm:$0xf]  ;;  %v108_v25 = vpack.c.bf16 %v107_v16, %v106_v14 }
  0x1a   :  { %213 = vmatpush.bf16.msra.mxu2 %v5273_v11  ;;  %v4493_v21 = vld [vmem:[#allocation2 + $0x14] sm:$0xf0]  ;;  %v5290_v27 = vor.u32 %v4490_v17, %v4219_v18  ;;  %v4217_v29 = vld [vmem:[#allocation2] sm:$0xf]  ;;  %v4491_v30 = vld [vmem:[#allocation2 + $0x4] sm:$0xf0] }
  0x1b   :  { %227 = vmatpush.bf16.msra.mxu3 %v5271_v6  ;;  %v5293_v28 = vor.u32 %v4493_v21, %v4225_v20  ;;  %v5299_v31 = vor.u32 %v4491_v30, %v4217_v29  ;;  %v5183_v32 = vmov 0   ;;  %v110_v34 = vld [vmem:[%s6317_s3] sm:$0x3]  ;;  %s5184_s19 = smov 32   ;;  %s5185_s24 = smov [#allocation10]  }
  0x1c   :  { %v113_v36 = vperm.slane %v110_v34, 1  ;;  %v112_v49 = vperm.slane %v110_v34, 0  ;;  %s4199_s5 = sshll.u32 %s5185_s24, 4  ;;  %s4201_s26 = sshll.u32 %s6326_s12, 4  ;;  %s4200_s5 = int_to_ptr.vmem [resolvable:$true] %s4199_s5  ;;  %s4202_s26 = int_to_ptr.hbm [resolvable:$true] %s4201_s26 }
  0x1d   :  { %v119_v22 = vld.sshfl [vmem:[#allocation1 + $0x8] sm:$0xff pattern:$0x73625140]  ;;  %v118_v23 = vld.sshfl [vmem:[#allocation1] sm:$0xff pattern:$0x73625140] }
  0x1e   :  { %v127_v24 = vsel %vm6327_vm0, %v119_v22, 0  ;;  %v125_v26 = vsel %vm6327_vm0, %v118_v23, 0  ;;  %214 = vmatpush.bf16.msra.mxu2 %v5285_v19 }
  0x1f   :  { %150 = vmatpush.bf16.msra.mxu1 %v127_v24  ;;  %228 = vmatpush.bf16.msra.mxu3 %v5279_v15 }
  0x20   :  { %136 = vmatpush.bf16.msra.mxu0 %v125_v26 }
  0x22   :  { %4214 = vmatmul.msk.bf16.vlgmr.msra.gmra.mxu1 %vm120_vm1, %v108_v25  ;;  %215 = vmatpush.bf16.msra.mxu2 %v5293_v28 }
  0x23   :  { %393 = vmatpush.bf16.msrb.mxu1 %v5265_v3  ;;  %229 = vmatpush.bf16.msra.mxu3 %v5290_v27 }
  0x24   :  { %380 = vmatpush.bf16.msrb.mxu0 %v5273_v11 }
  0x25   :  { %4213 = vmatmul.msk.bf16.vlgmr.msra.gmra.mxu0 %vm120_vm1, %v108_v25 }
  0x26   :  { %230 = vmatmul.bf16.vlgmr.msra.gmra.mxu3 %v5183_v32  ;;  %216 = vmatpush.bf16.msra.mxu2 %v5299_v31 }
  0x27   :  { %565 = vmatpush.bf16.msrb.mxu3 %v5265_v3  ;;  %394 = vmatpush.bf16.msrb.mxu1 %v5271_v6 }
  0x28   :  { %381 = vmatpush.bf16.msrb.mxu0 %v5285_v19 }
  0x29   :  { %217 = vmatmul.bf16.vlgmr.msra.gmra.mxu2 %v5183_v32 }
  0x2a   :  { %552 = vmatpush.bf16.msrb.mxu2 %v5273_v11 }
  0x2b   :  { %566 = vmatpush.bf16.msrb.mxu3 %v5271_v6  ;;  %395 = vmatpush.bf16.msrb.mxu1 %v5279_v15 }
  0x2c   :  { %382 = vmatpush.bf16.msrb.mxu0 %v5293_v28 }
  0x2e   :  { %553 = vmatpush.bf16.msrb.mxu2 %v5285_v19 }
  0x2f   :  { %567 = vmatpush.bf16.msrb.mxu3 %v5279_v15  ;;  %396 = vmatpush.bf16.msrb.mxu1 %v5290_v27 }
  0x30   :  { %383 = vmatpush.bf16.msrb.mxu0 %v5299_v31 }
  0x32   :  { %554 = vmatpush.bf16.msrb.mxu2 %v5293_v28 }
  0x33   :  { %740 = vmatpush.bf16.msra.mxu1 %v5265_v3  ;;  %568 = vmatpush.bf16.msrb.mxu3 %v5290_v27 }
  0x34   :  { %727 = vmatpush.bf16.msra.mxu0 %v5273_v11 }
  0x36   :  { %555 = vmatpush.bf16.msrb.mxu2 %v5299_v31 }
  0x37   :  { %915 = vmatpush.bf16.msra.mxu3 %v5265_v3  ;;  %741 = vmatpush.bf16.msra.mxu1 %v5271_v6 }
  0x38   :  { %728 = vmatpush.bf16.msra.mxu0 %v5285_v19 }
  0x3a   :  { %902 = vmatpush.bf16.msra.mxu2 %v5273_v11 }
  0x3b   :  { %916 = vmatpush.bf16.msra.mxu3 %v5271_v6  ;;  %742 = vmatpush.bf16.msra.mxu1 %v5279_v15 }
  0x3c   :  { %729 = vmatpush.bf16.msra.mxu0 %v5293_v28 }
  0x3e   :  { %903 = vmatpush.bf16.msra.mxu2 %v5285_v19 }
  0x3f   :  { %917 = vmatpush.bf16.msra.mxu3 %v5279_v15  ;;  %743 = vmatpush.bf16.msra.mxu1 %v5290_v27 }
  0x40   :  { %730 = vmatpush.bf16.msra.mxu0 %v5299_v31 }
  0x42   :  { %904 = vmatpush.bf16.msra.mxu2 %v5293_v28 }
  0x43   :  { %918 = vmatpush.bf16.msra.mxu3 %v5290_v27 }
  0x46   :  { %905 = vmatpush.bf16.msra.mxu2 %v5299_v31 }
  0x9f   :  { %v152_v33 = vpop.f32.mrf.mxu1 }
  0xa0   :  { %v5343_v42 = vadd.f32 %v152_v33, %v113_v36 }
  0xa2   :  { %v138_v48 = vpop.f32.mrf.mxu0 }
  0xa3   :  { %v5354_v54 = vadd.f32 %v138_v48, %v112_v49 }
  0xa7   :  { %v154_v35 = vpop.f32.mrf.mxu1 }
  0xa8   :  { %v5337_v38 = vadd.f32 %v154_v35, %v113_v36 }
  0xa9   :  { %v231_v37 = vpop.f32.mrf.mxu3 }
  0xaa   :  { %v238_v39 = vrot.slane %v231_v37, 1  ;;  %v5346_v44 = vadd.f32 %v231_v37, %v5343_v42  ;;  %v140_v50 = vpop.f32.mrf.mxu0 }
  0xab   :  { %v5351_v51 = vadd.f32 %v140_v50, %v112_v49 }
  0xac   :  { %v5340_v40 = vadd.f32 %v238_v39, %v5337_v38  ;;  %v218_v41 = vpop.f32.mrf.mxu2 }
  0xad   :  { %v237_v52 = vrot.slane %v218_v41, 1  ;;  %v243_v56 = vadd.f32 %v218_v41, %v5354_v54 }
  0xae   :  { %4535 = vtanh.f32 %v5340_v40  ;;  %v4250_v41 = vmul.f32 -1.442695, %v5340_v40 }
  0xaf   :  { %4537 = vtanh.f32 %v5346_v44  ;;  %v245_v53 = vadd.f32 %v237_v52, %v5351_v51  ;;  %v4247_v57 = vmul.f32 -1.442695, %v243_v56 }
  0xb1   :  { %v233_v43 = vpop.f32.mrf.mxu3  ;;  %v4249_v55 = vmul.f32 -1.442695, %v245_v53 }
  0xb2   :  { %v4248_v43 = vmul.f32 -1.442695, %v5346_v44 }
  0xb3   :  { %4539 = vpow2.f32 %v4249_v55 }
  0xb4   :  { %v4536_v45 = vpop.eup %4535  ;;  %v220_v46 = vpop.f32.mrf.mxu2  ;;  %4541 = vpow2.f32 %v4247_v57 }
  0xb5   :  { %331 = vrot.lane.b32.xlu0 %v4536_v45, %s5181_s23  ;;  %v4538_v47 = vpop.eup %4537 }
  0xb9   :  { %v4540_v58 = vpop.eup %4539 }
  0xba   :  { %v261_v59 = vadd.f32 1.0, %v4540_v58  ;;  %v4542_v60 = vpop.eup %4541 }
  0xbb   :  { %v259_v61 = vadd.f32 1.0, %v4542_v60 }
  0xbc   :  { %4543 = vrcp.f32 %v261_v59  ;;  %vm298_vm2 = vweird.f32 %v261_v59  ;;  %v304_v5 = vand.u32 2147483648, %v261_v59  ;;  %v302_v8 = vand.u32 2147483647, %v261_v59 }
  0xbd   :  { %329 = vrot.lane.b32.xlu0 %v4538_v47, %s5181_s23  ;;  %4545 = vrcp.f32 %v259_v61  ;;  %vm268_vm6 = vweird.f32 %v259_v61  ;;  %v274_v17 = vand.u32 2147483648, %v259_v61  ;;  %v272_v21 = vand.u32 2147483647, %v259_v61 }
  0xbe   :  { %v305_v10 = vor.u32 1.1754944e-38, %v304_v5  ;;  %vm303_vm5 = vcmp.eq.f32.partialorder %v302_v8, 8.507059e+37 }
  0xbf   :  { %v275_v22 = vor.u32 1.1754944e-38, %v274_v17  ;;  %vm273_vm9 = vcmp.eq.f32.partialorder %v272_v21, 8.507059e+37 }
  0xc2   :  { %v4544_v62 = vpop.eup %4543 }
  0xc3   :  { %v294_v63 = vmul.f32 %v4544_v62, %v261_v59  ;;  %v4546_v1 = vpop.eup %4545  ;;  %vm299_vm3 = vweird.f32 %v4544_v62 }
  0xc4   :  { %v264_v4 = vmul.f32 %v4546_v1, %v259_v61  ;;  %vm300_vm4 = vmor %vm298_vm2, %vm299_vm3  ;;  %vm269_vm7 = vweird.f32 %v4546_v1  ;;  %vm370_vm3 = vcmask 1041409  }
  0xc5   :  { %v295_v0 = vsub.f32 1.0, %v294_v63  ;;  %vm270_vm8 = vmor %vm268_vm6, %vm269_vm7 }
  0xc6   :  { %v265_v9 = vsub.f32 1.0, %v264_v4 }
  0xc7   :  { %v296_v2 = vmul.f32 %v4544_v62, %v295_v0 }
  0xc8   :  { %v266_v13 = vmul.f32 %v4546_v1, %v265_v9 }
  0xc9   :  { %v297_v7 = vadd.f32 %v4544_v62, %v296_v2 }
  0xca   :  { %v267_v20 = vadd.f32 %v4546_v1, %v266_v13 }
  0xcb   :  { %v301_v12 = vsel %vm300_vm4, %v4544_v62, %v297_v7  ;;  %vm205_vm4 = vcmask 523264  }
  0xcc   :  { %v306_v16 = vsel %vm303_vm5, %v305_v10, %v301_v12  ;;  %v271_v23 = vsel %vm270_vm8, %v4546_v1, %v267_v20 }
  0xcd   :  { %v276_v25 = vsel %vm273_vm9, %v275_v22, %v271_v23  ;;  %v326_v29 = vmul.f32 0.0, %v306_v16 }
  0xce   :  { %v325_v34 = vmul.f32 0.0, %v276_v25 }
 0x127   :  { %v332_v14 = vpop.permute.xlu0 %331 }
 0x128   :  { %v336_v18 = vmul.f32 %v332_v14, %v306_v16 }
 0x12a   :  { %341 = vrot.lane.b32.xlu1 %v336_v18, %s5181_s23 }
 0x12f   :  { %v330_v24 = vpop.permute.xlu0 %329 }
 0x130   :  { %v335_v26 = vmul.f32 %v330_v24, %v276_v25 }
 0x132   :  { %339 = vrot.lane.b32.xlu1 %v335_v26, %s5181_s23 }
 0x19c   :  { %v342_v30 = vpop.permute.xlu1 %341 }
 0x19d   :  { %v5359_v33 = vadd.f32 %v342_v30, %v326_v29 }
 0x19f   :  { %4547 = vtanh.f32 %v5359_v33 }
 0x1a4   :  { %v340_v35 = vpop.permute.xlu1 %339 }
 0x1a5   :  { %v4548_v36 = vpop.eup %4547  ;;  %v5362_v37 = vadd.f32 %v340_v35, %v325_v34 }
 0x1a6   :  { %353 = vrot.lane.b32.xlu2 %v4548_v36, %s5181_s23 }
 0x1a7   :  { %4549 = vtanh.f32 %v5362_v37 }
 0x1a8   :  { %4551 = vpow2.f32 %v4250_v41 }
 0x1a9   :  { %4553 = vpow2.f32 %v4248_v43 }
 0x1ad   :  { %v4550_v39 = vpop.eup %4549 }
 0x1ae   :  { %351 = vrot.lane.b32.xlu2 %v4550_v39, %s5181_s23  ;;  %v4552_v45 = vpop.eup %4551 }
 0x1af   :  { %v262_v46 = vadd.f32 1.0, %v4552_v45  ;;  %v4554_v47 = vpop.eup %4553 }
 0x1b0   :  { %v260_v48 = vadd.f32 1.0, %v4554_v47 }
 0x1b1   :  { %4555 = vrcp.f32 %v262_v46  ;;  %v319_v40 = vand.u32 2147483648, %v262_v46  ;;  %vm313_vm11 = vweird.f32 %v262_v46  ;;  %v317_v59 = vand.u32 2147483647, %v262_v46 }
 0x1b2   :  { %4557 = vrcp.f32 %v260_v48  ;;  %v289_v2 = vand.u32 2147483648, %v260_v48  ;;  %vm283_vm15 = vweird.f32 %v260_v48  ;;  %v287_v5 = vand.u32 2147483647, %v260_v48 }
 0x1b3   :  { %v320_v61 = vor.u32 1.1754944e-38, %v319_v40  ;;  %vm318_vm13 = vcmp.eq.f32.partialorder %v317_v59, 8.507059e+37 }
 0x1b4   :  { %v290_v8 = vor.u32 1.1754944e-38, %v289_v2  ;;  %vm288_vm2 = vcmp.eq.f32.partialorder %v287_v5, 8.507059e+37 }
 0x1b7   :  { %v4556_v49 = vpop.eup %4555 }
 0x1b8   :  { %v309_v50 = vmul.f32 %v4556_v49, %v262_v46  ;;  %v4558_v53 = vpop.eup %4557  ;;  %vm314_vm10 = vweird.f32 %v4556_v49 }
 0x1b9   :  { %v279_v56 = vmul.f32 %v4558_v53, %v260_v48  ;;  %vm315_vm12 = vmor %vm313_vm11, %vm314_vm10  ;;  %vm284_vm14 = vweird.f32 %v4558_v53 }
 0x1ba   :  { %v310_v52 = vsub.f32 1.0, %v309_v50  ;;  %vm285_vm1 = vmor %vm283_vm15, %vm284_vm14 }
 0x1bb   :  { %v280_v58 = vsub.f32 1.0, %v279_v56 }
 0x1bc   :  { %v311_v55 = vmul.f32 %v4556_v49, %v310_v52 }
 0x1bd   :  { %v281_v60 = vmul.f32 %v4558_v53, %v280_v58 }
 0x1be   :  { %v312_v57 = vadd.f32 %v4556_v49, %v311_v55 }
 0x1bf   :  { %v282_v1 = vadd.f32 %v4558_v53, %v281_v60 }
 0x1c0   :  { %v316_v44 = vsel %vm315_vm12, %v4556_v49, %v312_v57 }
 0x1c1   :  { %v321_v62 = vsel %vm318_vm13, %v320_v61, %v316_v44  ;;  %v286_v7 = vsel %vm285_vm1, %v4558_v53, %v282_v1 }
 0x1c2   :  { %v291_v10 = vsel %vm288_vm2, %v290_v8, %v286_v7 }
 0x200   :  { %v354_v63 = vpop.permute.xlu2 %353 }
 0x201   :  { %v358_v0 = vmul.f32 %v354_v63, %v321_v62 }
 0x203   :  { %v5369_v4 = vpack.c.bf16 %v358_v0, %v358_v0 }
 0x205   :  { %v364_v9 = vunpack.c.l.b16 %v5369_v4 }
 0x207   :  { %v4252_v14 = vunpack.i.l.s16 %v364_v9 }
 0x208   :  { %v352_v12 = vpop.permute.xlu2 %351 }
 0x209   :  { %v357_v13 = vmul.f32 %v352_v12, %v291_v10  ;;  %v369_v18 = vrot.slane %v4252_v14, 7 }
 0x20b   :  { %v5372_v16 = vpack.c.bf16 %v357_v13, %v357_v13 }
 0x20d   :  { %v363_v17 = vunpack.c.l.b16 %v5372_v16 }
 0x20f   :  { %v4251_v20 = vunpack.i.l.s16 %v363_v17  ;;  %v494_v17 = vrot.slane %v5362_v37, 7 }
 0x211   :  { %v371_v21 = vsel %vm370_vm3, %v369_v18, %v4251_v20 }
 0x212   :  { %v372_v22 = vpack.c.b16 %v371_v21, %v371_v21 }
 0x214   :  { %4253 = vmatmul.msk.bf16.vlgmr.msrb.gmra.mxu0 %vm205_vm4, %v372_v22  ;;  %4254 = vmatmul.msk.bf16.vlgmr.msrb.gmra.mxu1 %vm205_vm4, %v372_v22 }
 0x215   :  { %1090 = vmatpush.bf16.msrb.mxu1 %v5265_v3  ;;  %1077 = vmatpush.bf16.msrb.mxu0 %v5273_v11 }
 0x219   :  { %1091 = vmatpush.bf16.msrb.mxu1 %v5271_v6  ;;  %1078 = vmatpush.bf16.msrb.mxu0 %v5285_v19 }
 0x21d   :  { %1092 = vmatpush.bf16.msrb.mxu1 %v5279_v15  ;;  %1079 = vmatpush.bf16.msrb.mxu0 %v5293_v28 }
 0x221   :  { %1093 = vmatpush.bf16.msrb.mxu1 %v5290_v27  ;;  %1080 = vmatpush.bf16.msrb.mxu0 %v5299_v31 }
 0x291   :  { %v385_v23 = vpop.f32.mrf.mxu0  ;;  %v398_v24 = vpop.f32.mrf.mxu1 }
 0x292   :  { %v405_v25 = vrot.slane %v398_v24, 7  ;;  %v5387_v26 = vadd.f32 %v398_v24, %v5337_v38  ;;  %v412_v39 = vadd.f32 %v385_v23, %v5351_v51  ;;  %v404_v41 = vrot.slane %v385_v23, 7 }
 0x293   :  { %v495_v23 = vrot.slane %v5359_v33, 7 }
 0x294   :  { %4559 = vtanh.f32 %v5387_v26  ;;  %v5391_v29 = vadd.f32 %v405_v25, %v5343_v42  ;;  %v4257_v43 = vmul.f32 -1.442695, %v412_v39  ;;  %v410_v45 = vadd.f32 %v404_v41, %v5354_v54 }
 0x295   :  { %v4258_v37 = vmul.f32 -1.442695, %v5387_v26 }
 0x296   :  { %4561 = vtanh.f32 %v5391_v29  ;;  %v4255_v46 = vmul.f32 -1.442695, %v410_v45 }
 0x297   :  { %4563 = vpow2.f32 %v4257_v43 }
 0x298   :  { %4565 = vpow2.f32 %v4255_v46 }
 0x299   :  { %v387_v30 = vpop.f32.mrf.mxu0  ;;  %v400_v34 = vpop.f32.mrf.mxu1 }
 0x29a   :  { %v4560_v35 = vpop.eup %4559 }
 0x29b   :  { %504 = vrot.lane.b32.xlu1 %v4560_v35, %s5181_s23  ;;  %v4256_v35 = vmul.f32 -1.442695, %v5391_v29 }
 0x29c   :  { %v4562_v36 = vpop.eup %4561 }
 0x29d   :  { %502 = vrot.lane.b32.xlu0 %v4562_v36, %s5181_s23  ;;  %v4564_v47 = vpop.eup %4563 }
 0x29e   :  { %v428_v48 = vadd.f32 1.0, %v4564_v47  ;;  %v4566_v49 = vpop.eup %4565 }
 0x29f   :  { %v426_v50 = vadd.f32 1.0, %v4566_v49 }
 0x2a0   :  { %4567 = vrcp.f32 %v428_v48  ;;  %v471_v44 = vand.u32 2147483648, %v428_v48  ;;  %vm465_vm6 = vweird.f32 %v428_v48  ;;  %v469_v61 = vand.u32 2147483647, %v428_v48 }
 0x2a1   :  { %4569 = vrcp.f32 %v426_v50  ;;  %v441_v1 = vand.u32 2147483648, %v426_v50  ;;  %vm435_vm10 = vweird.f32 %v426_v50  ;;  %v439_v7 = vand.u32 2147483647, %v426_v50 }
 0x2a2   :  { %v472_v63 = vor.u32 1.1754944e-38, %v471_v44  ;;  %vm470_vm9 = vcmp.eq.f32.partialorder %v469_v61, 8.507059e+37 }
 0x2a3   :  { %v442_v10 = vor.u32 1.1754944e-38, %v441_v1  ;;  %vm440_vm12 = vcmp.eq.f32.partialorder %v439_v7, 8.507059e+37 }
 0x2a6   :  { %v4568_v52 = vpop.eup %4567 }
 0x2a7   :  { %v461_v53 = vmul.f32 %v4568_v52, %v428_v48  ;;  %v4570_v55 = vpop.eup %4569  ;;  %vm466_vm5 = vweird.f32 %v4568_v52 }
 0x2a8   :  { %v431_v57 = vmul.f32 %v4570_v55, %v426_v50  ;;  %vm467_vm7 = vmor %vm465_vm6, %vm466_vm5  ;;  %vm436_vm8 = vweird.f32 %v4570_v55 }
 0x2a9   :  { %v462_v56 = vsub.f32 1.0, %v461_v53  ;;  %vm437_vm11 = vmor %vm435_vm10, %vm436_vm8 }
 0x2aa   :  { %v432_v40 = vsub.f32 1.0, %v431_v57 }
 0x2ab   :  { %v463_v58 = vmul.f32 %v4568_v52, %v462_v56 }
 0x2ac   :  { %v433_v60 = vmul.f32 %v4570_v55, %v432_v40 }
 0x2ad   :  { %v464_v59 = vadd.f32 %v4568_v52, %v463_v58 }
 0x2ae   :  { %v434_v0 = vadd.f32 %v4570_v55, %v433_v60 }
 0x2af   :  { %v468_v62 = vsel %vm467_vm7, %v4568_v52, %v464_v59 }
 0x2b0   :  { %v473_v5 = vsel %vm470_vm9, %v472_v63, %v468_v62  ;;  %v438_v9 = vsel %vm437_vm11, %v4570_v55, %v434_v0 }
 0x2b1   :  { %v443_v13 = vsel %vm440_vm12, %v442_v10, %v438_v9  ;;  %v499_v24 = vmul.f32 %v495_v23, %v473_v5 }
 0x2b2   :  { %v498_v18 = vmul.f32 %v494_v17, %v443_v13 }
 0x30d   :  { %v505_v2 = vpop.permute.xlu1 %504 }
 0x30e   :  { %v509_v8 = vmul.f32 %v505_v2, %v473_v5 }
 0x30f   :  { %v503_v12 = vpop.permute.xlu0 %502 }
 0x310   :  { %514 = vrot.lane.b32.xlu0 %v509_v8, %s5181_s23  ;;  %v508_v14 = vmul.f32 %v503_v12, %v443_v13 }
 0x312   :  { %512 = vrot.lane.b32.xlu2 %v508_v14, %s5181_s23 }
 0x36c   :  { %v513_v20 = vpop.permute.xlu2 %512 }
 0x36d   :  { %v5401_v21 = vadd.f32 %v513_v20, %v498_v18 }
 0x36f   :  { %4571 = vtanh.f32 %v5401_v21 }
 0x375   :  { %v4572_v22 = vpop.eup %4571 }
 0x376   :  { %524 = vrot.lane.b32.xlu1 %v4572_v22, %s5181_s23 }
 0x382   :  { %v515_v25 = vpop.permute.xlu0 %514 }
 0x383   :  { %v5406_v30 = vadd.f32 %v515_v25, %v499_v24 }
 0x385   :  { %4573 = vtanh.f32 %v5406_v30 }
 0x386   :  { %4575 = vpow2.f32 %v4258_v37 }
 0x387   :  { %4577 = vpow2.f32 %v4256_v35 }
 0x38b   :  { %v4574_v34 = vpop.eup %4573 }
 0x38c   :  { %526 = vrot.lane.b32.xlu2 %v4574_v34, %s5181_s23  ;;  %v4576_v36 = vpop.eup %4575 }
 0x38d   :  { %v429_v39 = vadd.f32 1.0, %v4576_v36  ;;  %v4578_v41 = vpop.eup %4577 }
 0x38e   :  { %v427_v43 = vadd.f32 1.0, %v4578_v41 }
 0x38f   :  { %4579 = vrcp.f32 %v429_v39  ;;  %v486_v53 = vand.u32 2147483648, %v429_v39  ;;  %vm480_vm14 = vweird.f32 %v429_v39  ;;  %v484_v29 = vand.u32 2147483647, %v429_v39 }
 0x390   :  { %4581 = vrcp.f32 %v427_v43  ;;  %v456_v58 = vand.u32 2147483648, %v427_v43  ;;  %vm450_vm5 = vweird.f32 %v427_v43  ;;  %v454_v59 = vand.u32 2147483647, %v427_v43 }
 0x391   :  { %v487_v57 = vor.u32 1.1754944e-38, %v486_v53  ;;  %vm485_vm2 = vcmp.eq.f32.partialorder %v484_v29, 8.507059e+37 }
 0x392   :  { %v457_v62 = vor.u32 1.1754944e-38, %v456_v58  ;;  %vm455_vm7 = vcmp.eq.f32.partialorder %v454_v59, 8.507059e+37 }
 0x395   :  { %v4580_v33 = vpop.eup %4579 }
 0x396   :  { %v476_v45 = vmul.f32 %v4580_v33, %v429_v39  ;;  %v4582_v46 = vpop.eup %4581  ;;  %vm481_vm13 = vweird.f32 %v4580_v33 }
 0x397   :  { %v446_v48 = vmul.f32 %v4582_v46, %v427_v43  ;;  %vm482_vm15 = vmor %vm480_vm14, %vm481_vm13  ;;  %vm451_vm1 = vweird.f32 %v4582_v46 }
 0x398   :  { %v477_v47 = vsub.f32 1.0, %v476_v45  ;;  %vm452_vm6 = vmor %vm450_vm5, %vm451_vm1 }
 0x399   :  { %v447_v50 = vsub.f32 1.0, %v446_v48 }
 0x39a   :  { %v478_v49 = vmul.f32 %v4580_v33, %v477_v47 }
 0x39b   :  { %v448_v26 = vmul.f32 %v4582_v46, %v447_v50 }
 0x39c   :  { %v479_v52 = vadd.f32 %v4580_v33, %v478_v49 }
 0x39d   :  { %v449_v56 = vadd.f32 %v4582_v46, %v448_v26 }
 0x39e   :  { %v483_v55 = vsel %vm482_vm15, %v4580_v33, %v479_v52 }
 0x39f   :  { %v488_v44 = vsel %vm485_vm2, %v487_v57, %v483_v55  ;;  %v453_v61 = vsel %vm452_vm6, %v4582_v46, %v449_v56 }
 0x3a0   :  { %v458_v63 = vsel %vm455_vm7, %v457_v62, %v453_v61 }
 0x3e6   :  { %v527_v40 = vpop.permute.xlu2 %526 }
 0x3e7   :  { %v531_v60 = vmul.f32 %v527_v40, %v488_v44 }
 0x3e8   :  { %v525_v0 = vpop.permute.xlu1 %524 }
 0x3e9   :  { %v5412_v1 = vpack.c.bf16 %v531_v60, %v531_v60  ;;  %v530_v2 = vmul.f32 %v525_v0, %v458_v63 }
 0x3eb   :  { %v5414_v5 = vpack.c.bf16 %v530_v2, %v530_v2  ;;  %v537_v7 = vunpack.c.l.b16 %v5412_v1 }
 0x3ed   :  { %v536_v8 = vunpack.c.l.b16 %v5414_v5  ;;  %v4260_v10 = vunpack.i.l.s16 %v537_v7 }
 0x3ef   :  { %v4259_v9 = vunpack.i.l.s16 %v536_v8 }
 0x3f1   :  { %v542_v12 = vrot.slane %v4259_v9, 1 }
 0x3f3   :  { %v543_v13 = vsel %vm370_vm3, %v4260_v10, %v542_v12 }
 0x3f4   :  { %v544_v14 = vpack.c.b16 %v543_v13, %v543_v13 }
 0x3f6   :  { %4261 = vmatmul.msk.bf16.vlgmr.msrb.gmra.mxu2 %vm205_vm4, %v544_v14  ;;  %4262 = vmatmul.msk.bf16.vlgmr.msrb.gmra.mxu3 %vm205_vm4, %v544_v14  ;;  %v668_v14 = vrot.slane %v5401_v21, 7 }
 0x3f7   :  { %1265 = vmatpush.bf16.msrb.mxu3 %v5265_v3  ;;  %1252 = vmatpush.bf16.msrb.mxu2 %v5273_v11 }
 0x3fb   :  { %1266 = vmatpush.bf16.msrb.mxu3 %v5271_v6  ;;  %1253 = vmatpush.bf16.msrb.mxu2 %v5285_v19 }
 0x3ff   :  { %1267 = vmatpush.bf16.msrb.mxu3 %v5279_v15  ;;  %1254 = vmatpush.bf16.msrb.mxu2 %v5293_v28 }
 0x403   :  { %1268 = vmatpush.bf16.msrb.mxu3 %v5290_v27  ;;  %1255 = vmatpush.bf16.msrb.mxu2 %v5299_v31 }
 0x479   :  { %v557_v17 = vpop.f32.mrf.mxu2  ;;  %v570_v18 = vpop.f32.mrf.mxu3 }
 0x47a   :  { %v577_v20 = vrot.slane %v570_v18, 6  ;;  %v579_v22 = vrot.slane %v570_v18, 7  ;;  %v576_v36 = vrot.slane %v557_v17, 6  ;;  %v578_v39 = vrot.slane %v557_v17, 7 }
 0x47c   :  { %v5430_v23 = vadd.f32 %v577_v20, %v5343_v42  ;;  %v5433_v24 = vadd.f32 %v579_v22, %v5337_v38  ;;  %v584_v41 = vadd.f32 %v576_v36, %v5354_v54  ;;  %v586_v43 = vadd.f32 %v578_v39, %v5351_v51 }
 0x47e   :  { %4583 = vtanh.f32 %v5430_v23  ;;  %v4263_v33 = vmul.f32 -1.442695, %v584_v41  ;;  %v4265_v45 = vmul.f32 -1.442695, %v586_v43  ;;  %v4264_v21 = vmul.f32 -1.442695, %v5430_v23 }
 0x47f   :  { %4585 = vtanh.f32 %v5433_v24  ;;  %v4266_v39 = vmul.f32 -1.442695, %v5433_v24 }
 0x480   :  { %4587 = vpow2.f32 %v4263_v33 }
 0x481   :  { %v559_v25 = vpop.f32.mrf.mxu2  ;;  %v572_v34 = vpop.f32.mrf.mxu3  ;;  %4589 = vpow2.f32 %v4265_v45 }
 0x482   :  { %v669_v25 = vrot.slane %v5406_v30, 7 }
 0x484   :  { %v4584_v37 = vpop.eup %4583 }
 0x485   :  { %v4586_v35 = vpop.eup %4585  ;;  %676 = vrot.lane.b32.xlu0 %v4584_v37, %s5181_s23 }
 0x486   :  { %678 = vrot.lane.b32.xlu1 %v4586_v35, %s5181_s23  ;;  %v4588_v46 = vpop.eup %4587 }
 0x487   :  { %v4590_v47 = vpop.eup %4589  ;;  %v600_v48 = vadd.f32 1.0, %v4588_v46 }
 0x488   :  { %v602_v49 = vadd.f32 1.0, %v4590_v47 }
 0x489   :  { %4591 = vrcp.f32 %v600_v48  ;;  %v615_v59 = vand.u32 2147483648, %v600_v48  ;;  %vm609_vm10 = vweird.f32 %v600_v48  ;;  %v613_v60 = vand.u32 2147483647, %v600_v48 }
 0x48a   :  { %4593 = vrcp.f32 %v602_v49  ;;  %v645_v44 = vand.u32 2147483648, %v602_v49  ;;  %vm639_vm11 = vweird.f32 %v602_v49  ;;  %v643_v61 = vand.u32 2147483647, %v602_v49 }
 0x48b   :  { %v616_v0 = vor.u32 1.1754944e-38, %v615_v59  ;;  %vm614_vm14 = vcmp.eq.f32.partialorder %v613_v60, 8.507059e+37 }
 0x48c   :  { %v646_v2 = vor.u32 1.1754944e-38, %v645_v44  ;;  %vm644_vm15 = vcmp.eq.f32.partialorder %v643_v61, 8.507059e+37 }
 0x48f   :  { %v4592_v50 = vpop.eup %4591 }
 0x490   :  { %v4594_v52 = vpop.eup %4593  ;;  %v605_v26 = vmul.f32 %v4592_v50, %v600_v48  ;;  %vm610_vm8 = vweird.f32 %v4592_v50 }
 0x491   :  { %v635_v53 = vmul.f32 %v4594_v52, %v602_v49  ;;  %vm640_vm9 = vweird.f32 %v4594_v52  ;;  %vm611_vm12 = vmor %vm609_vm10, %vm610_vm8  ;;  %vm1584_vm10 = vsmask.f32 256 }
 0x492   :  { %v606_v29 = vsub.f32 1.0, %v605_v26  ;;  %vm641_vm13 = vmor %vm639_vm11, %vm640_vm9  ;;  %vm1583_vm9 = vcmask 1040384  }
 0x493   :  { %v636_v55 = vsub.f32 1.0, %v635_v53 }
 0x494   :  { %v607_v56 = vmul.f32 %v4592_v50, %v606_v29 }
 0x495   :  { %v637_v57 = vmul.f32 %v4594_v52, %v636_v55 }
 0x496   :  { %v608_v58 = vadd.f32 %v4592_v50, %v607_v56 }
 0x497   :  { %v638_v40 = vadd.f32 %v4594_v52, %v637_v57 }
 0x498   :  { %v612_v62 = vsel %vm611_vm12, %v4592_v50, %v608_v58 }
 0x499   :  { %v642_v63 = vsel %vm641_vm13, %v4594_v52, %v638_v40  ;;  %v617_v8 = vsel %vm614_vm14, %v616_v0, %v612_v62  ;;  %vm5456_vm13 = vmand %vm1583_vm9, %vm1584_vm10 }
 0x49a   :  { %v647_v10 = vsel %vm644_vm15, %v646_v2, %v642_v63  ;;  %v672_v17 = vmul.f32 %v668_v14, %v617_v8 }
 0x49b   :  { %v673_v34 = vmul.f32 %v669_v25, %v647_v10 }
 0x4f7   :  { %v677_v7 = vpop.permute.xlu0 %676 }
 0x4f8   :  { %v679_v9 = vpop.permute.xlu1 %678  ;;  %v682_v12 = vmul.f32 %v677_v7, %v617_v8  ;;  %v1586_v8 = vsel %vm5456_vm13, %v5372_v16, %v5414_v5 }
 0x4f9   :  { %v683_v13 = vmul.f32 %v679_v9, %v647_v10  ;;  %v1587_v10 = vsel %vm5456_vm13, %v5369_v4, %v5412_v1 }
 0x4fa   :  { %686 = vrot.lane.b32.xlu2 %v682_v12, %s5181_s23 }
 0x4fb   :  { %688 = vrot.lane.b32.xlu0 %v683_v13, %s5181_s23 }
 0x554   :  { %v687_v18 = vpop.permute.xlu2 %686 }
 0x555   :  { %v5444_v20 = vadd.f32 %v687_v18, %v672_v17 }
 0x557   :  { %4595 = vtanh.f32 %v5444_v20 }
 0x55d   :  { %v4596_v22 = vpop.eup %4595 }
 0x55e   :  { %698 = vrot.lane.b32.xlu1 %v4596_v22, %s5181_s23 }
 0x56d   :  { %v689_v37 = vpop.permute.xlu0 %688 }
 0x56e   :  { %v5449_v35 = vadd.f32 %v689_v37, %v673_v34 }
 0x570   :  { %4597 = vtanh.f32 %v5449_v35 }
 0x571   :  { %4599 = vpow2.f32 %v4264_v21 }
 0x572   :  { %4601 = vpow2.f32 %v4266_v39 }
 0x576   :  { %v4598_v36 = vpop.eup %4597 }
 0x577   :  { %700 = vrot.lane.b32.xlu2 %v4598_v36, %s5181_s23  ;;  %v4600_v41 = vpop.eup %4599 }
 0x578   :  { %v4602_v43 = vpop.eup %4601  ;;  %v601_v33 = vadd.f32 1.0, %v4600_v41 }
 0x579   :  { %v603_v45 = vadd.f32 1.0, %v4602_v43 }
 0x57a   :  { %4603 = vrcp.f32 %v601_v33  ;;  %v630_v24 = vand.u32 2147483648, %v601_v33  ;;  %vm624_vm5 = vweird.f32 %v601_v33  ;;  %v628_v55 = vand.u32 2147483647, %v601_v33 }
 0x57b   :  { %4605 = vrcp.f32 %v603_v45  ;;  %v660_v29 = vand.u32 2147483648, %v603_v45  ;;  %vm654_vm6 = vweird.f32 %v603_v45  ;;  %v658_v56 = vand.u32 2147483647, %v603_v45 }
 0x57c   :  { %v631_v40 = vor.u32 1.1754944e-38, %v630_v24  ;;  %vm629_vm11 = vcmp.eq.f32.partialorder %v628_v55, 8.507059e+37 }
 0x57d   :  { %v661_v59 = vor.u32 1.1754944e-38, %v660_v29  ;;  %vm659_vm12 = vcmp.eq.f32.partialorder %v658_v56, 8.507059e+37 }
 0x580   :  { %v4604_v30 = vpop.eup %4603 }
 0x581   :  { %v4606_v46 = vpop.eup %4605  ;;  %v620_v47 = vmul.f32 %v4604_v30, %v601_v33  ;;  %vm625_vm1 = vweird.f32 %v4604_v30 }
 0x582   :  { %v650_v48 = vmul.f32 %v4606_v46, %v603_v45  ;;  %vm655_vm2 = vweird.f32 %v4606_v46  ;;  %vm626_vm7 = vmor %vm624_vm5, %vm625_vm1 }
 0x583   :  { %v621_v49 = vsub.f32 1.0, %v620_v47  ;;  %vm656_vm8 = vmor %vm654_vm6, %vm655_vm2 }
 0x584   :  { %v651_v50 = vsub.f32 1.0, %v650_v48 }
 0x585   :  { %v622_v52 = vmul.f32 %v4604_v30, %v621_v49 }
 0x586   :  { %v652_v26 = vmul.f32 %v4606_v46, %v651_v50 }
 0x587   :  { %v623_v53 = vadd.f32 %v4604_v30, %v622_v52 }
 0x588   :  { %v653_v23 = vadd.f32 %v4606_v46, %v652_v26 }
 0x589   :  { %v627_v57 = vsel %vm626_vm7, %v4604_v30, %v623_v53 }
 0x58a   :  { %v657_v58 = vsel %vm656_vm8, %v4606_v46, %v653_v23  ;;  %v632_v44 = vsel %vm629_vm11, %v631_v40, %v627_v57 }
 0x58b   :  { %v662_v61 = vsel %vm659_vm12, %v661_v59, %v657_v58 }
 0x5d0   :  { %v699_v60 = vpop.permute.xlu1 %698 }
 0x5d1   :  { %v701_v62 = vpop.permute.xlu2 %700  ;;  %v704_v63 = vmul.f32 %v699_v60, %v632_v44 }
 0x5d2   :  { %v705_v2 = vmul.f32 %v701_v62, %v662_v61 }
 0x5d3   :  { %v706_v7 = vpack.c.bf16 %v704_v63, %v704_v63 }
 0x5d4   :  { %v707_v9 = vpack.c.bf16 %v705_v2, %v705_v2 }
 0x5d5   :  { %v710_v12 = vunpack.c.l.b16 %v706_v7  ;;  %v5469_v13 = vsel %vm1583_vm9, %v1586_v8, %v706_v7 }
 0x5d6   :  { %v711_v14 = vunpack.c.l.b16 %v707_v9  ;;  %v5472_v17 = vsel %vm1583_vm9, %v1587_v10, %v707_v9  ;;  %v843_v9 = vrot.slane %v5444_v20, 7 }
 0x5d7   :  { %v4267_v18 = vunpack.i.l.s16 %v710_v12 }
 0x5d8   :  { %v4268_v22 = vunpack.i.l.s16 %v711_v14 }
 0x5d9   :  { %v716_v25 = vrot.slane %v4267_v18, 2 }
 0x5da   :  { %v717_v34 = vrot.slane %v4268_v22, 1  ;;  %v844_v22 = vrot.slane %v5449_v35, 7 }
 0x5dc   :  { %v718_v16 = vsel %vm370_vm3, %v717_v34, %v716_v25 }
 0x5dd   :  { %v719_v5 = vpack.c.b16 %v718_v16, %v718_v16 }
 0x5df   :  { %4269 = vmatmul.msk.bf16.vlgmr.msra.gmra.mxu0 %vm205_vm4, %v719_v5  ;;  %4270 = vmatmul.msk.bf16.vlgmr.msra.gmra.mxu1 %vm205_vm4, %v719_v5 }
 0x5e0   :  { %1440 = vmatpush.bf16.msra.mxu1 %v5265_v3  ;;  %1427 = vmatpush.bf16.msra.mxu0 %v5273_v11 }
 0x5e4   :  { %1441 = vmatpush.bf16.msra.mxu1 %v5271_v6  ;;  %1428 = vmatpush.bf16.msra.mxu0 %v5285_v19 }
 0x5e8   :  { %1442 = vmatpush.bf16.msra.mxu1 %v5279_v15  ;;  %1429 = vmatpush.bf16.msra.mxu0 %v5293_v28 }
 0x5ec   :  { %1443 = vmatpush.bf16.msra.mxu1 %v5290_v27  ;;  %1430 = vmatpush.bf16.msra.mxu0 %v5299_v31 }
 0x65c   :  { %v732_v4 = vpop.f32.mrf.mxu0  ;;  %v745_v1 = vpop.f32.mrf.mxu1 }
 0x65d   :  { %v752_v37 = vrot.slane %v745_v1, 5  ;;  %v754_v36 = vrot.slane %v745_v1, 6  ;;  %v751_v28 = vrot.slane %v732_v4, 5  ;;  %v753_v31 = vrot.slane %v732_v4, 6 }
 0x65f   :  { %v5486_v3 = vadd.f32 %v752_v37, %v5343_v42  ;;  %v5489_v11 = vadd.f32 %v754_v36, %v5337_v38  ;;  %v759_v21 = vadd.f32 %v751_v28, %v5354_v54  ;;  %v761_v39 = vadd.f32 %v753_v31, %v5351_v51 }
 0x661   :  { %4607 = vtanh.f32 %v5486_v3  ;;  %v4271_v41 = vmul.f32 -1.442695, %v759_v21  ;;  %v4273_v43 = vmul.f32 -1.442695, %v761_v39  ;;  %v4272_v20 = vmul.f32 -1.442695, %v5486_v3 }
 0x662   :  { %4609 = vtanh.f32 %v5489_v11  ;;  %v4274_v4 = vmul.f32 -1.442695, %v5489_v11 }
 0x663   :  { %4611 = vpow2.f32 %v4271_v41 }
 0x664   :  { %v734_v6 = vpop.f32.mrf.mxu0  ;;  %v747_v15 = vpop.f32.mrf.mxu1  ;;  %4613 = vpow2.f32 %v4273_v43 }
 0x667   :  { %v4608_v19 = vpop.eup %4607 }
 0x668   :  { %v4610_v27 = vpop.eup %4609  ;;  %851 = vrot.lane.b32.xlu0 %v4608_v19, %s5181_s23 }
 0x669   :  { %853 = vrot.lane.b32.xlu1 %v4610_v27, %s5181_s23  ;;  %v4612_v33 = vpop.eup %4611 }
 0x66a   :  { %v4614_v45 = vpop.eup %4613  ;;  %v775_v30 = vadd.f32 1.0, %v4612_v33 }
 0x66b   :  { %v777_v46 = vadd.f32 1.0, %v4614_v45 }
 0x66c   :  { %4615 = vrcp.f32 %v775_v30  ;;  %v790_v55 = vand.u32 2147483648, %v775_v30  ;;  %vm784_vm1 = vweird.f32 %v775_v30  ;;  %v788_v57 = vand.u32 2147483647, %v775_v30 }
 0x66d   :  { %4617 = vrcp.f32 %v777_v46  ;;  %v820_v56 = vand.u32 2147483648, %v777_v46  ;;  %vm814_vm2 = vweird.f32 %v777_v46  ;;  %v818_v58 = vand.u32 2147483647, %v777_v46 }
 0x66e   :  { %v791_v44 = vor.u32 1.1754944e-38, %v790_v55  ;;  %vm789_vm7 = vcmp.eq.f32.partialorder %v788_v57, 8.507059e+37 }
 0x66f   :  { %v821_v60 = vor.u32 1.1754944e-38, %v820_v56  ;;  %vm819_vm8 = vcmp.eq.f32.partialorder %v818_v58, 8.507059e+37 }
 0x672   :  { %v4616_v47 = vpop.eup %4615 }
 0x673   :  { %v4618_v48 = vpop.eup %4617  ;;  %v780_v49 = vmul.f32 %v4616_v47, %v775_v30  ;;  %vm785_vm14 = vweird.f32 %v4616_v47 }
 0x674   :  { %v810_v50 = vmul.f32 %v4618_v48, %v777_v46  ;;  %vm815_vm15 = vweird.f32 %v4618_v48  ;;  %vm786_vm5 = vmor %vm784_vm1, %vm785_vm14 }
 0x675   :  { %v781_v52 = vsub.f32 1.0, %v780_v49  ;;  %vm816_vm6 = vmor %vm814_vm2, %vm815_vm15  ;;  %vm1598_vm2 = vsmask.f32 1280 }
 0x676   :  { %v811_v26 = vsub.f32 1.0, %v810_v50 }
 0x677   :  { %v782_v53 = vmul.f32 %v4616_v47, %v781_v52 }
 0x678   :  { %v812_v23 = vmul.f32 %v4618_v48, %v811_v26 }
 0x679   :  { %v783_v24 = vadd.f32 %v4616_v47, %v782_v53 }
 0x67a   :  { %v813_v29 = vadd.f32 %v4618_v48, %v812_v23 }
 0x67b   :  { %v787_v40 = vsel %vm786_vm5, %v4616_v47, %v783_v24 }
 0x67c   :  { %v817_v59 = vsel %vm816_vm6, %v4618_v48, %v813_v29  ;;  %v792_v62 = vsel %vm789_vm7, %v791_v44, %v787_v40  ;;  %vm5512_vm7 = vmand %vm6327_vm0, %vm1598_vm2 }
 0x67d   :  { %v822_v2 = vsel %vm819_vm8, %v821_v60, %v817_v59  ;;  %v847_v10 = vmul.f32 %v843_v9, %v792_v62 }
 0x67e   :  { %v848_v25 = vmul.f32 %v844_v22, %v822_v2 }
 0x6da   :  { %v852_v61 = vpop.permute.xlu0 %851 }
 0x6db   :  { %v854_v63 = vpop.permute.xlu1 %853  ;;  %v857_v7 = vmul.f32 %v852_v61, %v792_v62 }
 0x6dc   :  { %v858_v8 = vmul.f32 %v854_v63, %v822_v2 }
 0x6dd   :  { %861 = vrot.lane.b32.xlu2 %v857_v7, %s5181_s23 }
 0x6de   :  { %863 = vrot.lane.b32.xlu0 %v858_v8, %s5181_s23 }
 0x737   :  { %v862_v12 = vpop.permute.xlu2 %861 }
 0x738   :  { %v5500_v14 = vadd.f32 %v862_v12, %v847_v10 }
 0x73a   :  { %4619 = vtanh.f32 %v5500_v14 }
 0x740   :  { %v4620_v18 = vpop.eup %4619 }
 0x741   :  { %873 = vrot.lane.b32.xlu1 %v4620_v18, %s5181_s23 }
 0x750   :  { %v864_v34 = vpop.permute.xlu0 %863 }
 0x751   :  { %v5505_v16 = vadd.f32 %v864_v34, %v848_v25 }
 0x753   :  { %4621 = vtanh.f32 %v5505_v16 }
 0x754   :  { %4623 = vpow2.f32 %v4272_v20 }
 0x755   :  { %4625 = vpow2.f32 %v4274_v4 }
 0x759   :  { %v4622_v5 = vpop.eup %4621 }
 0x75a   :  { %875 = vrot.lane.b32.xlu2 %v4622_v5, %s5181_s23  ;;  %v4624_v1 = vpop.eup %4623 }
 0x75b   :  { %v4626_v37 = vpop.eup %4625  ;;  %v776_v36 = vadd.f32 1.0, %v4624_v1 }
 0x75c   :  { %v778_v6 = vadd.f32 1.0, %v4626_v37 }
 0x75d   :  { %4627 = vrcp.f32 %v776_v36  ;;  %v805_v11 = vand.u32 2147483648, %v776_v36  ;;  %vm799_vm12 = vweird.f32 %v776_v36  ;;  %v803_v33 = vand.u32 2147483647, %v776_v36 }
 0x75e   :  { %4629 = vrcp.f32 %v778_v6  ;;  %v835_v43 = vand.u32 2147483648, %v778_v6  ;;  %vm829_vm14 = vweird.f32 %v778_v6  ;;  %v833_v45 = vand.u32 2147483647, %v778_v6 }
 0x75f   :  { %v806_v47 = vor.u32 1.1754944e-38, %v805_v11  ;;  %vm804_vm5 = vcmp.eq.f32.partialorder %v803_v33, 8.507059e+37 }
 0x760   :  { %v836_v48 = vor.u32 1.1754944e-38, %v835_v43  ;;  %vm834_vm6 = vcmp.eq.f32.partialorder %v833_v45, 8.507059e+37 }
 0x763   :  { %v4628_v35 = vpop.eup %4627 }
 0x764   :  { %v4630_v15 = vpop.eup %4629  ;;  %v795_v19 = vmul.f32 %v4628_v35, %v776_v36  ;;  %vm800_vm10 = vweird.f32 %v4628_v35 }
 0x765   :  { %v825_v27 = vmul.f32 %v4630_v15, %v778_v6  ;;  %vm830_vm11 = vweird.f32 %v4630_v15  ;;  %vm801_vm15 = vmor %vm799_vm12, %vm800_vm10 }
 0x766   :  { %v796_v28 = vsub.f32 1.0, %v795_v19  ;;  %vm831_vm1 = vmor %vm829_vm14, %vm830_vm11 }
 0x767   :  { %v826_v31 = vsub.f32 1.0, %v825_v27 }
 0x768   :  { %v797_v21 = vmul.f32 %v4628_v35, %v796_v28 }
 0x769   :  { %v827_v39 = vmul.f32 %v4630_v15, %v826_v31 }
 0x76a   :  { %v798_v41 = vadd.f32 %v4628_v35, %v797_v21 }
 0x76b   :  { %v828_v3 = vadd.f32 %v4630_v15, %v827_v39 }
 0x76c   :  { %v802_v30 = vsel %vm801_vm15, %v4628_v35, %v798_v41 }
 0x76d   :  { %v832_v46 = vsel %vm831_vm1, %v4630_v15, %v828_v3  ;;  %v807_v49 = vsel %vm804_vm5, %v806_v47, %v802_v30 }
 0x76e   :  { %v837_v52 = vsel %vm834_vm6, %v836_v48, %v832_v46 }
 0x7b3   :  { %v874_v50 = vpop.permute.xlu1 %873 }
 0x7b4   :  { %v876_v26 = vpop.permute.xlu2 %875  ;;  %v879_v53 = vmul.f32 %v874_v50, %v807_v49 }
 0x7b5   :  { %v880_v24 = vmul.f32 %v876_v26, %v837_v52 }
 0x7b6   :  { %v5516_v29 = vpack.c.bf16 %v879_v53, %v879_v53 }
 0x7b7   :  { %v5518_v55 = vpack.c.bf16 %v880_v24, %v880_v24 }
 0x7b8   :  { %v885_v56 = vunpack.c.l.b16 %v5516_v29  ;;  %v1600_v57 = vsel %vm5512_vm7, %v5469_v13, %v5516_v29 }
 0x7b9   :  { %v886_v58 = vunpack.c.l.b16 %v5518_v55  ;;  %v1601_v40 = vsel %vm5512_vm7, %v5472_v17, %v5518_v55 }
 0x7ba   :  { %v4275_v59 = vunpack.i.l.s16 %v885_v56 }
 0x7bb   :  { %v4276_v44 = vunpack.i.l.s16 %v886_v58 }
 0x7bc   :  { %v891_v60 = vrot.slane %v4275_v59, 3 }
 0x7bd   :  { %v892_v61 = vrot.slane %v4276_v44, 2  ;;  %v1018_v44 = vrot.slane %v5500_v14, 7 }
 0x7bf   :  { %v893_v62 = vsel %vm370_vm3, %v892_v61, %v891_v60 }
 0x7c0   :  { %v894_v63 = vpack.c.b16 %v893_v62, %v893_v62 }
 0x7c2   :  { %4277 = vmatmul.msk.bf16.vlgmr.msra.gmra.mxu2 %vm205_vm4, %v894_v63  ;;  %4278 = vmatmul.msk.bf16.vlgmr.msra.gmra.mxu3 %vm205_vm4, %v894_v63 }
 0x845   :  { %v907_v2 = vpop.f32.mrf.mxu2  ;;  %v920_v7 = vpop.f32.mrf.mxu3 }
 0x846   :  { %v927_v8 = vrot.slane %v920_v7, 4  ;;  %v929_v9 = vrot.slane %v920_v7, 5  ;;  %v926_v5 = vrot.slane %v907_v2, 4  ;;  %v928_v20 = vrot.slane %v907_v2, 5 }
 0x847   :  { %v1019_v2 = vrot.slane %v5505_v16, 7 }
 0x848   :  { %v5534_v10 = vadd.f32 %v927_v8, %v5343_v42  ;;  %v5537_v12 = vadd.f32 %v929_v9, %v5337_v38  ;;  %v934_v4 = vadd.f32 %v926_v5, %v5354_v54  ;;  %v936_v1 = vadd.f32 %v928_v20, %v5351_v51 }
 0x84a   :  { %4631 = vtanh.f32 %v5534_v10  ;;  %v4279_v37 = vmul.f32 -1.442695, %v934_v4  ;;  %v4281_v36 = vmul.f32 -1.442695, %v936_v1  ;;  %v4280_v14 = vmul.f32 -1.442695, %v5534_v10 }
 0x84b   :  { %4633 = vtanh.f32 %v5537_v12 }
 0x84c   :  { %4635 = vpow2.f32 %v4279_v37 }
 0x84d   :  { %v909_v18 = vpop.f32.mrf.mxu2  ;;  %v922_v22 = vpop.f32.mrf.mxu3  ;;  %4637 = vpow2.f32 %v4281_v36 }
 0x84e   :  { %v4282_v22 = vmul.f32 -1.442695, %v5537_v12 }
 0x850   :  { %v4632_v25 = vpop.eup %4631 }
 0x851   :  { %v4634_v34 = vpop.eup %4633  ;;  %1026 = vrot.lane.b32.xlu0 %v4632_v25, %s5181_s23 }
 0x852   :  { %1028 = vrot.lane.b32.xlu1 %v4634_v34, %s5181_s23  ;;  %v4636_v6 = vpop.eup %4635 }
 0x853   :  { %v4638_v35 = vpop.eup %4637  ;;  %v950_v15 = vadd.f32 1.0, %v4636_v6 }
 0x854   :  { %v952_v19 = vadd.f32 1.0, %v4638_v35 }
 0x855   :  { %4639 = vrcp.f32 %v950_v15  ;;  %v965_v45 = vand.u32 2147483648, %v950_v15  ;;  %vm959_vm11 = vweird.f32 %v950_v15  ;;  %v963_v46 = vand.u32 2147483647, %v950_v15 }
 0x856   :  { %4641 = vrcp.f32 %v952_v19  ;;  %v995_v30 = vand.u32 2147483648, %v952_v19  ;;  %vm989_vm12 = vweird.f32 %v952_v19  ;;  %v993_v47 = vand.u32 2147483647, %v952_v19 }
 0x857   :  { %v966_v50 = vor.u32 1.1754944e-38, %v965_v45  ;;  %vm964_vm1 = vcmp.eq.f32.partialorder %v963_v46, 8.507059e+37 }
 0x858   :  { %v996_v52 = vor.u32 1.1754944e-38, %v995_v30  ;;  %vm994_vm2 = vcmp.eq.f32.partialorder %v993_v47, 8.507059e+37 }
 0x85b   :  { %v4640_v27 = vpop.eup %4639 }
 0x85c   :  { %v4642_v28 = vpop.eup %4641  ;;  %v955_v31 = vmul.f32 %v4640_v27, %v950_v15  ;;  %vm960_vm8 = vweird.f32 %v4640_v27 }
 0x85d   :  { %v985_v21 = vmul.f32 %v4642_v28, %v952_v19  ;;  %vm990_vm10 = vweird.f32 %v4642_v28  ;;  %vm961_vm14 = vmor %vm959_vm11, %vm960_vm8 }
 0x85e   :  { %v956_v39 = vsub.f32 1.0, %v955_v31  ;;  %vm991_vm15 = vmor %vm989_vm12, %vm990_vm10 }
 0x85f   :  { %v986_v41 = vsub.f32 1.0, %v985_v21 }
 0x860   :  { %v957_v3 = vmul.f32 %v4640_v27, %v956_v39 }
 0x861   :  { %v987_v11 = vmul.f32 %v4642_v28, %v986_v41 }
 0x862   :  { %v958_v43 = vadd.f32 %v4640_v27, %v957_v3 }
 0x863   :  { %v988_v33 = vadd.f32 %v4642_v28, %v987_v11 }
 0x864   :  { %v962_v48 = vsel %vm961_vm14, %v4640_v27, %v958_v43 }
 0x865   :  { %v992_v49 = vsel %vm991_vm15, %v4642_v28, %v988_v33  ;;  %v967_v53 = vsel %vm964_vm1, %v966_v50, %v962_v48 }
 0x866   :  { %v997_v56 = vsel %vm994_vm2, %v996_v52, %v992_v49  ;;  %v1022_v60 = vmul.f32 %v1018_v44, %v967_v53 }
 0x867   :  { %v1023_v7 = vmul.f32 %v1019_v2, %v997_v56 }
 0x8c3   :  { %v1027_v26 = vpop.permute.xlu0 %1026 }
 0x8c4   :  { %v1029_v24 = vpop.permute.xlu1 %1028  ;;  %v1032_v58 = vmul.f32 %v1027_v26, %v967_v53 }
 0x8c5   :  { %v1033_v59 = vmul.f32 %v1029_v24, %v997_v56 }
 0x8c6   :  { %1036 = vrot.lane.b32.xlu2 %v1032_v58, %s5181_s23 }
 0x8c7   :  { %1038 = vrot.lane.b32.xlu0 %v1033_v59, %s5181_s23 }
 0x920   :  { %v1037_v61 = vpop.permute.xlu2 %1036 }
 0x921   :  { %v5548_v62 = vadd.f32 %v1037_v61, %v1022_v60 }
 0x923   :  { %4643 = vtanh.f32 %v5548_v62 }
 0x929   :  { %v4644_v63 = vpop.eup %4643 }
 0x92a   :  { %1048 = vrot.lane.b32.xlu1 %v4644_v63, %s5181_s23 }
 0x939   :  { %v1039_v8 = vpop.permute.xlu0 %1038 }
 0x93a   :  { %v5553_v9 = vadd.f32 %v1039_v8, %v1023_v7 }
 0x93c   :  { %4645 = vtanh.f32 %v5553_v9 }
 0x93d   :  { %4647 = vpow2.f32 %v4280_v14 }
 0x93e   :  { %4649 = vpow2.f32 %v4282_v22 }
 0x942   :  { %v4646_v18 = vpop.eup %4645 }
 0x943   :  { %1050 = vrot.lane.b32.xlu2 %v4646_v18, %s5181_s23  ;;  %v4648_v25 = vpop.eup %4647 }
 0x944   :  { %v4650_v34 = vpop.eup %4649  ;;  %v951_v5 = vadd.f32 1.0, %v4648_v25 }
 0x945   :  { %v953_v20 = vadd.f32 1.0, %v4650_v34 }
 0x946   :  { %4651 = vrcp.f32 %v951_v5  ;;  %v980_v12 = vand.u32 2147483648, %v951_v5  ;;  %vm974_vm8 = vweird.f32 %v951_v5  ;;  %v978_v28 = vand.u32 2147483647, %v951_v5 }
 0x947   :  { %4653 = vrcp.f32 %v953_v20  ;;  %v1010_v27 = vand.u32 2147483648, %v953_v20  ;;  %vm1004_vm10 = vweird.f32 %v953_v20  ;;  %v1008_v31 = vand.u32 2147483647, %v953_v20 }
 0x948   :  { %v981_v41 = vor.u32 1.1754944e-38, %v980_v12  ;;  %vm979_vm14 = vcmp.eq.f32.partialorder %v978_v28, 8.507059e+37 }
 0x949   :  { %v1011_v3 = vor.u32 1.1754944e-38, %v1010_v27  ;;  %vm1009_vm15 = vcmp.eq.f32.partialorder %v1008_v31, 8.507059e+37 }
 0x94c   :  { %v4652_v16 = vpop.eup %4651 }
 0x94d   :  { %v4654_v4 = vpop.eup %4653  ;;  %v970_v1 = vmul.f32 %v4652_v16, %v951_v5  ;;  %vm975_vm5 = vweird.f32 %v4652_v16 }
 0x94e   :  { %v1000_v37 = vmul.f32 %v4654_v4, %v953_v20  ;;  %vm1005_vm6 = vweird.f32 %v4654_v4  ;;  %vm976_vm11 = vmor %vm974_vm8, %vm975_vm5 }
 0x94f   :  { %v971_v36 = vsub.f32 1.0, %v970_v1  ;;  %vm1006_vm12 = vmor %vm1004_vm10, %vm1005_vm6 }
 0x950   :  { %v1001_v6 = vsub.f32 1.0, %v1000_v37 }
 0x951   :  { %v972_v35 = vmul.f32 %v4652_v16, %v971_v36 }
 0x952   :  { %v1002_v15 = vmul.f32 %v4654_v4, %v1001_v6 }
 0x953   :  { %v973_v19 = vadd.f32 %v4652_v16, %v972_v35 }
 0x954   :  { %v1003_v10 = vadd.f32 %v4654_v4, %v1002_v15 }
 0x955   :  { %v977_v21 = vsel %vm976_vm11, %v4652_v16, %v973_v19 }
 0x956   :  { %v1007_v39 = vsel %vm1006_vm12, %v4654_v4, %v1003_v10  ;;  %v982_v11 = vsel %vm979_vm14, %v981_v41, %v977_v21 }
 0x957   :  { %v1012_v33 = vsel %vm1009_vm15, %v1011_v3, %v1007_v39 }
 0x99c   :  { %v1049_v43 = vpop.permute.xlu1 %1048 }
 0x99d   :  { %v1051_v45 = vpop.permute.xlu2 %1050  ;;  %v1054_v30 = vmul.f32 %v1049_v43, %v982_v11 }
 0x99e   :  { %v1055_v46 = vmul.f32 %v1051_v45, %v1012_v33 }
 0x99f   :  { %v1056_v47 = vpack.c.bf16 %v1054_v30, %v1054_v30 }
 0x9a0   :  { %v1057_v48 = vpack.c.bf16 %v1055_v46, %v1055_v46 }
 0x9a1   :  { %v1060_v49 = vunpack.c.l.b16 %v1056_v47  ;;  %v5565_v50 = vsel %vm6327_vm0, %v1600_v57, %v1056_v47 }
 0x9a2   :  { %v1061_v52 = vunpack.c.l.b16 %v1057_v48  ;;  %v5573_v26 = vsel %vm6327_vm0, %v1601_v40, %v1057_v48  ;;  %v1193_v48 = vrot.slane %v5548_v62, 7 }
 0x9a3   :  { %v4283_v53 = vunpack.i.l.s16 %v1060_v49 }
 0x9a4   :  { %v4284_v24 = vunpack.i.l.s16 %v1061_v52 }
 0x9a5   :  { %v1066_v56 = vrot.slane %v4283_v53, 4 }
 0x9a6   :  { %v1067_v58 = vrot.slane %v4284_v24, 3 }
 0x9a8   :  { %v1068_v59 = vsel %vm370_vm3, %v1067_v58, %v1066_v56  ;;  %v1194_v56 = vrot.slane %v5553_v9, 7 }
 0x9a9   :  { %v1069_v44 = vpack.c.b16 %v1068_v59, %v1068_v59 }
 0x9ab   :  { %4285 = vmatmul.msk.bf16.vlgmr.msrb.gmra.mxu0 %vm205_vm4, %v1069_v44  ;;  %4286 = vmatmul.msk.bf16.vlgmr.msrb.gmra.mxu1 %vm205_vm4, %v1069_v44 }
 0xa28   :  { %v1082_v13 = vpop.f32.mrf.mxu0  ;;  %v1095_v29 = vpop.f32.mrf.mxu1 }
 0xa29   :  { %v1102_v57 = vrot.slane %v1095_v29, 3  ;;  %v1104_v60 = vrot.slane %v1095_v29, 4  ;;  %v1101_v7 = vrot.slane %v1082_v13, 3  ;;  %v1103_v8 = vrot.slane %v1082_v13, 4 }
 0xa2b   :  { %v5579_v17 = vadd.f32 %v1102_v57, %v5343_v42  ;;  %v5582_v55 = vadd.f32 %v1104_v60, %v5337_v38  ;;  %v1109_v18 = vadd.f32 %v1101_v7, %v5354_v54  ;;  %v1111_v14 = vadd.f32 %v1103_v8, %v5351_v51 }
 0xa2d   :  { %4655 = vtanh.f32 %v5579_v17  ;;  %v4287_v22 = vmul.f32 -1.442695, %v1109_v18  ;;  %v4289_v25 = vmul.f32 -1.442695, %v1111_v14  ;;  %v4288_v62 = vmul.f32 -1.442695, %v5579_v17 }
 0xa2e   :  { %4657 = vtanh.f32 %v5582_v55  ;;  %v4290_v29 = vmul.f32 -1.442695, %v5582_v55 }
 0xa2f   :  { %4659 = vpow2.f32 %v4287_v22 }
 0xa30   :  { %v1084_v40 = vpop.f32.mrf.mxu0  ;;  %v1097_v61 = vpop.f32.mrf.mxu1  ;;  %4661 = vpow2.f32 %v4289_v25 }
 0xa33   :  { %v4656_v63 = vpop.eup %4655 }
 0xa34   :  { %v4658_v2 = vpop.eup %4657  ;;  %1201 = vrot.lane.b32.xlu0 %v4656_v63, %s5181_s23 }
 0xa35   :  { %1203 = vrot.lane.b32.xlu1 %v4658_v2, %s5181_s23  ;;  %v4660_v34 = vpop.eup %4659 }
 0xa36   :  { %v4662_v5 = vpop.eup %4661  ;;  %v1125_v20 = vadd.f32 1.0, %v4660_v34 }
 0xa37   :  { %v1127_v16 = vadd.f32 1.0, %v4662_v5 }
 0xa38   :  { %4663 = vrcp.f32 %v1125_v20  ;;  %v1140_v27 = vand.u32 2147483648, %v1125_v20  ;;  %vm1134_vm5 = vweird.f32 %v1125_v20  ;;  %v1138_v31 = vand.u32 2147483647, %v1125_v20 }
 0xa39   :  { %4665 = vrcp.f32 %v1127_v16  ;;  %v1170_v28 = vand.u32 2147483648, %v1127_v16  ;;  %vm1164_vm6 = vweird.f32 %v1127_v16  ;;  %v1168_v21 = vand.u32 2147483647, %v1127_v16 }
 0xa3a   :  { %v1141_v3 = vor.u32 1.1754944e-38, %v1140_v27  ;;  %vm1139_vm11 = vcmp.eq.f32.partialorder %v1138_v31, 8.507059e+37 }
 0xa3b   :  { %v1171_v11 = vor.u32 1.1754944e-38, %v1170_v28  ;;  %vm1169_vm12 = vcmp.eq.f32.partialorder %v1168_v21, 8.507059e+37 }
 0xa3e   :  { %v4664_v4 = vpop.eup %4663 }
 0xa3f   :  { %v4666_v1 = vpop.eup %4665  ;;  %v1130_v37 = vmul.f32 %v4664_v4, %v1125_v20  ;;  %vm1135_vm1 = vweird.f32 %v4664_v4 }
 0xa40   :  { %v1160_v36 = vmul.f32 %v4666_v1, %v1127_v16  ;;  %vm1165_vm2 = vweird.f32 %v4666_v1  ;;  %vm1136_vm8 = vmor %vm1134_vm5, %vm1135_vm1 }
 0xa41   :  { %v1131_v6 = vsub.f32 1.0, %v1130_v37  ;;  %vm1166_vm10 = vmor %vm1164_vm6, %vm1165_vm2 }
 0xa42   :  { %v1161_v35 = vsub.f32 1.0, %v1160_v36 }
 0xa43   :  { %v1132_v15 = vmul.f32 %v4664_v4, %v1131_v6 }
 0xa44   :  { %v1162_v19 = vmul.f32 %v4666_v1, %v1161_v35 }
 0xa45   :  { %v1133_v10 = vadd.f32 %v4664_v4, %v1132_v15 }
 0xa46   :  { %v1163_v12 = vadd.f32 %v4666_v1, %v1162_v19 }
 0xa47   :  { %v1137_v39 = vsel %vm1136_vm8, %v4664_v4, %v1133_v10  ;;  %vm6328_vm8 = vcmask 1042432  }
 0xa48   :  { %v1167_v41 = vsel %vm1166_vm10, %v4666_v1, %v1163_v12  ;;  %v1142_v33 = vsel %vm1139_vm11, %v1141_v3, %v1137_v39  ;;  %vm1611_vm10 = vsmask.f32 2304 }
 0xa49   :  { %v1172_v30 = vsel %vm1169_vm12, %v1171_v11, %v1167_v41  ;;  %v1197_v49 = vmul.f32 %v1193_v48, %v1142_v33  ;;  %vm5605_vm0 = vmand %vm6328_vm8, %vm1611_vm10 }
 0xa4a   :  { %v1198_v58 = vmul.f32 %v1194_v56, %v1172_v30 }
 0xaa6   :  { %v1202_v43 = vpop.permute.xlu0 %1201 }
 0xaa7   :  { %v1204_v45 = vpop.permute.xlu1 %1203  ;;  %v1207_v46 = vmul.f32 %v1202_v43, %v1142_v33 }
 0xaa8   :  { %v1208_v47 = vmul.f32 %v1204_v45, %v1172_v30 }
 0xaa9   :  { %1211 = vrot.lane.b32.xlu2 %v1207_v46, %s5181_s23 }
 0xaaa   :  { %1213 = vrot.lane.b32.xlu0 %v1208_v47, %s5181_s23 }
 0xb03   :  { %v1212_v52 = vpop.permute.xlu2 %1211 }
 0xb04   :  { %v5593_v53 = vadd.f32 %v1212_v52, %v1197_v49 }
 0xb06   :  { %4667 = vtanh.f32 %v5593_v53 }
 0xb0c   :  { %v4668_v24 = vpop.eup %4667 }
 0xb0d   :  { %1223 = vrot.lane.b32.xlu1 %v4668_v24, %s5181_s23 }
 0xb1c   :  { %v1214_v59 = vpop.permute.xlu0 %1213 }
 0xb1d   :  { %v5598_v44 = vadd.f32 %v1214_v59, %v1198_v58 }
 0xb1f   :  { %4669 = vtanh.f32 %v5598_v44 }
 0xb20   :  { %4671 = vpow2.f32 %v4288_v62 }
 0xb21   :  { %4673 = vpow2.f32 %v4290_v29 }
 0xb25   :  { %v4670_v13 = vpop.eup %4669 }
 0xb26   :  { %1225 = vrot.lane.b32.xlu2 %v4670_v13, %s5181_s23  ;;  %v4672_v57 = vpop.eup %4671 }
 0xb27   :  { %v4674_v60 = vpop.eup %4673  ;;  %v1126_v40 = vadd.f32 1.0, %v4672_v57 }
 0xb28   :  { %v1128_v61 = vadd.f32 1.0, %v4674_v60 }
 0xb29   :  { %4675 = vrcp.f32 %v1126_v40  ;;  %v1155_v55 = vand.u32 2147483648, %v1126_v40  ;;  %vm1149_vm1 = vweird.f32 %v1126_v40  ;;  %v1153_v5 = vand.u32 2147483647, %v1126_v40 }
 0xb2a   :  { %4677 = vrcp.f32 %v1128_v61  ;;  %v1185_v34 = vand.u32 2147483648, %v1128_v61  ;;  %vm1179_vm2 = vweird.f32 %v1128_v61  ;;  %v1183_v20 = vand.u32 2147483647, %v1128_v61 }
 0xb2b   :  { %v1156_v1 = vor.u32 1.1754944e-38, %v1155_v55  ;;  %vm1154_vm11 = vcmp.eq.f32.partialorder %v1153_v5, 8.507059e+37 }
 0xb2c   :  { %v1186_v37 = vor.u32 1.1754944e-38, %v1185_v34  ;;  %vm1184_vm12 = vcmp.eq.f32.partialorder %v1183_v20, 8.507059e+37 }
 0xb2f   :  { %v4676_v9 = vpop.eup %4675 }
 0xb30   :  { %v4678_v63 = vpop.eup %4677  ;;  %v1145_v2 = vmul.f32 %v4676_v9, %v1126_v40  ;;  %vm1150_vm14 = vweird.f32 %v4676_v9 }
 0xb31   :  { %v1175_v7 = vmul.f32 %v4678_v63, %v1128_v61  ;;  %vm1180_vm15 = vweird.f32 %v4678_v63  ;;  %vm1151_vm5 = vmor %vm1149_vm1, %vm1150_vm14 }
 0xb32   :  { %v1146_v8 = vsub.f32 1.0, %v1145_v2  ;;  %vm1181_vm6 = vmor %vm1179_vm2, %vm1180_vm15 }
 0xb33   :  { %v1176_v18 = vsub.f32 1.0, %v1175_v7 }
 0xb34   :  { %v1147_v14 = vmul.f32 %v4676_v9, %v1146_v8 }
 0xb35   :  { %v1177_v22 = vmul.f32 %v4678_v63, %v1176_v18 }
 0xb36   :  { %v1148_v25 = vadd.f32 %v4676_v9, %v1147_v14 }
 0xb37   :  { %v1178_v17 = vadd.f32 %v4678_v63, %v1177_v22 }
 0xb38   :  { %v1152_v16 = vsel %vm1151_vm5, %v4676_v9, %v1148_v25 }
 0xb39   :  { %v1182_v4 = vsel %vm1181_vm6, %v4678_v63, %v1178_v17  ;;  %v1157_v36 = vsel %vm1154_vm11, %v1156_v1, %v1152_v16 }
 0xb3a   :  { %v1187_v35 = vsel %vm1184_vm12, %v1186_v37, %v1182_v4 }
 0xb7f   :  { %v1224_v6 = vpop.permute.xlu1 %1223 }
 0xb80   :  { %v1226_v15 = vpop.permute.xlu2 %1225  ;;  %v1229_v19 = vmul.f32 %v1224_v6, %v1157_v36 }
 0xb81   :  { %v1230_v12 = vmul.f32 %v1226_v15, %v1187_v35 }
 0xb82   :  { %v5609_v27 = vpack.c.bf16 %v1229_v19, %v1229_v19 }
 0xb83   :  { %v5611_v28 = vpack.c.bf16 %v1230_v12, %v1230_v12 }
 0xb84   :  { %v1235_v31 = vunpack.c.l.b16 %v5609_v27  ;;  %v1613_v21 = vsel %vm5605_vm0, %v5565_v50, %v5609_v27 }
 0xb85   :  { %v1236_v39 = vunpack.c.l.b16 %v5611_v28  ;;  %v1614_v41 = vsel %vm5605_vm0, %v5573_v26, %v5611_v28 }
 0xb86   :  { %v4291_v3 = vunpack.i.l.s16 %v1235_v31 }
 0xb87   :  { %v4292_v11 = vunpack.i.l.s16 %v1236_v39 }
 0xb88   :  { %v1241_v43 = vrot.slane %v4291_v3, 5 }
 0xb89   :  { %v1242_v33 = vrot.slane %v4292_v11, 4 }
 0xb8b   :  { %v1243_v45 = vsel %vm370_vm3, %v1242_v33, %v1241_v43  ;;  %v1368_v43 = vrot.slane %v5593_v53, 7 }
 0xb8c   :  { %v1244_v30 = vpack.c.b16 %v1243_v45, %v1243_v45 }
 0xb8e   :  { %4293 = vmatmul.msk.bf16.vlgmr.msrb.gmra.mxu2 %vm205_vm4, %v1244_v30  ;;  %4294 = vmatmul.msk.bf16.vlgmr.msrb.gmra.mxu3 %vm205_vm4, %v1244_v30 }
 0xc11   :  { %v1257_v46 = vpop.f32.mrf.mxu2  ;;  %v1270_v47 = vpop.f32.mrf.mxu3 }
 0xc12   :  { %v1277_v48 = vrot.slane %v1270_v47, 2  ;;  %v1279_v49 = vrot.slane %v1270_v47, 3  ;;  %v1276_v62 = vrot.slane %v1257_v46, 2  ;;  %v1278_v29 = vrot.slane %v1257_v46, 3 }
 0xc13   :  { %v1369_v47 = vrot.slane %v5598_v44, 7 }
 0xc14   :  { %v5627_v52 = vadd.f32 %v1277_v48, %v5343_v42  ;;  %v5630_v24 = vadd.f32 %v1279_v49, %v5337_v38  ;;  %v1284_v57 = vadd.f32 %v1276_v62, %v5354_v54  ;;  %v1286_v60 = vadd.f32 %v1278_v29, %v5351_v51 }
 0xc16   :  { %4679 = vtanh.f32 %v5627_v52  ;;  %v4295_v40 = vmul.f32 -1.442695, %v1284_v57  ;;  %v4297_v61 = vmul.f32 -1.442695, %v1286_v60  ;;  %v4296_v53 = vmul.f32 -1.442695, %v5627_v52 }
 0xc17   :  { %4681 = vtanh.f32 %v5630_v24 }
 0xc18   :  { %4683 = vpow2.f32 %v4295_v40 }
 0xc19   :  { %v1259_v56 = vpop.f32.mrf.mxu2  ;;  %v1272_v58 = vpop.f32.mrf.mxu3  ;;  %4685 = vpow2.f32 %v4297_v61 }
 0xc1c   :  { %v4680_v59 = vpop.eup %4679 }
 0xc1d   :  { %v4682_v13 = vpop.eup %4681  ;;  %1376 = vrot.lane.b32.xlu0 %v4680_v59, %s5181_s23  ;;  %v4298_v59 = vmul.f32 -1.442695, %v5630_v24 }
 0xc1e   :  { %1378 = vrot.lane.b32.xlu1 %v4682_v13, %s5181_s23  ;;  %v4684_v9 = vpop.eup %4683 }
 0xc1f   :  { %v4686_v63 = vpop.eup %4685  ;;  %v1300_v2 = vadd.f32 1.0, %v4684_v9 }
 0xc20   :  { %v1302_v7 = vadd.f32 1.0, %v4686_v63 }
 0xc21   :  { %4687 = vrcp.f32 %v1300_v2  ;;  %v1315_v16 = vand.u32 2147483648, %v1300_v2  ;;  %vm1309_vm1 = vweird.f32 %v1300_v2  ;;  %v1313_v1 = vand.u32 2147483647, %v1300_v2 }
 0xc22   :  { %4689 = vrcp.f32 %v1302_v7  ;;  %v1345_v4 = vand.u32 2147483648, %v1302_v7  ;;  %vm1339_vm2 = vweird.f32 %v1302_v7  ;;  %v1343_v37 = vand.u32 2147483647, %v1302_v7 }
 0xc23   :  { %v1316_v35 = vor.u32 1.1754944e-38, %v1315_v16  ;;  %vm1314_vm10 = vcmp.eq.f32.partialorder %v1313_v1, 8.507059e+37 }
 0xc24   :  { %v1346_v15 = vor.u32 1.1754944e-38, %v1345_v4  ;;  %vm1344_vm11 = vcmp.eq.f32.partialorder %v1343_v37, 8.507059e+37 }
 0xc27   :  { %v4688_v8 = vpop.eup %4687 }
 0xc28   :  { %v4690_v18 = vpop.eup %4689  ;;  %v1305_v14 = vmul.f32 %v4688_v8, %v1300_v2  ;;  %vm1310_vm14 = vweird.f32 %v4688_v8 }
 0xc29   :  { %v1335_v22 = vmul.f32 %v4690_v18, %v1302_v7  ;;  %vm1340_vm15 = vweird.f32 %v4690_v18  ;;  %vm1311_vm5 = vmor %vm1309_vm1, %vm1310_vm14 }
 0xc2a   :  { %v1306_v25 = vsub.f32 1.0, %v1305_v14  ;;  %vm1341_vm6 = vmor %vm1339_vm2, %vm1340_vm15 }
 0xc2b   :  { %v1336_v17 = vsub.f32 1.0, %v1335_v22 }
 0xc2c   :  { %v1307_v55 = vmul.f32 %v4688_v8, %v1306_v25 }
 0xc2d   :  { %v1337_v34 = vmul.f32 %v4690_v18, %v1336_v17 }
 0xc2e   :  { %v1308_v5 = vadd.f32 %v4688_v8, %v1307_v55 }
 0xc2f   :  { %v1338_v20 = vadd.f32 %v4690_v18, %v1337_v34 }
 0xc30   :  { %v1312_v36 = vsel %vm1311_vm5, %v4688_v8, %v1308_v5 }
 0xc31   :  { %v1342_v6 = vsel %vm1341_vm6, %v4690_v18, %v1338_v20  ;;  %v1317_v12 = vsel %vm1314_vm10, %v1316_v35, %v1312_v36 }
 0xc32   :  { %v1347_v39 = vsel %vm1344_vm11, %v1346_v15, %v1342_v6  ;;  %v1372_v33 = vmul.f32 %v1368_v43, %v1317_v12 }
 0xc33   :  { %v1373_v48 = vmul.f32 %v1369_v47, %v1347_v39 }
 0xc8f   :  { %v1377_v19 = vpop.permute.xlu0 %1376 }
 0xc90   :  { %v1379_v31 = vpop.permute.xlu1 %1378  ;;  %v1382_v3 = vmul.f32 %v1377_v19, %v1317_v12 }
 0xc91   :  { %v1383_v11 = vmul.f32 %v1379_v31, %v1347_v39 }
 0xc92   :  { %1386 = vrot.lane.b32.xlu2 %v1382_v3, %s5181_s23 }
 0xc93   :  { %1388 = vrot.lane.b32.xlu0 %v1383_v11, %s5181_s23 }
 0xcec   :  { %v1387_v45 = vpop.permute.xlu2 %1386 }
 0xced   :  { %v5641_v30 = vadd.f32 %v1387_v45, %v1372_v33 }
 0xcef   :  { %4691 = vtanh.f32 %v5641_v30 }
 0xcf5   :  { %v4692_v46 = vpop.eup %4691 }
 0xcf6   :  { %1398 = vrot.lane.b32.xlu1 %v4692_v46, %s5181_s23 }
 0xd05   :  { %v1389_v49 = vpop.permute.xlu0 %1388 }
 0xd06   :  { %v5646_v56 = vadd.f32 %v1389_v49, %v1373_v48 }
 0xd08   :  { %4693 = vtanh.f32 %v5646_v56 }
 0xd09   :  { %4695 = vpow2.f32 %v4296_v53 }
 0xd0a   :  { %4697 = vpow2.f32 %v4298_v59 }
 0xd0e   :  { %v4694_v58 = vpop.eup %4693 }
 0xd0f   :  { %1400 = vrot.lane.b32.xlu2 %v4694_v58, %s5181_s23  ;;  %v4696_v13 = vpop.eup %4695 }
 0xd10   :  { %v4698_v62 = vpop.eup %4697  ;;  %v1301_v29 = vadd.f32 1.0, %v4696_v13 }
 0xd11   :  { %v1303_v57 = vadd.f32 1.0, %v4698_v62 }
 0xd12   :  { %4699 = vrcp.f32 %v1301_v29  ;;  %v1330_v24 = vand.u32 2147483648, %v1301_v29  ;;  %vm1324_vm15 = vweird.f32 %v1301_v29  ;;  %v1328_v14 = vand.u32 2147483647, %v1301_v29 }
 0xd13   :  { %4701 = vrcp.f32 %v1303_v57  ;;  %v1360_v18 = vand.u32 2147483648, %v1303_v57  ;;  %vm1354_vm1 = vweird.f32 %v1303_v57  ;;  %v1358_v22 = vand.u32 2147483647, %v1303_v57 }
 0xd14   :  { %v1331_v55 = vor.u32 1.1754944e-38, %v1330_v24  ;;  %vm1329_vm6 = vcmp.eq.f32.partialorder %v1328_v14, 8.507059e+37 }
 0xd15   :  { %v1361_v34 = vor.u32 1.1754944e-38, %v1360_v18  ;;  %vm1359_vm10 = vcmp.eq.f32.partialorder %v1358_v22, 8.507059e+37 }
 0xd18   :  { %v4700_v44 = vpop.eup %4699 }
 0xd19   :  { %v4702_v60 = vpop.eup %4701  ;;  %v1320_v40 = vmul.f32 %v4700_v44, %v1301_v29  ;;  %vm1325_vm12 = vweird.f32 %v4700_v44 }
 0xd1a   :  { %v1350_v61 = vmul.f32 %v4702_v60, %v1303_v57  ;;  %vm1355_vm14 = vweird.f32 %v4702_v60  ;;  %vm1326_vm2 = vmor %vm1324_vm15, %vm1325_vm12 }
 0xd1b   :  { %v1321_v9 = vsub.f32 1.0, %v1320_v40  ;;  %vm1356_vm5 = vmor %vm1354_vm1, %vm1355_vm14 }
 0xd1c   :  { %v1351_v63 = vsub.f32 1.0, %v1350_v61 }
 0xd1d   :  { %v1322_v2 = vmul.f32 %v4700_v44, %v1321_v9 }
 0xd1e   :  { %v1352_v7 = vmul.f32 %v4702_v60, %v1351_v63 }
 0xd1f   :  { %v1323_v8 = vadd.f32 %v4700_v44, %v1322_v2 }
 0xd20   :  { %v1353_v52 = vadd.f32 %v4702_v60, %v1352_v7 }
 0xd21   :  { %v1327_v25 = vsel %vm1326_vm2, %v4700_v44, %v1323_v8 }
 0xd22   :  { %v1357_v17 = vsel %vm1356_vm5, %v4702_v60, %v1353_v52  ;;  %v1332_v5 = vsel %vm1329_vm6, %v1331_v55, %v1327_v25 }
 0xd23   :  { %v1362_v16 = vsel %vm1359_vm10, %v1361_v34, %v1357_v17 }
 0xd68   :  { %v1399_v20 = vpop.permute.xlu1 %1398 }
 0xd69   :  { %v1401_v4 = vpop.permute.xlu2 %1400  ;;  %v1404_v1 = vmul.f32 %v1399_v20, %v1332_v5 }
 0xd6a   :  { %v1405_v37 = vmul.f32 %v1401_v4, %v1362_v16 }
 0xd6b   :  { %v1406_v36 = vpack.c.bf16 %v1404_v1, %v1404_v1  ;;  %v1543_v1 = vrot.slane %v5641_v30, 7  ;;  %v1544_v30 = vrot.slane %v5646_v56, 7  ;;  %v4512_v56 = vld [vmem:[#allocation7 + $0x34] sm:$0xf] }
 0xd6c   :  { %v1407_v6 = vpack.c.bf16 %v1405_v37, %v1405_v37 }
 0xd6d   :  { %v1410_v35 = vunpack.c.l.b16 %v1406_v36  ;;  %v5658_v15 = vsel %vm6328_vm8, %v1613_v21, %v1406_v36 }
 0xd6e   :  { %v1411_v19 = vunpack.c.l.b16 %v1407_v6  ;;  %v5666_v12 = vsel %vm6328_vm8, %v1614_v41, %v1407_v6 }
 0xd6f   :  { %v4299_v31 = vunpack.i.l.s16 %v1410_v35  ;;  %v4504_v35 = vld [vmem:[#allocation5 + $0x34] sm:$0xf] }
 0xd70   :  { %v4300_v39 = vunpack.i.l.s16 %v1411_v19  ;;  %v4335_v19 = vld [vmem:[#allocation5 + $0x38] sm:$0xf0] }
 0xd71   :  { %v1416_v3 = vrot.slane %v4299_v31, 6  ;;  %v4333_v31 = vld [vmem:[#allocation5 + $0x30] sm:$0xf] }
 0xd72   :  { %v1417_v11 = vrot.slane %v4300_v39, 5  ;;  %v4338_v39 = vor.u32 %v4504_v35, %v4335_v19 }
 0xd74   :  { %v1418_v43 = vsel %vm370_vm3, %v1417_v11, %v1416_v3  ;;  %v4505_v3 = vld [vmem:[#allocation5 + $0x34] sm:$0xf0]  ;;  %v4502_v11 = vld [vmem:[#allocation5 + $0x24] sm:$0xf]  ;;  %1709 = vmatpush.bf16.msra.mxu3 %v4338_v39  ;;  %v4343_v39 = vld [vmem:[#allocation7] sm:$0xf] }
 0xd75   :  { %v1419_v33 = vpack.c.b16 %v1418_v43, %v1418_v43  ;;  %v4327_v43 = vld [vmem:[#allocation5 + $0x28] sm:$0xf0] }
 0xd77   :  { %4301 = vmatmul.msk.bf16.vlgmr.msra.gmra.mxu0 %vm205_vm4, %v1419_v33  ;;  %4302 = vmatmul.msk.bf16.vlgmr.msra.gmra.mxu1 %vm205_vm4, %v1419_v33  ;;  %v4334_v33 = vor.u32 %v4505_v3, %v4333_v31  ;;  %v4507_v3 = vld [vmem:[#allocation7 + $0x4] sm:$0xf0] }
 0xd79   :  { %1695 = vmatpush.bf16.msra.mxu2 %v4334_v33 }
 0xdf4   :  { %v1432_v50 = vpop.f32.mrf.mxu0  ;;  %v1445_v27 = vpop.f32.mrf.mxu1 }
 0xdf5   :  { %v1452_v21 = vrot.slane %v1445_v27, 1  ;;  %v1454_v45 = vrot.slane %v1445_v27, 2  ;;  %v1451_v49 = vrot.slane %v1432_v50, 1  ;;  %v1453_v58 = vrot.slane %v1432_v50, 2  ;;  %v4325_v50 = vld [vmem:[#allocation5 + $0x20] sm:$0xf] }
 0xdf6   :  { %v4503_v27 = vld [vmem:[#allocation5 + $0x24] sm:$0xf0] }
 0xdf7   :  { %v5672_v26 = vadd.f32 %v1452_v21, %v5343_v42  ;;  %v5675_v28 = vadd.f32 %v1454_v45, %v5337_v38  ;;  %v1459_v42 = vadd.f32 %v1451_v49, %v5354_v54  ;;  %v1461_v53 = vadd.f32 %v1453_v58, %v5351_v51 }
 0xdf8   :  { %v4330_v21 = vor.u32 %v4502_v11, %v4327_v43  ;;  %v4326_v45 = vor.u32 %v4503_v27, %v4325_v50  ;;  %v5727_v43 = vor.u32 %v4507_v3, %v4343_v39 }
 0xdf9   :  { %4703 = vtanh.f32 %v5672_v26  ;;  %v4303_v38 = vmul.f32 -1.442695, %v1459_v42  ;;  %v4305_v59 = vmul.f32 -1.442695, %v1461_v53  ;;  %v4304_v58 = vmul.f32 -1.442695, %v5672_v26 }
 0xdfa   :  { %4705 = vtanh.f32 %v5675_v28  ;;  %1710 = vmatpush.bf16.msra.mxu3 %v4330_v21  ;;  %1696 = vmatpush.bf16.msra.mxu2 %v4326_v45  ;;  %v4306_v42 = vmul.f32 -1.442695, %v5675_v28  ;;  %v4319_v26 = vld [vmem:[#allocation5 + $0x18] sm:$0xf0] }
 0xdfb   :  { %4707 = vpow2.f32 %v4303_v38 }
 0xdfc   :  { %v1434_v41 = vpop.f32.mrf.mxu0  ;;  %v1447_v46 = vpop.f32.mrf.mxu1  ;;  %4709 = vpow2.f32 %v4305_v59 }
 0xdff   :  { %v4704_v47 = vpop.eup %4703 }
 0xe00   :  { %v4706_v48 = vpop.eup %4705  ;;  %1551 = vrot.lane.b32.xlu0 %v4704_v47, %s5181_s23 }
 0xe01   :  { %1553 = vrot.lane.b32.xlu1 %v4706_v48, %s5181_s23  ;;  %v4708_v13 = vpop.eup %4707 }
 0xe02   :  { %v4710_v62 = vpop.eup %4709  ;;  %v1475_v29 = vadd.f32 1.0, %v4708_v13 }
 0xe03   :  { %v1477_v57 = vadd.f32 1.0, %v4710_v62  ;;  %v4369_v62 = vld [vmem:[#allocation7 + $0x38] sm:$0xf0] }
 0xe04   :  { %4711 = vrcp.f32 %v1475_v29  ;;  %v1490_v8 = vand.u32 2147483648, %v1475_v29  ;;  %vm1484_vm14 = vweird.f32 %v1475_v29  ;;  %v1488_v24 = vand.u32 2147483647, %v1475_v29 }
 0xe05   :  { %4713 = vrcp.f32 %v1477_v57  ;;  %v1520_v52 = vand.u32 2147483648, %v1477_v57  ;;  %vm1514_vm15 = vweird.f32 %v1477_v57  ;;  %v1518_v18 = vand.u32 2147483647, %v1477_v57 }
 0xe06   :  { %v1491_v25 = vor.u32 1.1754944e-38, %v1490_v8  ;;  %vm1489_vm5 = vcmp.eq.f32.partialorder %v1488_v24, 8.507059e+37  ;;  %v4311_v8 = vld [vmem:[#allocation5 + $0x8] sm:$0xf0] }
 0xe07   :  { %v1521_v17 = vor.u32 1.1754944e-38, %v1520_v52  ;;  %vm1519_vm6 = vcmp.eq.f32.partialorder %v1518_v18, 8.507059e+37  ;;  %v4309_v52 = vld [vmem:[#allocation5] sm:$0xf] }
 0xe0a   :  { %v4712_v44 = vpop.eup %4711 }
 0xe0b   :  { %v4714_v60 = vpop.eup %4713  ;;  %v1480_v40 = vmul.f32 %v4712_v44, %v1475_v29  ;;  %vm1485_vm11 = vweird.f32 %v4712_v44  ;;  %v5696_v29 = vor.u32 %v4512_v56, %v4369_v62 }
 0xe0c   :  { %v1510_v61 = vmul.f32 %v4714_v60, %v1477_v57  ;;  %vm1515_vm12 = vweird.f32 %v4714_v60  ;;  %vm1486_vm1 = vmor %vm1484_vm14, %vm1485_vm11  ;;  %v4500_v57 = vld [vmem:[#allocation5 + $0x14] sm:$0xf] }
 0xe0d   :  { %v1481_v9 = vsub.f32 1.0, %v1480_v40  ;;  %vm1516_vm2 = vmor %vm1514_vm15, %vm1515_vm12  ;;  %1784 = vmatpush.bf16.msrb.mxu1 %v5696_v29  ;;  %v4322_v28 = vor.u32 %v4500_v57, %v4319_v26  ;;  %v4367_v40 = vld [vmem:[#allocation7 + $0x30] sm:$0xf] }
 0xe0e   :  { %v1511_v63 = vsub.f32 1.0, %v1510_v61  ;;  %v4513_v61 = vld [vmem:[#allocation7 + $0x34] sm:$0xf0] }
 0xe0f   :  { %v1482_v2 = vmul.f32 %v4712_v44, %v1481_v9  ;;  %1711 = vmatpush.bf16.msra.mxu3 %v4322_v28 }
 0xe10   :  { %v1512_v54 = vmul.f32 %v4714_v60, %v1511_v63  ;;  %v5700_v63 = vor.u32 %v4513_v61, %v4367_v40 }
 0xe11   :  { %v1483_v7 = vadd.f32 %v4712_v44, %v1482_v2  ;;  %v4510_v2 = vld [vmem:[#allocation7 + $0x24] sm:$0xf] }
 0xe12   :  { %v1513_v51 = vadd.f32 %v4714_v60, %v1512_v54  ;;  %v4361_v54 = vld [vmem:[#allocation7 + $0x28] sm:$0xf0]  ;;  %1771 = vmatpush.bf16.msrb.mxu0 %v5700_v63 }
 0xe13   :  { %v1487_v14 = vsel %vm1486_vm1, %v4712_v44, %v1483_v7  ;;  %v4317_v44 = vld [vmem:[#allocation5 + $0x10] sm:$0xf]  ;;  %v5702_v7 = vor.u32 %v4510_v2, %v4361_v54 }
 0xe14   :  { %v1517_v22 = vsel %vm1516_vm2, %v4714_v60, %v1513_v51  ;;  %v1492_v34 = vsel %vm1489_vm5, %v1491_v25, %v1487_v14  ;;  %v4501_v60 = vld [vmem:[#allocation5 + $0x14] sm:$0xf0]  ;;  %v4498_v51 = vld [vmem:[#allocation5 + $0x4] sm:$0xf]  ;;  %v4499_v14 = vld [vmem:[#allocation5 + $0x4] sm:$0xf0] }
 0xe15   :  { %v1522_v20 = vsel %vm1519_vm6, %v1521_v17, %v1517_v22  ;;  %v1547_v37 = vmul.f32 %v1543_v1, %v1492_v34  ;;  %v4318_v9 = vor.u32 %v4501_v60, %v4317_v44  ;;  %1785 = vmatpush.bf16.msrb.mxu1 %v5702_v7  ;;  %v4314_v18 = vor.u32 %v4498_v51, %v4311_v8  ;;  %v4359_v22 = vld [vmem:[#allocation7 + $0x20] sm:$0xf]  ;;  %v4511_v25 = vld [vmem:[#allocation7 + $0x24] sm:$0xf0]  ;;  %v4509_v1 = vld [vmem:[#allocation7 + $0x14] sm:$0xf0] }
 0xe16   :  { %v1548_v46 = vmul.f32 %v1544_v30, %v1522_v20  ;;  %vm1624_vm2 = vcmask 1043456   ;;  %vm1625_vm5 = vsmask.f32 3328  ;;  %v1637_v51 = vld [vmem:[%s6320_s6] sm:$0x3] }
 0xe17   :  { %1697 = vmatpush.bf16.msra.mxu2 %v4318_v9  ;;  %1712 = vmatpush.bf16.msra.mxu3 %v4314_v18  ;;  %v1640_v8 = vperm.slane %v1637_v51, 1 }
 0xe1b   :  { %1950 = vmatpush.bf16.msrb.mxu3 %v5696_v29 }
 0xe1f   :  { %1951 = vmatpush.bf16.msrb.mxu3 %v5702_v7 }
 0xe72   :  { %v1552_v55 = vpop.permute.xlu0 %1551 }
 0xe73   :  { %v1554_v5 = vpop.permute.xlu1 %1553  ;;  %v1557_v16 = vmul.f32 %v1552_v55, %v1492_v34  ;;  %v4310_v55 = vor.u32 %v4499_v14, %v4309_v52  ;;  %v5710_v34 = vor.u32 %v4511_v25, %v4359_v22 }
 0xe74   :  { %v1558_v4 = vmul.f32 %v1554_v5, %v1522_v20  ;;  %v4508_v5 = vld [vmem:[#allocation7 + $0x14] sm:$0xf]  ;;  %v4353_v20 = vld [vmem:[#allocation7 + $0x18] sm:$0xf0] }
 0xe75   :  { %1561 = vrot.lane.b32.xlu2 %v1557_v16, %s5181_s23  ;;  %v4351_v16 = vld [vmem:[#allocation7 + $0x10] sm:$0xf]  ;;  %1698 = vmatpush.bf16.msra.mxu2 %v4310_v55 }
 0xe76   :  { %1563 = vrot.lane.b32.xlu0 %v1558_v4, %s5181_s23  ;;  %v5712_v4 = vor.u32 %v4508_v5, %v4353_v20  ;;  %1772 = vmatpush.bf16.msrb.mxu0 %v5710_v34  ;;  %v5717_v35 = vor.u32 %v4509_v1, %v4351_v16  ;;  %v1639_v16 = vperm.slane %v1637_v51, 0 }
 0xe78   :  { %1786 = vmatpush.bf16.msrb.mxu1 %v5712_v4  ;;  %1952 = vmatpush.bf16.msrb.mxu3 %v5712_v4 }
 0xe79   :  { %1937 = vmatpush.bf16.msrb.mxu2 %v5700_v63 }
 0xe7a   :  { %1773 = vmatpush.bf16.msrb.mxu0 %v5717_v35 }
 0xe7d   :  { %1938 = vmatpush.bf16.msrb.mxu2 %v5710_v34 }
 0xe7e   :  { %1774 = vmatpush.bf16.msrb.mxu0 %v5727_v43 }
 0xe81   :  { %1939 = vmatpush.bf16.msrb.mxu2 %v5717_v35  ;;  %1775 = vmatmul.bf16.vlgmr.msrb.gmra.mxu0 %v5183_v32 }
 0xe82   :  { %2109 = vmatpush.bf16.msra.mxu0 %v5700_v63 }
 0xe85   :  { %1940 = vmatpush.bf16.msrb.mxu2 %v5727_v43 }
 0xe86   :  { %2110 = vmatpush.bf16.msra.mxu0 %v5710_v34 }
 0xe8a   :  { %2111 = vmatpush.bf16.msra.mxu0 %v5717_v35 }
 0xe8e   :  { %2112 = vmatpush.bf16.msra.mxu0 %v5727_v43 }
 0xe92   :  { %2459 = vmatpush.bf16.msrb.mxu0 %v5700_v63 }
 0xe96   :  { %2460 = vmatpush.bf16.msrb.mxu0 %v5710_v34 }
 0xe9a   :  { %2461 = vmatpush.bf16.msrb.mxu0 %v5717_v35 }
 0xe9e   :  { %2462 = vmatpush.bf16.msrb.mxu0 %v5727_v43 }
 0xecf   :  { %v1562_v36 = vpop.permute.xlu2 %1561 }
 0xed0   :  { %v1567_v6 = vadd.f32 %v1562_v36, %v1547_v37  ;;  %v4506_v37 = vld [vmem:[#allocation7 + $0x4] sm:$0xf]  ;;  %v4345_v36 = vld [vmem:[#allocation7 + $0x8] sm:$0xf0] }
 0xed1   :  { %v5722_v31 = vor.u32 %v4506_v37, %v4345_v36 }
 0xed2   :  { %4715 = vtanh.f32 %v1567_v6 }
 0xed3   :  { %1787 = vmatpush.bf16.msrb.mxu1 %v5722_v31  ;;  %1953 = vmatpush.bf16.msrb.mxu3 %v5722_v31 }
 0xed6   :  { %1788 = vmatmul.bf16.vlgmr.msrb.gmra.mxu1 %v5183_v32 }
 0xed7   :  { %2122 = vmatpush.bf16.msra.mxu1 %v5696_v29 }
 0xed8   :  { %v4716_v41 = vpop.eup %4715 }
 0xed9   :  { %1573 = vrot.lane.b32.xlu1 %v4716_v41, %s5181_s23 }
 0xedb   :  { %2123 = vmatpush.bf16.msra.mxu1 %v5702_v7 }
 0xedf   :  { %2124 = vmatpush.bf16.msra.mxu1 %v5712_v4 }
 0xee3   :  { %2125 = vmatpush.bf16.msra.mxu1 %v5722_v31 }
 0xee7   :  { %2472 = vmatpush.bf16.msrb.mxu1 %v5696_v29 }
 0xee8   :  { %v1564_v47 = vpop.permute.xlu0 %1563 }
 0xee9   :  { %v1568_v48 = vadd.f32 %v1564_v47, %v1548_v46 }
 0xeeb   :  { %4717 = vtanh.f32 %v1568_v48  ;;  %2473 = vmatpush.bf16.msrb.mxu1 %v5702_v7 }
 0xeec   :  { %4719 = vpow2.f32 %v4304_v58 }
 0xeed   :  { %4721 = vpow2.f32 %v4306_v42 }
 0xeef   :  { %2474 = vmatpush.bf16.msrb.mxu1 %v5712_v4 }
 0xef1   :  { %v4718_v49 = vpop.eup %4717 }
 0xef2   :  { %1575 = vrot.lane.b32.xlu2 %v4718_v49, %s5181_s23  ;;  %v4720_v53 = vpop.eup %4719 }
 0xef3   :  { %v4722_v38 = vpop.eup %4721  ;;  %v5691_v59 = vadd.f32 1.0, %v4720_v53  ;;  %2475 = vmatpush.bf16.msrb.mxu1 %v5722_v31 }
 0xef4   :  { %v5693_v13 = vadd.f32 1.0, %v4722_v38 }
 0xef5   :  { %4723 = vrcp.f32 %v5691_v59  ;;  %v1505_v41 = vand.u32 2147483648, %v5691_v59  ;;  %vm1499_vm12 = vweird.f32 %v5691_v59  ;;  %v1503_v46 = vand.u32 2147483647, %v5691_v59 }
 0xef6   :  { %4725 = vrcp.f32 %v5693_v13  ;;  %v1535_v30 = vand.u32 2147483648, %v5693_v13  ;;  %vm1529_vm14 = vweird.f32 %v5693_v13  ;;  %v1533_v47 = vand.u32 2147483647, %v5693_v13 }
 0xef7   :  { %v1506_v58 = vor.u32 1.1754944e-38, %v1505_v41  ;;  %vm1504_vm6 = vcmp.eq.f32.partialorder %v1503_v46, 8.507059e+37 }
 0xef8   :  { %v1536_v42 = vor.u32 1.1754944e-38, %v1535_v30  ;;  %vm1534_vm8 = vcmp.eq.f32.partialorder %v1533_v47, 8.507059e+37 }
 0xefb   :  { %v5705_v24 = vpop.eup %4723 }
 0xefc   :  { %v5708_v17 = vpop.eup %4725  ;;  %v1495_v6 = vmul.f32 %v5705_v24, %v5691_v59  ;;  %vm1500_vm10 = vweird.f32 %v5705_v24 }
 0xefd   :  { %v1525_v19 = vmul.f32 %v5708_v17, %v5693_v13  ;;  %vm1530_vm11 = vweird.f32 %v5708_v17  ;;  %vm1501_vm15 = vmor %vm1499_vm12, %vm1500_vm10 }
 0xefe   :  { %v1496_v11 = vsub.f32 1.0, %v1495_v6  ;;  %vm1531_vm1 = vmor %vm1529_vm14, %vm1530_vm11 }
 0xeff   :  { %v1526_v33 = vsub.f32 1.0, %v1525_v19  ;;  %vm5761_vm10 = vmand %vm1624_vm2, %vm1625_vm5 }
 0xf00   :  { %v1497_v50 = vmul.f32 %v5705_v24, %v1496_v11 }
 0xf01   :  { %v1527_v27 = vmul.f32 %v5708_v17, %v1526_v33 }
 0xf02   :  { %v1498_v21 = vadd.f32 %v5705_v24, %v1497_v50 }
 0xf03   :  { %v1528_v45 = vadd.f32 %v5708_v17, %v1527_v27 }
 0xf04   :  { %v1502_v48 = vsel %vm1501_vm15, %v5705_v24, %v1498_v21 }
 0xf05   :  { %v1532_v49 = vsel %vm1531_vm1, %v5708_v17, %v1528_v45  ;;  %v1507_v53 = vsel %vm1504_vm6, %v1506_v58, %v1502_v48 }
 0xf06   :  { %v1537_v59 = vsel %vm1534_vm8, %v1536_v42, %v1532_v49 }
 0xf4b   :  { %v1574_v38 = vpop.permute.xlu1 %1573 }
 0xf4c   :  { %v1576_v13 = vpop.permute.xlu2 %1575  ;;  %v1579_v56 = vmul.f32 %v1574_v38, %v1507_v53 }
 0xf4d   :  { %v1580_v57 = vmul.f32 %v1576_v13, %v1537_v59 }
 0xf4e   :  { %v1581_v26 = vpack.c.bf16 %v1579_v56, %v1579_v56 }
 0xf4f   :  { %v1582_v44 = vpack.c.bf16 %v1580_v57, %v1580_v57 }
 0xf50   :  { %v1627_v28 = vsel %vm5761_vm10, %v5658_v15, %v1581_v26 }
 0xf51   :  { %v1628_v60 = vsel %vm5761_vm10, %v5666_v12, %v1582_v44  ;;  %v1645_v40 = vunpack.c.l.b16 %v1627_v28  ;;  %v1776_v12 = vpop.f32.mrf.mxu0 }
 0xf52   :  { %v1646_v61 = vunpack.c.l.b16 %v1628_v60  ;;  %v1795_v6 = vrot.slane %v1776_v12, 1 }
 0xf53   :  { %v1789_v15 = vpop.f32.mrf.mxu1 }
 0xf54   :  { %v1647_v9 = vpack.c.b16 %v1646_v61, %v1645_v40  ;;  %v1796_v14 = vrot.slane %v1789_v15, 1 }
 0xf56   :  { %4339 = vmatmul.msk.bf16.vlgmr.msra.gmra.mxu2 %vm205_vm4, %v1647_v9  ;;  %4340 = vmatmul.msk.bf16.vlgmr.msra.gmra.mxu3 %vm205_vm4, %v1647_v9 }
 0xf57   :  { %2297 = vmatpush.bf16.msra.mxu3 %v5696_v29  ;;  %2284 = vmatpush.bf16.msra.mxu2 %v5700_v63 }
 0xf59   :  { %v1778_v54 = vpop.f32.mrf.mxu0 }
 0xf5b   :  { %2298 = vmatpush.bf16.msra.mxu3 %v5702_v7  ;;  %2285 = vmatpush.bf16.msra.mxu2 %v5710_v34  ;;  %v1791_v2 = vpop.f32.mrf.mxu1 }
 0xf5f   :  { %2299 = vmatpush.bf16.msra.mxu3 %v5712_v4  ;;  %2286 = vmatpush.bf16.msra.mxu2 %v5717_v35 }
 0xf63   :  { %2300 = vmatpush.bf16.msra.mxu3 %v5722_v31  ;;  %2287 = vmatpush.bf16.msra.mxu2 %v5727_v43 }
 0xfd9   :  { %v1714_v52 = vpop.f32.mrf.mxu3  ;;  %v1700_v20 = vpop.f32.mrf.mxu2 }
 0xfda   :  { %v5792_v24 = vadd.f32 %v1714_v52, %v1640_v8  ;;  %v5806_v1 = vadd.f32 %v1700_v20, %v1639_v16 }
 0xfdc   :  { %v5795_v18 = vadd.f32 %v1789_v15, %v5792_v24  ;;  %v1801_v37 = vadd.f32 %v1776_v12, %v5806_v1 }
 0xfde   :  { %4727 = vtanh.f32 %v5795_v18  ;;  %v4373_v19 = vmul.f32 -1.442695, %v1801_v37 }
 0xfe1   :  { %v1716_v22 = vpop.f32.mrf.mxu3  ;;  %v1702_v36 = vpop.f32.mrf.mxu2 }
 0xfe2   :  { %v5798_v25 = vadd.f32 %v1716_v22, %v1640_v8  ;;  %v5809_v39 = vadd.f32 %v1702_v36, %v1639_v16 }
 0xfe4   :  { %v4728_v17 = vpop.eup %4727  ;;  %v5801_v55 = vadd.f32 %v1796_v14, %v5798_v25  ;;  %v1803_v3 = vadd.f32 %v1795_v6, %v5809_v39 }
 0xfe5   :  { %1887 = vrot.lane.b32.xlu1 %v4728_v17, %s5181_s23 }
 0xfe6   :  { %4729 = vtanh.f32 %v5801_v55  ;;  %v4375_v11 = vmul.f32 -1.442695, %v1803_v3  ;;  %v4376_v20 = vmul.f32 -1.442695, %v5801_v55 }
 0xfe7   :  { %4731 = vpow2.f32 %v4373_v19 }
 0xfe8   :  { %4733 = vpow2.f32 %v4375_v11 }
 0xfec   :  { %v4730_v5 = vpop.eup %4729 }
 0xfed   :  { %1889 = vrot.lane.b32.xlu0 %v4730_v5, %s5181_s23  ;;  %v4732_v33 = vpop.eup %4731  ;;  %v4374_v5 = vmul.f32 -1.442695, %v5795_v18 }
 0xfee   :  { %v1817_v50 = vadd.f32 1.0, %v4732_v33  ;;  %v4734_v27 = vpop.eup %4733 }
 0xfef   :  { %v1819_v21 = vadd.f32 1.0, %v4734_v27 }
 0xff0   :  { %4735 = vrcp.f32 %v1817_v50  ;;  %v1832_v42 = vand.u32 2147483648, %v1817_v50  ;;  %vm1826_vm11 = vweird.f32 %v1817_v50  ;;  %v1830_v53 = vand.u32 2147483647, %v1817_v50 }
 0xff1   :  { %4737 = vrcp.f32 %v1819_v21  ;;  %v1862_v28 = vand.u32 2147483648, %v1819_v21  ;;  %vm1856_vm1 = vweird.f32 %v1819_v21  ;;  %v1860_v60 = vand.u32 2147483647, %v1819_v21 }
 0xff2   :  { %v1833_v13 = vor.u32 1.1754944e-38, %v1832_v42  ;;  %vm1831_vm14 = vcmp.eq.f32.partialorder %v1830_v53, 8.507059e+37 }
 0xff3   :  { %v1863_v61 = vor.u32 1.1754944e-38, %v1862_v28  ;;  %vm1861_vm5 = vcmp.eq.f32.partialorder %v1860_v60, 8.507059e+37 }
 0xff6   :  { %v4736_v45 = vpop.eup %4735 }
 0xff7   :  { %v1822_v41 = vmul.f32 %v4736_v45, %v1817_v50  ;;  %v4738_v46 = vpop.eup %4737  ;;  %vm1827_vm8 = vweird.f32 %v4736_v45 }
 0xff8   :  { %v1852_v48 = vmul.f32 %v4738_v46, %v1819_v21  ;;  %vm1828_vm12 = vmor %vm1826_vm11, %vm1827_vm8  ;;  %vm1857_vm15 = vweird.f32 %v4738_v46 }
 0xff9   :  { %v1823_v30 = vsub.f32 1.0, %v1822_v41  ;;  %vm1858_vm2 = vmor %vm1856_vm1, %vm1857_vm15 }
 0xffa   :  { %v1853_v58 = vsub.f32 1.0, %v1852_v48 }
 0xffb   :  { %v1824_v47 = vmul.f32 %v4736_v45, %v1823_v30 }
 0xffc   :  { %v1854_v59 = vmul.f32 %v4738_v46, %v1853_v58 }
 0xffd   :  { %v1825_v49 = vadd.f32 %v4736_v45, %v1824_v47 }
 0xffe   :  { %v1855_v44 = vadd.f32 %v4738_v46, %v1854_v59 }
 0xfff   :  { %v1829_v38 = vsel %vm1828_vm12, %v4736_v45, %v1825_v49 }
0x1000   :  { %v1834_v57 = vsel %vm1831_vm14, %v1833_v13, %v1829_v38  ;;  %v1859_v40 = vsel %vm1858_vm2, %v4738_v46, %v1855_v44 }
0x1001   :  { %v1864_v15 = vsel %vm1861_vm5, %v1863_v61, %v1859_v40  ;;  %v1883_v52 = vmul.f32 0.0, %v1834_v57 }
0x1002   :  { %v1884_v2 = vmul.f32 0.0, %v1864_v15 }
0x1057   :  { %v1888_v56 = vpop.permute.xlu1 %1887 }
0x1058   :  { %v1893_v26 = vmul.f32 %v1888_v56, %v1834_v57 }
0x105a   :  { %1897 = vrot.lane.b32.xlu0 %v1893_v26, %s5181_s23 }
0x105f   :  { %v1890_v9 = vpop.permute.xlu0 %1889 }
0x1060   :  { %v1894_v12 = vmul.f32 %v1890_v9, %v1864_v15 }
0x1062   :  { %1899 = vrot.lane.b32.xlu2 %v1894_v12, %s5181_s23 }
0x10bc   :  { %v1900_v54 = vpop.permute.xlu2 %1899 }
0x10bd   :  { %v5814_v51 = vadd.f32 %v1900_v54, %v1884_v2 }
0x10bf   :  { %4739 = vtanh.f32 %v5814_v51 }
0x10c5   :  { %v4740_v8 = vpop.eup %4739 }
0x10c6   :  { %1911 = vrot.lane.b32.xlu1 %v4740_v8, %s5181_s23 }
0x10cc   :  { %v1898_v14 = vpop.permute.xlu0 %1897 }
0x10cd   :  { %v5818_v22 = vadd.f32 %v1898_v14, %v1883_v52 }
0x10cf   :  { %4741 = vtanh.f32 %v5818_v22 }
0x10d0   :  { %4743 = vpow2.f32 %v4374_v5 }
0x10d1   :  { %4745 = vpow2.f32 %v4376_v20 }
0x10d5   :  { %v4742_v17 = vpop.eup %4741 }
0x10d6   :  { %1909 = vrot.lane.b32.xlu2 %v4742_v17, %s5181_s23  ;;  %v4744_v16 = vpop.eup %4743 }
0x10d7   :  { %v1818_v37 = vadd.f32 1.0, %v4744_v16  ;;  %v4746_v36 = vpop.eup %4745 }
0x10d8   :  { %v1820_v6 = vadd.f32 1.0, %v4746_v36 }
0x10d9   :  { %4747 = vrcp.f32 %v1818_v37  ;;  %v1847_v41 = vand.u32 2147483648, %v1818_v37  ;;  %vm1841_vm8 = vweird.f32 %v1818_v37  ;;  %v1845_v55 = vand.u32 2147483647, %v1818_v37 }
0x10da   :  { %4749 = vrcp.f32 %v1820_v6  ;;  %v1877_v49 = vand.u32 2147483648, %v1820_v6  ;;  %vm1871_vm15 = vweird.f32 %v1820_v6  ;;  %v1875_v58 = vand.u32 2147483647, %v1820_v6 }
0x10db   :  { %v1848_v47 = vor.u32 1.1754944e-38, %v1847_v41  ;;  %vm1846_vm14 = vcmp.eq.f32.partialorder %v1845_v55, 8.507059e+37 }
0x10dc   :  { %v1878_v59 = vor.u32 1.1754944e-38, %v1877_v49  ;;  %vm1876_vm2 = vcmp.eq.f32.partialorder %v1875_v58, 8.507059e+37 }
0x10df   :  { %v4748_v19 = vpop.eup %4747 }
0x10e0   :  { %v1837_v3 = vmul.f32 %v4748_v19, %v1818_v37  ;;  %v4750_v11 = vpop.eup %4749  ;;  %vm1842_vm6 = vweird.f32 %v4748_v19 }
0x10e1   :  { %v1867_v50 = vmul.f32 %v4750_v11, %v1820_v6  ;;  %vm1843_vm11 = vmor %vm1841_vm8, %vm1842_vm6  ;;  %vm1872_vm12 = vweird.f32 %v4750_v11 }
0x10e2   :  { %v1838_v33 = vsub.f32 1.0, %v1837_v3  ;;  %vm1873_vm1 = vmor %vm1871_vm15, %vm1872_vm12 }
0x10e3   :  { %v1868_v21 = vsub.f32 1.0, %v1867_v50 }
0x10e4   :  { %v1839_v27 = vmul.f32 %v4748_v19, %v1838_v33 }
0x10e5   :  { %v1869_v18 = vmul.f32 %v4750_v11, %v1868_v21 }
0x10e6   :  { %v1840_v45 = vadd.f32 %v4748_v19, %v1839_v27 }
0x10e7   :  { %v1870_v46 = vadd.f32 %v4750_v11, %v1869_v18 }
0x10e8   :  { %v1844_v30 = vsel %vm1843_vm11, %v4748_v19, %v1840_v45 }
0x10e9   :  { %v1849_v42 = vsel %vm1846_vm14, %v1848_v47, %v1844_v30  ;;  %v1874_v38 = vsel %vm1873_vm1, %v4750_v11, %v1870_v46 }
0x10ea   :  { %v1879_v13 = vsel %vm1876_vm2, %v1878_v59, %v1874_v38 }
0x1130   :  { %v1910_v48 = vpop.permute.xlu2 %1909 }
0x1131   :  { %v1915_v53 = vmul.f32 %v1910_v48, %v1849_v42 }
0x1133   :  { %v5824_v57 = vpack.c.bf16 %v1915_v53, %v1915_v53 }
0x1135   :  { %v1921_v28 = vunpack.c.l.b16 %v5824_v57 }
0x1137   :  { %v4377_v61 = vunpack.i.l.s16 %v1921_v28 }
0x1138   :  { %v1912_v56 = vpop.permute.xlu1 %1911 }
0x1139   :  { %v1916_v26 = vmul.f32 %v1912_v56, %v1879_v13 }
0x113b   :  { %v5826_v44 = vpack.c.bf16 %v1916_v26, %v1916_v26 }
0x113d   :  { %v1922_v60 = vunpack.c.l.b16 %v5826_v44 }
0x113f   :  { %v4378_v40 = vunpack.i.l.s16 %v1922_v60 }
0x1141   :  { %v1927_v9 = vrot.slane %v4378_v40, 7 }
0x1143   :  { %v1928_v15 = vsel %vm370_vm3, %v1927_v9, %v4377_v61 }
0x1144   :  { %v1929_v12 = vpack.c.b16 %v1928_v15, %v1928_v15 }
0x1146   :  { %4379 = vmatmul.msk.bf16.vlgmr.msrb.gmra.mxu2 %vm205_vm4, %v1929_v12  ;;  %4380 = vmatmul.msk.bf16.vlgmr.msrb.gmra.mxu3 %vm205_vm4, %v1929_v12  ;;  %v2051_v12 = vrot.slane %v5818_v22, 7 }
0x1147   :  { %2647 = vmatpush.bf16.msrb.mxu3 %v5696_v29  ;;  %2634 = vmatpush.bf16.msrb.mxu2 %v5700_v63 }
0x114b   :  { %2648 = vmatpush.bf16.msrb.mxu3 %v5702_v7  ;;  %2635 = vmatpush.bf16.msrb.mxu2 %v5710_v34 }
0x114f   :  { %2649 = vmatpush.bf16.msrb.mxu3 %v5712_v4  ;;  %2636 = vmatpush.bf16.msrb.mxu2 %v5717_v35 }
0x1153   :  { %2650 = vmatpush.bf16.msrb.mxu3 %v5722_v31  ;;  %2637 = vmatpush.bf16.msrb.mxu2 %v5727_v43 }
0x11c9   :  { %v1942_v2 = vpop.f32.mrf.mxu2  ;;  %v1955_v54 = vpop.f32.mrf.mxu3 }
0x11ca   :  { %v1962_v8 = vrot.slane %v1955_v54, 7  ;;  %v5842_v52 = vadd.f32 %v1955_v54, %v5798_v25  ;;  %v1969_v37 = vadd.f32 %v1942_v2, %v5809_v39  ;;  %v1961_v36 = vrot.slane %v1942_v2, 7 }
0x11cc   :  { %4751 = vtanh.f32 %v5842_v52  ;;  %v5846_v14 = vadd.f32 %v1962_v8, %v5792_v24  ;;  %v4383_v6 = vmul.f32 -1.442695, %v1969_v37  ;;  %v1967_v19 = vadd.f32 %v1961_v36, %v5806_v1 }
0x11cd   :  { %v4384_v22 = vmul.f32 -1.442695, %v5842_v52 }
0x11ce   :  { %4753 = vtanh.f32 %v5846_v14  ;;  %v4381_v3 = vmul.f32 -1.442695, %v1967_v19 }
0x11cf   :  { %4755 = vpow2.f32 %v4383_v6  ;;  %v4382_v6 = vmul.f32 -1.442695, %v5846_v14 }
0x11d0   :  { %4757 = vpow2.f32 %v4381_v3 }
0x11d1   :  { %v1944_v17 = vpop.f32.mrf.mxu2  ;;  %v1957_v5 = vpop.f32.mrf.mxu3 }
0x11d2   :  { %v4752_v20 = vpop.eup %4751  ;;  %v2052_v5 = vrot.slane %v5814_v51, 7 }
0x11d3   :  { %2061 = vrot.lane.b32.xlu1 %v4752_v20, %s5181_s23 }
0x11d4   :  { %v4754_v16 = vpop.eup %4753 }
0x11d5   :  { %2059 = vrot.lane.b32.xlu0 %v4754_v16, %s5181_s23  ;;  %v4756_v11 = vpop.eup %4755 }
0x11d6   :  { %v1985_v33 = vadd.f32 1.0, %v4756_v11  ;;  %v4758_v50 = vpop.eup %4757 }
0x11d7   :  { %v1983_v27 = vadd.f32 1.0, %v4758_v50 }
0x11d8   :  { %4759 = vrcp.f32 %v1985_v33  ;;  %v2028_v48 = vand.u32 2147483648, %v1985_v33  ;;  %vm2022_vm6 = vweird.f32 %v1985_v33  ;;  %v2026_v58 = vand.u32 2147483647, %v1985_v33 }
0x11d9   :  { %4761 = vrcp.f32 %v1983_v27  ;;  %v1998_v59 = vand.u32 2147483648, %v1983_v27  ;;  %vm1992_vm14 = vweird.f32 %v1983_v27  ;;  %v1996_v26 = vand.u32 2147483647, %v1983_v27 }
0x11da   :  { %v2029_v53 = vor.u32 1.1754944e-38, %v2028_v48  ;;  %vm2027_vm12 = vcmp.eq.f32.partialorder %v2026_v58, 8.507059e+37 }
0x11db   :  { %v1999_v40 = vor.u32 1.1754944e-38, %v1998_v59  ;;  %vm1997_vm1 = vcmp.eq.f32.partialorder %v1996_v26, 8.507059e+37 }
0x11de   :  { %v4760_v21 = vpop.eup %4759 }
0x11df   :  { %v2018_v45 = vmul.f32 %v4760_v21, %v1985_v33  ;;  %v4762_v18 = vpop.eup %4761  ;;  %vm2023_vm5 = vweird.f32 %v4760_v21 }
0x11e0   :  { %v1988_v55 = vmul.f32 %v4762_v18, %v1983_v27  ;;  %vm2024_vm8 = vmor %vm2022_vm6, %vm2023_vm5  ;;  %vm1993_vm11 = vweird.f32 %v4762_v18 }
0x11e1   :  { %v2019_v41 = vsub.f32 1.0, %v2018_v45  ;;  %vm1994_vm15 = vmor %vm1992_vm14, %vm1993_vm11 }
0x11e2   :  { %v1989_v46 = vsub.f32 1.0, %v1988_v55 }
0x11e3   :  { %v2020_v30 = vmul.f32 %v4760_v21, %v2019_v41 }
0x11e4   :  { %v1990_v49 = vmul.f32 %v4762_v18, %v1989_v46 }
0x11e5   :  { %v2021_v47 = vadd.f32 %v4760_v21, %v2020_v30 }
0x11e6   :  { %v1991_v38 = vadd.f32 %v4762_v18, %v1990_v49 }
0x11e7   :  { %v2025_v42 = vsel %vm2024_vm8, %v4760_v21, %v2021_v47 }
0x11e8   :  { %v2030_v56 = vsel %vm2027_vm12, %v2029_v53, %v2025_v42  ;;  %v1995_v60 = vsel %vm1994_vm15, %v4762_v18, %v1991_v38 }
0x11e9   :  { %v2000_v9 = vsel %vm1997_vm1, %v1999_v40, %v1995_v60  ;;  %v2056_v20 = vmul.f32 %v2052_v5, %v2030_v56 }
0x11ea   :  { %v2055_v2 = vmul.f32 %v2051_v12, %v2000_v9 }
0x1245   :  { %v2062_v13 = vpop.permute.xlu1 %2061 }
0x1246   :  { %v2066_v28 = vmul.f32 %v2062_v13, %v2030_v56 }
0x1247   :  { %v2060_v61 = vpop.permute.xlu0 %2059 }
0x1248   :  { %2071 = vrot.lane.b32.xlu0 %v2066_v28, %s5181_s23  ;;  %v2065_v15 = vmul.f32 %v2060_v61, %v2000_v9 }
0x124a   :  { %2069 = vrot.lane.b32.xlu2 %v2065_v15, %s5181_s23 }
0x12a4   :  { %v2070_v54 = vpop.permute.xlu2 %2069 }
0x12a5   :  { %v5856_v8 = vadd.f32 %v2070_v54, %v2055_v2 }
0x12a7   :  { %4763 = vtanh.f32 %v5856_v8 }
0x12ad   :  { %v4764_v17 = vpop.eup %4763 }
0x12ae   :  { %2081 = vrot.lane.b32.xlu1 %v4764_v17, %s5181_s23 }
0x12ba   :  { %v2072_v16 = vpop.permute.xlu0 %2071 }
0x12bb   :  { %v5861_v37 = vadd.f32 %v2072_v16, %v2056_v20 }
0x12bd   :  { %4765 = vtanh.f32 %v5861_v37 }
0x12be   :  { %4767 = vpow2.f32 %v4384_v22 }
0x12bf   :  { %4769 = vpow2.f32 %v4382_v6 }
0x12c3   :  { %v4766_v36 = vpop.eup %4765 }
0x12c4   :  { %2083 = vrot.lane.b32.xlu2 %v4766_v36, %s5181_s23  ;;  %v4768_v19 = vpop.eup %4767 }
0x12c5   :  { %v1986_v3 = vadd.f32 1.0, %v4768_v19  ;;  %v4770_v11 = vpop.eup %4769 }
0x12c6   :  { %v1984_v33 = vadd.f32 1.0, %v4770_v11 }
0x12c7   :  { %4771 = vrcp.f32 %v1986_v3  ;;  %v2043_v30 = vand.u32 2147483648, %v1986_v3  ;;  %vm2037_vm5 = vweird.f32 %v1986_v3  ;;  %v2041_v14 = vand.u32 2147483647, %v1986_v3 }
0x12c8   :  { %4773 = vrcp.f32 %v1984_v33  ;;  %v2013_v49 = vand.u32 2147483648, %v1984_v33  ;;  %vm2007_vm12 = vweird.f32 %v1984_v33  ;;  %v2011_v42 = vand.u32 2147483647, %v1984_v33 }
0x12c9   :  { %v2044_v48 = vor.u32 1.1754944e-38, %v2043_v30  ;;  %vm2042_vm11 = vcmp.eq.f32.partialorder %v2041_v14, 8.507059e+37 }
0x12ca   :  { %v2014_v13 = vor.u32 1.1754944e-38, %v2013_v49  ;;  %vm2012_vm15 = vcmp.eq.f32.partialorder %v2011_v42, 8.507059e+37 }
0x12cd   :  { %v4772_v51 = vpop.eup %4771 }
0x12ce   :  { %v2033_v50 = vmul.f32 %v4772_v51, %v1986_v3  ;;  %v4774_v27 = vpop.eup %4773  ;;  %vm2038_vm2 = vweird.f32 %v4772_v51 }
0x12cf   :  { %v2003_v45 = vmul.f32 %v4774_v27, %v1984_v33  ;;  %vm2039_vm6 = vmor %vm2037_vm5, %vm2038_vm2  ;;  %vm2008_vm8 = vweird.f32 %v4774_v27 }
0x12d0   :  { %v2034_v21 = vsub.f32 1.0, %v2033_v50  ;;  %vm2009_vm14 = vmor %vm2007_vm12, %vm2008_vm8 }
0x12d1   :  { %v2004_v41 = vsub.f32 1.0, %v2003_v45 }
0x12d2   :  { %v2035_v18 = vmul.f32 %v4772_v51, %v2034_v21 }
0x12d3   :  { %v2005_v52 = vmul.f32 %v4774_v27, %v2004_v41 }
0x12d4   :  { %v2036_v55 = vadd.f32 %v4772_v51, %v2035_v18 }
0x12d5   :  { %v2006_v47 = vadd.f32 %v4774_v27, %v2005_v52 }
0x12d6   :  { %v2040_v46 = vsel %vm2039_vm6, %v4772_v51, %v2036_v55 }
0x12d7   :  { %v2045_v53 = vsel %vm2042_vm11, %v2044_v48, %v2040_v46  ;;  %v2010_v59 = vsel %vm2009_vm14, %v4774_v27, %v2006_v47 }
0x12d8   :  { %v2015_v56 = vsel %vm2012_vm15, %v2014_v13, %v2010_v59 }
0x131e   :  { %v2084_v58 = vpop.permute.xlu2 %2083 }
0x131f   :  { %v2088_v38 = vmul.f32 %v2084_v58, %v2045_v53 }
0x1320   :  { %v2082_v26 = vpop.permute.xlu1 %2081 }
0x1321   :  { %v5867_v28 = vpack.c.bf16 %v2088_v38, %v2088_v38  ;;  %v2087_v60 = vmul.f32 %v2082_v26, %v2015_v56 }
0x1323   :  { %v5869_v40 = vpack.c.bf16 %v2087_v60, %v2087_v60  ;;  %v2094_v61 = vunpack.c.l.b16 %v5867_v28 }
0x1325   :  { %v2093_v9 = vunpack.c.l.b16 %v5869_v40  ;;  %v4386_v12 = vunpack.i.l.s16 %v2094_v61 }
0x1327   :  { %v4385_v15 = vunpack.i.l.s16 %v2093_v9 }
0x1329   :  { %v2099_v2 = vrot.slane %v4385_v15, 1 }
0x132b   :  { %v2100_v54 = vsel %vm370_vm3, %v4386_v12, %v2099_v2 }
0x132c   :  { %v2101_v17 = vpack.c.b16 %v2100_v54, %v2100_v54 }
0x132e   :  { %4387 = vmatmul.msk.bf16.vlgmr.msra.gmra.mxu0 %vm205_vm4, %v2101_v17  ;;  %4388 = vmatmul.msk.bf16.vlgmr.msra.gmra.mxu1 %vm205_vm4, %v2101_v17 }
0x132f   :  { %2822 = vmatpush.bf16.msra.mxu1 %v5696_v29  ;;  %2809 = vmatpush.bf16.msra.mxu0 %v5700_v63 }
0x1333   :  { %2823 = vmatpush.bf16.msra.mxu1 %v5702_v7  ;;  %2810 = vmatpush.bf16.msra.mxu0 %v5710_v34 }
0x1337   :  { %2824 = vmatpush.bf16.msra.mxu1 %v5712_v4  ;;  %2811 = vmatpush.bf16.msra.mxu0 %v5717_v35 }
0x133b   :  { %2825 = vmatpush.bf16.msra.mxu1 %v5722_v31  ;;  %2812 = vmatpush.bf16.msra.mxu0 %v5727_v43 }
0x13ab   :  { %v2114_v5 = vpop.f32.mrf.mxu0  ;;  %v2127_v20 = vpop.f32.mrf.mxu1 }
0x13ac   :  { %v2134_v16 = vrot.slane %v2127_v20, 6  ;;  %v2136_v36 = vrot.slane %v2127_v20, 7  ;;  %v2133_v51 = vrot.slane %v2114_v5, 6  ;;  %v2135_v50 = vrot.slane %v2114_v5, 7 }
0x13ae   :  { %v5885_v22 = vadd.f32 %v2134_v16, %v5792_v24  ;;  %v5888_v6 = vadd.f32 %v2136_v36, %v5798_v25  ;;  %v2141_v27 = vadd.f32 %v2133_v51, %v5806_v1  ;;  %v2143_v21 = vadd.f32 %v2135_v50, %v5809_v39 }
0x13af   :  { %v2225_v36 = vrot.slane %v5856_v8, 7  ;;  %v2226_v51 = vrot.slane %v5861_v37, 7 }
0x13b0   :  { %4775 = vtanh.f32 %v5885_v22  ;;  %v4389_v45 = vmul.f32 -1.442695, %v2141_v27  ;;  %v4391_v18 = vmul.f32 -1.442695, %v2143_v21  ;;  %v4390_v8 = vmul.f32 -1.442695, %v5885_v22 }
0x13b1   :  { %4777 = vtanh.f32 %v5888_v6 }
0x13b2   :  { %4779 = vpow2.f32 %v4389_v45 }
0x13b3   :  { %v2116_v19 = vpop.f32.mrf.mxu0  ;;  %v2129_v3 = vpop.f32.mrf.mxu1  ;;  %4781 = vpow2.f32 %v4391_v18  ;;  %v4392_v18 = vmul.f32 -1.442695, %v5888_v6 }
0x13b6   :  { %v4776_v11 = vpop.eup %4775 }
0x13b7   :  { %v4778_v33 = vpop.eup %4777  ;;  %2233 = vrot.lane.b32.xlu0 %v4776_v11, %s5181_s23 }
0x13b8   :  { %2235 = vrot.lane.b32.xlu1 %v4778_v33, %s5181_s23  ;;  %v4780_v41 = vpop.eup %4779 }
0x13b9   :  { %v4782_v55 = vpop.eup %4781  ;;  %v2157_v52 = vadd.f32 1.0, %v4780_v41 }
0x13ba   :  { %v2159_v30 = vadd.f32 1.0, %v4782_v55 }
0x13bb   :  { %4783 = vrcp.f32 %v2157_v52  ;;  %v2172_v13 = vand.u32 2147483648, %v2157_v52  ;;  %vm2166_vm5 = vweird.f32 %v2157_v52  ;;  %v2170_v26 = vand.u32 2147483647, %v2157_v52 }
0x13bc   :  { %4785 = vrcp.f32 %v2159_v30  ;;  %v2202_v56 = vand.u32 2147483648, %v2159_v30  ;;  %vm2196_vm6 = vweird.f32 %v2159_v30  ;;  %v2200_v60 = vand.u32 2147483647, %v2159_v30 }
0x13bd   :  { %v2173_v15 = vor.u32 1.1754944e-38, %v2172_v13  ;;  %vm2171_vm12 = vcmp.eq.f32.partialorder %v2170_v26, 8.507059e+37 }
0x13be   :  { %v2203_v12 = vor.u32 1.1754944e-38, %v2202_v56  ;;  %vm2201_vm14 = vcmp.eq.f32.partialorder %v2200_v60, 8.507059e+37 }
0x13c1   :  { %v4784_v14 = vpop.eup %4783 }
0x13c2   :  { %v4786_v46 = vpop.eup %4785  ;;  %v2162_v47 = vmul.f32 %v4784_v14, %v2157_v52  ;;  %vm2167_vm1 = vweird.f32 %v4784_v14 }
0x13c3   :  { %v2192_v48 = vmul.f32 %v4786_v46, %v2159_v30  ;;  %vm2197_vm2 = vweird.f32 %v4786_v46  ;;  %vm2168_vm8 = vmor %vm2166_vm5, %vm2167_vm1 }
0x13c4   :  { %v2163_v49 = vsub.f32 1.0, %v2162_v47  ;;  %vm2198_vm11 = vmor %vm2196_vm6, %vm2197_vm2 }
0x13c5   :  { %v2193_v58 = vsub.f32 1.0, %v2192_v48 }
0x13c6   :  { %v2164_v42 = vmul.f32 %v4784_v14, %v2163_v49 }
0x13c7   :  { %v2194_v53 = vmul.f32 %v4786_v46, %v2193_v58 }
0x13c8   :  { %v2165_v38 = vadd.f32 %v4784_v14, %v2164_v42 }
0x13c9   :  { %v2195_v59 = vadd.f32 %v4786_v46, %v2194_v53 }
0x13ca   :  { %v2169_v61 = vsel %vm2168_vm8, %v4784_v14, %v2165_v38 }
0x13cb   :  { %v2199_v9 = vsel %vm2198_vm11, %v4786_v46, %v2195_v59  ;;  %v2174_v54 = vsel %vm2171_vm12, %v2173_v15, %v2169_v61 }
0x13cc   :  { %v2204_v5 = vsel %vm2201_vm14, %v2203_v12, %v2199_v9  ;;  %v2229_v19 = vmul.f32 %v2225_v36, %v2174_v54  ;;  %v3141_v36 = vsel %vm5456_vm13, %v5826_v44, %v5867_v28 }
0x13cd   :  { %v2230_v50 = vmul.f32 %v2226_v51, %v2204_v5 }
0x1429   :  { %v2234_v2 = vpop.permute.xlu0 %2233 }
0x142a   :  { %v2236_v17 = vpop.permute.xlu1 %2235  ;;  %v2239_v20 = vmul.f32 %v2234_v2, %v2174_v54 }
0x142b   :  { %v2240_v16 = vmul.f32 %v2236_v17, %v2204_v5 }
0x142c   :  { %2243 = vrot.lane.b32.xlu2 %v2239_v20, %s5181_s23  ;;  %v3140_v20 = vsel %vm5456_vm13, %v5824_v57, %v5869_v40 }
0x142d   :  { %2245 = vrot.lane.b32.xlu0 %v2240_v16, %s5181_s23 }
0x1486   :  { %v2244_v3 = vpop.permute.xlu2 %2243 }
0x1487   :  { %v5899_v11 = vadd.f32 %v2244_v3, %v2229_v19 }
0x1489   :  { %4787 = vtanh.f32 %v5899_v11 }
0x148f   :  { %v4788_v33 = vpop.eup %4787 }
0x1490   :  { %2255 = vrot.lane.b32.xlu1 %v4788_v33, %s5181_s23 }
0x149f   :  { %v2246_v27 = vpop.permute.xlu0 %2245 }
0x14a0   :  { %v5904_v21 = vadd.f32 %v2246_v27, %v2230_v50 }
0x14a2   :  { %4789 = vtanh.f32 %v5904_v21 }
0x14a3   :  { %4791 = vpow2.f32 %v4390_v8 }
0x14a4   :  { %4793 = vpow2.f32 %v4392_v18 }
0x14a8   :  { %v4790_v45 = vpop.eup %4789 }
0x14a9   :  { %2257 = vrot.lane.b32.xlu2 %v4790_v45, %s5181_s23  ;;  %v4792_v41 = vpop.eup %4791 }
0x14aa   :  { %v4794_v55 = vpop.eup %4793  ;;  %v2158_v52 = vadd.f32 1.0, %v4792_v41 }
0x14ab   :  { %v2160_v30 = vadd.f32 1.0, %v4794_v55 }
0x14ac   :  { %4795 = vrcp.f32 %v2158_v52  ;;  %v2187_v6 = vand.u32 2147483648, %v2158_v52  ;;  %vm2181_vm2 = vweird.f32 %v2158_v52  ;;  %v2185_v59 = vand.u32 2147483647, %v2158_v52 }
0x14ad   :  { %4797 = vrcp.f32 %v2160_v30  ;;  %v2217_v38 = vand.u32 2147483648, %v2160_v30  ;;  %vm2211_vm5 = vweird.f32 %v2160_v30  ;;  %v2215_v13 = vand.u32 2147483647, %v2160_v30 }
0x14ae   :  { %v2188_v60 = vor.u32 1.1754944e-38, %v2187_v6  ;;  %vm2186_vm11 = vcmp.eq.f32.partialorder %v2185_v59, 8.507059e+37 }
0x14af   :  { %v2218_v61 = vor.u32 1.1754944e-38, %v2217_v38  ;;  %vm2216_vm12 = vcmp.eq.f32.partialorder %v2215_v13, 8.507059e+37 }
0x14b2   :  { %v4796_v37 = vpop.eup %4795 }
0x14b3   :  { %v4798_v14 = vpop.eup %4797  ;;  %v2177_v46 = vmul.f32 %v4796_v37, %v2158_v52  ;;  %vm2182_vm15 = vweird.f32 %v4796_v37 }
0x14b4   :  { %v2207_v47 = vmul.f32 %v4798_v14, %v2160_v30  ;;  %vm2212_vm1 = vweird.f32 %v4798_v14  ;;  %vm2183_vm6 = vmor %vm2181_vm2, %vm2182_vm15 }
0x14b5   :  { %v2178_v48 = vsub.f32 1.0, %v2177_v46  ;;  %vm2213_vm8 = vmor %vm2211_vm5, %vm2212_vm1 }
0x14b6   :  { %v2208_v49 = vsub.f32 1.0, %v2207_v47 }
0x14b7   :  { %v2179_v58 = vmul.f32 %v4796_v37, %v2178_v48 }
0x14b8   :  { %v2209_v42 = vmul.f32 %v4798_v14, %v2208_v49 }
0x14b9   :  { %v2180_v53 = vadd.f32 %v4796_v37, %v2179_v58 }
0x14ba   :  { %v2210_v22 = vadd.f32 %v4798_v14, %v2209_v42 }
0x14bb   :  { %v2184_v56 = vsel %vm2183_vm6, %v4796_v37, %v2180_v53 }
0x14bc   :  { %v2214_v26 = vsel %vm2213_vm8, %v4798_v14, %v2210_v22  ;;  %v2189_v9 = vsel %vm2186_vm11, %v2188_v60, %v2184_v56 }
0x14bd   :  { %v2219_v12 = vsel %vm2216_vm12, %v2218_v61, %v2214_v26 }
0x1502   :  { %v2256_v15 = vpop.permute.xlu1 %2255 }
0x1503   :  { %v2258_v2 = vpop.permute.xlu2 %2257  ;;  %v2261_v54 = vmul.f32 %v2256_v15, %v2189_v9 }
0x1504   :  { %v2262_v17 = vmul.f32 %v2258_v2, %v2219_v12 }
0x1505   :  { %v2263_v5 = vpack.c.bf16 %v2261_v54, %v2261_v54 }
0x1506   :  { %v2264_v16 = vpack.c.bf16 %v2262_v17, %v2262_v17 }
0x1507   :  { %v2267_v19 = vunpack.c.l.b16 %v2263_v5  ;;  %v5919_v3 = vsel %vm1583_vm9, %v3140_v20, %v2263_v5 }
0x1508   :  { %v2268_v33 = vunpack.c.l.b16 %v2264_v16  ;;  %v5922_v51 = vsel %vm1583_vm9, %v3141_v36, %v2264_v16 }
0x1509   :  { %v4393_v50 = vunpack.i.l.s16 %v2267_v19  ;;  %v2400_v19 = vrot.slane %v5899_v11, 7 }
0x150a   :  { %v4394_v27 = vunpack.i.l.s16 %v2268_v33 }
0x150b   :  { %v2273_v45 = vrot.slane %v4393_v50, 2 }
0x150c   :  { %v2274_v8 = vrot.slane %v4394_v27, 1 }
0x150e   :  { %v2275_v57 = vsel %vm370_vm3, %v2274_v8, %v2273_v45  ;;  %v2401_v8 = vrot.slane %v5904_v21, 7 }
0x150f   :  { %v2276_v40 = vpack.c.b16 %v2275_v57, %v2275_v57 }
0x1511   :  { %4395 = vmatmul.msk.bf16.vlgmr.msra.gmra.mxu2 %vm205_vm4, %v2276_v40  ;;  %4396 = vmatmul.msk.bf16.vlgmr.msra.gmra.mxu3 %vm205_vm4, %v2276_v40 }
0x1512   :  { %2997 = vmatpush.bf16.msra.mxu3 %v5696_v29  ;;  %2984 = vmatpush.bf16.msra.mxu2 %v5700_v63 }
0x1516   :  { %2998 = vmatpush.bf16.msra.mxu3 %v5702_v7  ;;  %2985 = vmatpush.bf16.msra.mxu2 %v5710_v34 }
0x151a   :  { %2999 = vmatpush.bf16.msra.mxu3 %v5712_v4  ;;  %2986 = vmatpush.bf16.msra.mxu2 %v5717_v35 }
0x151e   :  { %3000 = vmatpush.bf16.msra.mxu3 %v5722_v31  ;;  %2987 = vmatpush.bf16.msra.mxu2 %v5727_v43 }
0x1594   :  { %v2289_v0 = vpop.f32.mrf.mxu2  ;;  %v2302_v44 = vpop.f32.mrf.mxu3 }
0x1595   :  { %v2309_v28 = vrot.slane %v2302_v44, 5  ;;  %v2311_v18 = vrot.slane %v2302_v44, 6  ;;  %v2308_v31 = vrot.slane %v2289_v0, 5  ;;  %v2310_v43 = vrot.slane %v2289_v0, 6 }
0x1597   :  { %v5936_v29 = vadd.f32 %v2309_v28, %v5792_v24  ;;  %v5939_v63 = vadd.f32 %v2311_v18, %v5798_v25  ;;  %v2316_v41 = vadd.f32 %v2308_v31, %v5806_v1  ;;  %v2318_v55 = vadd.f32 %v2310_v43, %v5809_v39 }
0x1599   :  { %4799 = vtanh.f32 %v5936_v29  ;;  %v4397_v52 = vmul.f32 -1.442695, %v2316_v41  ;;  %v4399_v30 = vmul.f32 -1.442695, %v2318_v55  ;;  %v4398_v11 = vmul.f32 -1.442695, %v5936_v29 }
0x159a   :  { %4801 = vtanh.f32 %v5939_v63  ;;  %v4400_v28 = vmul.f32 -1.442695, %v5939_v63 }
0x159b   :  { %4803 = vpow2.f32 %v4397_v52 }
0x159c   :  { %v2291_v7 = vpop.f32.mrf.mxu2  ;;  %v2304_v34 = vpop.f32.mrf.mxu3  ;;  %4805 = vpow2.f32 %v4399_v30 }
0x159f   :  { %v4800_v4 = vpop.eup %4799 }
0x15a0   :  { %v4802_v35 = vpop.eup %4801  ;;  %2408 = vrot.lane.b32.xlu0 %v4800_v4, %s5181_s23 }
0x15a1   :  { %2410 = vrot.lane.b32.xlu1 %v4802_v35, %s5181_s23  ;;  %v4804_v37 = vpop.eup %4803 }
0x15a2   :  { %v4806_v14 = vpop.eup %4805  ;;  %v2332_v46 = vadd.f32 1.0, %v4804_v37 }
0x15a3   :  { %v2334_v47 = vadd.f32 1.0, %v4806_v14 }
0x15a4   :  { %4807 = vrcp.f32 %v2332_v46  ;;  %v2347_v56 = vand.u32 2147483648, %v2332_v46  ;;  %vm2341_vm14 = vweird.f32 %v2332_v46  ;;  %v2345_v60 = vand.u32 2147483647, %v2332_v46 }
0x15a5   :  { %4809 = vrcp.f32 %v2334_v47  ;;  %v2377_v26 = vand.u32 2147483648, %v2334_v47  ;;  %vm2371_vm15 = vweird.f32 %v2334_v47  ;;  %v2375_v61 = vand.u32 2147483647, %v2334_v47 }
0x15a6   :  { %v2348_v12 = vor.u32 1.1754944e-38, %v2347_v56  ;;  %vm2346_vm5 = vcmp.eq.f32.partialorder %v2345_v60, 8.507059e+37 }
0x15a7   :  { %v2378_v2 = vor.u32 1.1754944e-38, %v2377_v26  ;;  %vm2376_vm6 = vcmp.eq.f32.partialorder %v2375_v61, 8.507059e+37 }
0x15aa   :  { %v4808_v48 = vpop.eup %4807 }
0x15ab   :  { %v4810_v49 = vpop.eup %4809  ;;  %v2337_v58 = vmul.f32 %v4808_v48, %v2332_v46  ;;  %vm2342_vm9 = vweird.f32 %v4808_v48 }
0x15ac   :  { %v2367_v42 = vmul.f32 %v4810_v49, %v2334_v47  ;;  %vm2372_vm13 = vweird.f32 %v4810_v49  ;;  %vm2343_vm1 = vmor %vm2341_vm14, %vm2342_vm9 }
0x15ad   :  { %v2338_v53 = vsub.f32 1.0, %v2337_v58  ;;  %vm2373_vm2 = vmor %vm2371_vm15, %vm2372_vm13 }
0x15ae   :  { %v2368_v22 = vsub.f32 1.0, %v2367_v42 }
0x15af   :  { %v2339_v6 = vmul.f32 %v4808_v48, %v2338_v53 }
0x15b0   :  { %v2369_v38 = vmul.f32 %v4810_v49, %v2368_v22 }
0x15b1   :  { %v2340_v59 = vadd.f32 %v4808_v48, %v2339_v6 }
0x15b2   :  { %v2370_v13 = vadd.f32 %v4810_v49, %v2369_v38 }
0x15b3   :  { %v2344_v9 = vsel %vm2343_vm1, %v4808_v48, %v2340_v59 }
0x15b4   :  { %v2374_v15 = vsel %vm2373_vm2, %v4810_v49, %v2370_v13  ;;  %v2349_v17 = vsel %vm2346_vm5, %v2348_v12, %v2344_v9 }
0x15b5   :  { %v2379_v20 = vsel %vm2376_vm6, %v2378_v2, %v2374_v15  ;;  %v2404_v33 = vmul.f32 %v2400_v19, %v2349_v17 }
0x15b6   :  { %v2405_v57 = vmul.f32 %v2401_v8, %v2379_v20 }
0x1612   :  { %v2409_v54 = vpop.permute.xlu0 %2408 }
0x1613   :  { %v2411_v5 = vpop.permute.xlu1 %2410  ;;  %v2414_v16 = vmul.f32 %v2409_v54, %v2349_v17 }
0x1614   :  { %v2415_v36 = vmul.f32 %v2411_v5, %v2379_v20 }
0x1615   :  { %2418 = vrot.lane.b32.xlu2 %v2414_v16, %s5181_s23 }
0x1616   :  { %2420 = vrot.lane.b32.xlu0 %v2415_v36, %s5181_s23 }
0x166f   :  { %v2419_v50 = vpop.permute.xlu2 %2418 }
0x1670   :  { %v5950_v27 = vadd.f32 %v2419_v50, %v2404_v33 }
0x1672   :  { %4811 = vtanh.f32 %v5950_v27 }
0x1678   :  { %v4812_v45 = vpop.eup %4811 }
0x1679   :  { %2430 = vrot.lane.b32.xlu1 %v4812_v45, %s5181_s23 }
0x1688   :  { %v2421_v40 = vpop.permute.xlu0 %2420 }
0x1689   :  { %v5955_v0 = vadd.f32 %v2421_v40, %v2405_v57 }
0x168b   :  { %4813 = vtanh.f32 %v5955_v0 }
0x168c   :  { %4815 = vpow2.f32 %v4398_v11 }
0x168d   :  { %4817 = vpow2.f32 %v4400_v28 }
0x1691   :  { %v4814_v44 = vpop.eup %4813 }
0x1692   :  { %2432 = vrot.lane.b32.xlu2 %v4814_v44, %s5181_s23  ;;  %v4816_v18 = vpop.eup %4815 }
0x1693   :  { %v4818_v7 = vpop.eup %4817  ;;  %v2333_v34 = vadd.f32 1.0, %v4816_v18 }
0x1694   :  { %v2335_v4 = vadd.f32 1.0, %v4818_v7 }
0x1695   :  { %4819 = vrcp.f32 %v2333_v34  ;;  %v2362_v63 = vand.u32 2147483648, %v2333_v34  ;;  %vm2356_vm12 = vweird.f32 %v2333_v34  ;;  %v2360_v46 = vand.u32 2147483647, %v2333_v34 }
0x1696   :  { %4821 = vrcp.f32 %v2335_v4  ;;  %v2392_v14 = vand.u32 2147483648, %v2335_v4  ;;  %vm2386_vm9 = vweird.f32 %v2335_v4  ;;  %v2390_v47 = vand.u32 2147483647, %v2335_v4 }
0x1697   :  { %v2363_v58 = vor.u32 1.1754944e-38, %v2362_v63  ;;  %vm2361_vm15 = vcmp.eq.f32.partialorder %v2360_v46, 8.507059e+37 }
0x1698   :  { %v2393_v42 = vor.u32 1.1754944e-38, %v2392_v14  ;;  %vm2391_vm1 = vcmp.eq.f32.partialorder %v2390_v47, 8.507059e+37 }
0x169b   :  { %v4820_v21 = vpop.eup %4819 }
0x169c   :  { %v4822_v35 = vpop.eup %4821  ;;  %v2352_v31 = vmul.f32 %v4820_v21, %v2333_v34  ;;  %vm2357_vm8 = vweird.f32 %v4820_v21 }
0x169d   :  { %v2382_v43 = vmul.f32 %v4822_v35, %v2335_v4  ;;  %vm2387_vm11 = vweird.f32 %v4822_v35  ;;  %vm2358_vm13 = vmor %vm2356_vm12, %vm2357_vm8 }
0x169e   :  { %v2353_v41 = vsub.f32 1.0, %v2352_v31  ;;  %vm2388_vm14 = vmor %vm2386_vm9, %vm2387_vm11 }
0x169f   :  { %v2383_v55 = vsub.f32 1.0, %v2382_v43 }
0x16a0   :  { %v2354_v52 = vmul.f32 %v4820_v21, %v2353_v41 }
0x16a1   :  { %v2384_v30 = vmul.f32 %v4822_v35, %v2383_v55 }
0x16a2   :  { %v2355_v37 = vadd.f32 %v4820_v21, %v2354_v52 }
0x16a3   :  { %v2385_v29 = vadd.f32 %v4822_v35, %v2384_v30 }
0x16a4   :  { %v2359_v48 = vsel %vm2358_vm13, %v4820_v21, %v2355_v37 }
0x16a5   :  { %v2389_v49 = vsel %vm2388_vm14, %v4822_v35, %v2385_v29  ;;  %v2364_v53 = vsel %vm2361_vm15, %v2363_v58, %v2359_v48 }
0x16a6   :  { %v2394_v6 = vsel %vm2391_vm1, %v2393_v42, %v2389_v49 }
0x16eb   :  { %v2431_v22 = vpop.permute.xlu1 %2430 }
0x16ec   :  { %v2433_v38 = vpop.permute.xlu2 %2432  ;;  %v2436_v59 = vmul.f32 %v2431_v22, %v2364_v53 }
0x16ed   :  { %v2437_v13 = vmul.f32 %v2433_v38, %v2394_v6 }
0x16ee   :  { %v5961_v56 = vpack.c.bf16 %v2436_v59, %v2436_v59 }
0x16ef   :  { %v5963_v26 = vpack.c.bf16 %v2437_v13, %v2437_v13 }
0x16f0   :  { %v2442_v60 = vunpack.c.l.b16 %v5961_v56  ;;  %v3150_v61 = vsel %vm5512_vm7, %v5919_v3, %v5961_v56 }
0x16f1   :  { %v2443_v9 = vunpack.c.l.b16 %v5963_v26  ;;  %v3151_v15 = vsel %vm5512_vm7, %v5922_v51, %v5963_v26 }
0x16f2   :  { %v4401_v12 = vunpack.i.l.s16 %v2442_v60 }
0x16f3   :  { %v4402_v2 = vunpack.i.l.s16 %v2443_v9 }
0x16f4   :  { %v2448_v54 = vrot.slane %v4401_v12, 3 }
0x16f5   :  { %v2449_v17 = vrot.slane %v4402_v2, 2 }
0x16f7   :  { %v2450_v5 = vsel %vm370_vm3, %v2449_v17, %v2448_v54  ;;  %v2575_v54 = vrot.slane %v5950_v27, 7 }
0x16f8   :  { %v2451_v20 = vpack.c.b16 %v2450_v5, %v2450_v5 }
0x16fa   :  { %4403 = vmatmul.msk.bf16.vlgmr.msrb.gmra.mxu0 %vm205_vm4, %v2451_v20  ;;  %4404 = vmatmul.msk.bf16.vlgmr.msrb.gmra.mxu1 %vm205_vm4, %v2451_v20 }
0x1777   :  { %v2464_v16 = vpop.f32.mrf.mxu0  ;;  %v2477_v36 = vpop.f32.mrf.mxu1 }
0x1778   :  { %v2484_v19 = vrot.slane %v2477_v36, 4  ;;  %v2486_v33 = vrot.slane %v2477_v36, 5  ;;  %v2483_v11 = vrot.slane %v2464_v16, 4  ;;  %v2485_v28 = vrot.slane %v2464_v16, 5 }
0x1779   :  { %v2576_v36 = vrot.slane %v5955_v0, 7 }
0x177a   :  { %v5979_v50 = vadd.f32 %v2484_v19, %v5792_v24  ;;  %v5982_v45 = vadd.f32 %v2486_v33, %v5798_v25  ;;  %v2491_v18 = vadd.f32 %v2483_v11, %v5806_v1  ;;  %v2493_v7 = vadd.f32 %v2485_v28, %v5809_v39 }
0x177c   :  { %4823 = vtanh.f32 %v5979_v50  ;;  %v4405_v34 = vmul.f32 -1.442695, %v2491_v18  ;;  %v4407_v4 = vmul.f32 -1.442695, %v2493_v7  ;;  %v4406_v27 = vmul.f32 -1.442695, %v5979_v50 }
0x177d   :  { %4825 = vtanh.f32 %v5982_v45 }
0x177e   :  { %4827 = vpow2.f32 %v4405_v34 }
0x177f   :  { %v2466_v8 = vpop.f32.mrf.mxu0  ;;  %v2479_v57 = vpop.f32.mrf.mxu1  ;;  %4829 = vpow2.f32 %v4407_v4 }
0x1782   :  { %v4824_v40 = vpop.eup %4823 }
0x1783   :  { %v4826_v44 = vpop.eup %4825  ;;  %2583 = vrot.lane.b32.xlu0 %v4824_v40, %s5181_s23  ;;  %v4408_v40 = vmul.f32 -1.442695, %v5982_v45 }
0x1784   :  { %2585 = vrot.lane.b32.xlu1 %v4826_v44, %s5181_s23  ;;  %v4828_v21 = vpop.eup %4827 }
0x1785   :  { %v4830_v35 = vpop.eup %4829  ;;  %v2507_v31 = vadd.f32 1.0, %v4828_v21 }
0x1786   :  { %v2509_v43 = vadd.f32 1.0, %v4830_v35 }
0x1787   :  { %4831 = vrcp.f32 %v2507_v31  ;;  %v2522_v48 = vand.u32 2147483648, %v2507_v31  ;;  %vm2516_vm6 = vweird.f32 %v2507_v31  ;;  %v2520_v58 = vand.u32 2147483647, %v2507_v31 }
0x1788   :  { %4833 = vrcp.f32 %v2509_v43  ;;  %v2552_v49 = vand.u32 2147483648, %v2509_v43  ;;  %vm2546_vm8 = vweird.f32 %v2509_v43  ;;  %v2550_v42 = vand.u32 2147483647, %v2509_v43 }
0x1789   :  { %v2523_v6 = vor.u32 1.1754944e-38, %v2522_v48  ;;  %vm2521_vm9 = vcmp.eq.f32.partialorder %v2520_v58, 8.507059e+37 }
0x178a   :  { %v2553_v38 = vor.u32 1.1754944e-38, %v2552_v49  ;;  %vm2551_vm13 = vcmp.eq.f32.partialorder %v2550_v42, 8.507059e+37 }
0x178d   :  { %v4832_v41 = vpop.eup %4831 }
0x178e   :  { %v4834_v55 = vpop.eup %4833  ;;  %v2512_v52 = vmul.f32 %v4832_v41, %v2507_v31  ;;  %vm2517_vm2 = vweird.f32 %v4832_v41 }
0x178f   :  { %v2542_v30 = vmul.f32 %v4834_v55, %v2509_v43  ;;  %vm2547_vm5 = vweird.f32 %v4834_v55  ;;  %vm2518_vm11 = vmor %vm2516_vm6, %vm2517_vm2 }
0x1790   :  { %v2513_v37 = vsub.f32 1.0, %v2512_v52  ;;  %vm2548_vm12 = vmor %vm2546_vm8, %vm2547_vm5 }
0x1791   :  { %v2543_v29 = vsub.f32 1.0, %v2542_v30 }
0x1792   :  { %v2514_v63 = vmul.f32 %v4832_v41, %v2513_v37 }
0x1793   :  { %v2544_v14 = vmul.f32 %v4834_v55, %v2543_v29 }
0x1794   :  { %v2515_v46 = vadd.f32 %v4832_v41, %v2514_v63 }
0x1795   :  { %v2545_v47 = vadd.f32 %v4834_v55, %v2544_v14 }
0x1796   :  { %v2519_v53 = vsel %vm2518_vm11, %v4832_v41, %v2515_v46 }
0x1797   :  { %v2549_v22 = vsel %vm2548_vm12, %v4834_v55, %v2545_v47  ;;  %v2524_v13 = vsel %vm2521_vm9, %v2523_v6, %v2519_v53  ;;  %vm6337_vm12 = vcmask 1041408  }
0x1798   :  { %v2554_v9 = vsel %vm2551_vm13, %v2553_v38, %v2549_v22  ;;  %v2579_v17 = vmul.f32 %v2575_v54, %v2524_v13  ;;  %vm6338_vm9 = vmmov %vm6337_vm12 }
0x1799   :  { %v2580_v19 = vmul.f32 %v2576_v36, %v2554_v9 }
0x17f5   :  { %v2584_v59 = vpop.permute.xlu0 %2583 }
0x17f6   :  { %v2586_v60 = vpop.permute.xlu1 %2585  ;;  %v2589_v12 = vmul.f32 %v2584_v59, %v2524_v13 }
0x17f7   :  { %v2590_v2 = vmul.f32 %v2586_v60, %v2554_v9 }
0x17f8   :  { %2593 = vrot.lane.b32.xlu2 %v2589_v12, %s5181_s23 }
0x17f9   :  { %2595 = vrot.lane.b32.xlu0 %v2590_v2, %s5181_s23 }
0x1852   :  { %v2594_v5 = vpop.permute.xlu2 %2593 }
0x1853   :  { %v5993_v20 = vadd.f32 %v2594_v5, %v2579_v17 }
0x1855   :  { %4835 = vtanh.f32 %v5993_v20 }
0x185b   :  { %v4836_v16 = vpop.eup %4835 }
0x185c   :  { %2605 = vrot.lane.b32.xlu1 %v4836_v16, %s5181_s23 }
0x186b   :  { %v2596_v33 = vpop.permute.xlu0 %2595 }
0x186c   :  { %v5998_v8 = vadd.f32 %v2596_v33, %v2580_v19 }
0x186e   :  { %4837 = vtanh.f32 %v5998_v8 }
0x186f   :  { %4839 = vpow2.f32 %v4406_v27 }
0x1870   :  { %4841 = vpow2.f32 %v4408_v40 }
0x1874   :  { %v4838_v57 = vpop.eup %4837 }
0x1875   :  { %2607 = vrot.lane.b32.xlu2 %v4838_v57, %s5181_s23  ;;  %v4840_v44 = vpop.eup %4839 }
0x1876   :  { %v4842_v11 = vpop.eup %4841  ;;  %v2508_v28 = vadd.f32 1.0, %v4840_v44 }
0x1877   :  { %v2510_v18 = vadd.f32 1.0, %v4842_v11 }
0x1878   :  { %4843 = vrcp.f32 %v2508_v28  ;;  %v2537_v45 = vand.u32 2147483648, %v2508_v28  ;;  %vm2531_vm1 = vweird.f32 %v2508_v28  ;;  %v2535_v52 = vand.u32 2147483647, %v2508_v28 }
0x1879   :  { %4845 = vrcp.f32 %v2510_v18  ;;  %v2567_v55 = vand.u32 2147483648, %v2510_v18  ;;  %vm2561_vm2 = vweird.f32 %v2510_v18  ;;  %v2565_v30 = vand.u32 2147483647, %v2510_v18 }
0x187a   :  { %v2538_v63 = vor.u32 1.1754944e-38, %v2537_v45  ;;  %vm2536_vm8 = vcmp.eq.f32.partialorder %v2535_v52, 8.507059e+37 }
0x187b   :  { %v2568_v14 = vor.u32 1.1754944e-38, %v2567_v55  ;;  %vm2566_vm11 = vcmp.eq.f32.partialorder %v2565_v30, 8.507059e+37 }
0x187e   :  { %v4844_v0 = vpop.eup %4843 }
0x187f   :  { %v4846_v7 = vpop.eup %4845  ;;  %v2527_v34 = vmul.f32 %v4844_v0, %v2508_v28  ;;  %vm2532_vm14 = vweird.f32 %v4844_v0 }
0x1880   :  { %v2557_v4 = vmul.f32 %v4846_v7, %v2510_v18  ;;  %vm2562_vm15 = vweird.f32 %v4846_v7  ;;  %vm2533_vm5 = vmor %vm2531_vm1, %vm2532_vm14 }
0x1881   :  { %v2528_v21 = vsub.f32 1.0, %v2527_v34  ;;  %vm2563_vm6 = vmor %vm2561_vm2, %vm2562_vm15 }
0x1882   :  { %v2558_v35 = vsub.f32 1.0, %v2557_v4 }
0x1883   :  { %v2529_v31 = vmul.f32 %v4844_v0, %v2528_v21 }
0x1884   :  { %v2559_v43 = vmul.f32 %v4846_v7, %v2558_v35 }
0x1885   :  { %v2530_v41 = vadd.f32 %v4844_v0, %v2529_v31 }
0x1886   :  { %v2560_v50 = vadd.f32 %v4846_v7, %v2559_v43 }
0x1887   :  { %v2534_v37 = vsel %vm2533_vm5, %v4844_v0, %v2530_v41 }
0x1888   :  { %v2564_v29 = vsel %vm2563_vm6, %v4846_v7, %v2560_v50  ;;  %v2539_v46 = vsel %vm2536_vm8, %v2538_v63, %v2534_v37 }
0x1889   :  { %v2569_v48 = vsel %vm2566_vm11, %v2568_v14, %v2564_v29 }
0x18ce   :  { %v2606_v47 = vpop.permute.xlu1 %2605 }
0x18cf   :  { %v2608_v49 = vpop.permute.xlu2 %2607  ;;  %v2611_v58 = vmul.f32 %v2606_v47, %v2539_v46 }
0x18d0   :  { %v2612_v42 = vmul.f32 %v2608_v49, %v2569_v48 }
0x18d1   :  { %v2613_v53 = vpack.c.bf16 %v2611_v58, %v2611_v58 }
0x18d2   :  { %v2614_v22 = vpack.c.bf16 %v2612_v42, %v2612_v42 }
0x18d3   :  { %v2617_v6 = vunpack.c.l.b16 %v2613_v53  ;;  %v6010_v38 = vsel %vm6337_vm12, %v3150_v61, %v2613_v53 }
0x18d4   :  { %v2618_v59 = vunpack.c.l.b16 %v2614_v22  ;;  %v6018_v13 = vsel %vm6338_vm9, %v3151_v15, %v2614_v22  ;;  %v2750_v22 = vrot.slane %v5993_v20, 7 }
0x18d5   :  { %v4409_v60 = vunpack.i.l.s16 %v2617_v6 }
0x18d6   :  { %v4410_v9 = vunpack.i.l.s16 %v2618_v59 }
0x18d7   :  { %v2623_v12 = vrot.slane %v4409_v60, 4 }
0x18d8   :  { %v2624_v2 = vrot.slane %v4410_v9, 3 }
0x18da   :  { %v2625_v54 = vsel %vm370_vm3, %v2624_v2, %v2623_v12  ;;  %v2751_v12 = vrot.slane %v5998_v8, 7 }
0x18db   :  { %v2626_v17 = vpack.c.b16 %v2625_v54, %v2625_v54 }
0x18dd   :  { %4411 = vmatmul.msk.bf16.vlgmr.msrb.gmra.mxu2 %vm205_vm4, %v2626_v17  ;;  %4412 = vmatmul.msk.bf16.vlgmr.msrb.gmra.mxu3 %vm205_vm4, %v2626_v17 }
0x1960   :  { %v2639_v3 = vpop.f32.mrf.mxu2  ;;  %v2652_v56 = vpop.f32.mrf.mxu3 }
0x1961   :  { %v2659_v23 = vrot.slane %v2652_v56, 3  ;;  %v2661_v61 = vrot.slane %v2652_v56, 4  ;;  %v2658_v19 = vrot.slane %v2639_v3, 3  ;;  %v2660_v33 = vrot.slane %v2639_v3, 4 }
0x1963   :  { %v6024_v51 = vadd.f32 %v2659_v23, %v5792_v24  ;;  %v6027_v26 = vadd.f32 %v2661_v61, %v5798_v25  ;;  %v2666_v57 = vadd.f32 %v2658_v19, %v5806_v1  ;;  %v2668_v27 = vadd.f32 %v2660_v33, %v5809_v39 }
0x1965   :  { %4847 = vtanh.f32 %v6024_v51  ;;  %v4413_v40 = vmul.f32 -1.442695, %v2666_v57  ;;  %v4415_v44 = vmul.f32 -1.442695, %v2668_v27  ;;  %v4414_v20 = vmul.f32 -1.442695, %v6024_v51 }
0x1966   :  { %4849 = vtanh.f32 %v6027_v26  ;;  %v4416_v56 = vmul.f32 -1.442695, %v6027_v26 }
0x1967   :  { %4851 = vpow2.f32 %v4413_v40 }
0x1968   :  { %v2641_v15 = vpop.f32.mrf.mxu2  ;;  %v2654_v5 = vpop.f32.mrf.mxu3  ;;  %4853 = vpow2.f32 %v4415_v44 }
0x196b   :  { %v4848_v16 = vpop.eup %4847 }
0x196c   :  { %v4850_v36 = vpop.eup %4849  ;;  %2758 = vrot.lane.b32.xlu0 %v4848_v16, %s5181_s23 }
0x196d   :  { %2760 = vrot.lane.b32.xlu1 %v4850_v36, %s5181_s23  ;;  %v4852_v11 = vpop.eup %4851 }
0x196e   :  { %v4854_v28 = vpop.eup %4853  ;;  %v2682_v18 = vadd.f32 1.0, %v4852_v11 }
0x196f   :  { %v2684_v0 = vadd.f32 1.0, %v4854_v28 }
0x1970   :  { %4855 = vrcp.f32 %v2682_v18  ;;  %v2697_v55 = vand.u32 2147483648, %v2682_v18  ;;  %vm2691_vm14 = vweird.f32 %v2682_v18  ;;  %v2695_v30 = vand.u32 2147483647, %v2682_v18 }
0x1971   :  { %4857 = vrcp.f32 %v2684_v0  ;;  %v2727_v52 = vand.u32 2147483648, %v2684_v0  ;;  %vm2721_vm15 = vweird.f32 %v2684_v0  ;;  %v2725_v37 = vand.u32 2147483647, %v2684_v0 }
0x1972   :  { %v2698_v14 = vor.u32 1.1754944e-38, %v2697_v55  ;;  %vm2696_vm5 = vcmp.eq.f32.partialorder %v2695_v30, 8.507059e+37 }
0x1973   :  { %v2728_v46 = vor.u32 1.1754944e-38, %v2727_v52  ;;  %vm2726_vm6 = vcmp.eq.f32.partialorder %v2725_v37, 8.507059e+37 }
0x1976   :  { %v4856_v7 = vpop.eup %4855 }
0x1977   :  { %v4858_v34 = vpop.eup %4857  ;;  %v2687_v4 = vmul.f32 %v4856_v7, %v2682_v18  ;;  %vm2692_vm7 = vweird.f32 %v4856_v7 }
0x1978   :  { %v2717_v21 = vmul.f32 %v4858_v34, %v2684_v0  ;;  %vm2722_vm13 = vweird.f32 %v4858_v34  ;;  %vm2693_vm1 = vmor %vm2691_vm14, %vm2692_vm7 }
0x1979   :  { %v2688_v35 = vsub.f32 1.0, %v2687_v4  ;;  %vm2723_vm2 = vmor %vm2721_vm15, %vm2722_vm13 }
0x197a   :  { %v2718_v31 = vsub.f32 1.0, %v2717_v21 }
0x197b   :  { %v2689_v43 = vmul.f32 %v4856_v7, %v2688_v35 }
0x197c   :  { %v2719_v41 = vmul.f32 %v4858_v34, %v2718_v31 }
0x197d   :  { %v2690_v50 = vadd.f32 %v4856_v7, %v2689_v43 }
0x197e   :  { %v2720_v45 = vadd.f32 %v4858_v34, %v2719_v41 }
0x197f   :  { %v2694_v29 = vsel %vm2693_vm1, %v4856_v7, %v2690_v50 }
0x1980   :  { %v2724_v63 = vsel %vm2723_vm2, %v4858_v34, %v2720_v45  ;;  %v2699_v48 = vsel %vm2696_vm5, %v2698_v14, %v2694_v29 }
0x1981   :  { %v2729_v58 = vsel %vm2726_vm6, %v2728_v46, %v2724_v63  ;;  %v2754_v6 = vmul.f32 %v2750_v22, %v2699_v48 }
0x1982   :  { %v2755_v2 = vmul.f32 %v2751_v12, %v2729_v58 }
0x19de   :  { %v2759_v47 = vpop.permute.xlu0 %2758 }
0x19df   :  { %v2761_v49 = vpop.permute.xlu1 %2760  ;;  %v2764_v42 = vmul.f32 %v2759_v47, %v2699_v48 }
0x19e0   :  { %v2765_v53 = vmul.f32 %v2761_v49, %v2729_v58 }
0x19e1   :  { %2768 = vrot.lane.b32.xlu2 %v2764_v42, %s5181_s23 }
0x19e2   :  { %2770 = vrot.lane.b32.xlu0 %v2765_v53, %s5181_s23 }
0x1a3b   :  { %v2769_v59 = vpop.permute.xlu2 %2768 }
0x1a3c   :  { %v6038_v60 = vadd.f32 %v2769_v59, %v2754_v6 }
0x1a3e   :  { %4859 = vtanh.f32 %v6038_v60 }
0x1a44   :  { %v4860_v9 = vpop.eup %4859 }
0x1a45   :  { %2780 = vrot.lane.b32.xlu1 %v4860_v9, %s5181_s23 }
0x1a54   :  { %v2771_v54 = vpop.permute.xlu0 %2770 }
0x1a55   :  { %v6043_v17 = vadd.f32 %v2771_v54, %v2755_v2 }
0x1a57   :  { %4861 = vtanh.f32 %v6043_v17 }
0x1a58   :  { %4863 = vpow2.f32 %v4414_v20 }
0x1a59   :  { %4865 = vpow2.f32 %v4416_v56 }
0x1a5d   :  { %v4862_v3 = vpop.eup %4861 }
0x1a5e   :  { %2782 = vrot.lane.b32.xlu2 %v4862_v3, %s5181_s23  ;;  %v4864_v23 = vpop.eup %4863 }
0x1a5f   :  { %v4866_v61 = vpop.eup %4865  ;;  %v2683_v15 = vadd.f32 1.0, %v4864_v23 }
0x1a60   :  { %v2685_v5 = vadd.f32 1.0, %v4866_v61 }
0x1a61   :  { %4867 = vrcp.f32 %v2683_v15  ;;  %v2712_v26 = vand.u32 2147483648, %v2683_v15  ;;  %vm2706_vm12 = vweird.f32 %v2683_v15  ;;  %v2710_v28 = vand.u32 2147483647, %v2683_v15 }
0x1a62   :  { %4869 = vrcp.f32 %v2685_v5  ;;  %v2742_v11 = vand.u32 2147483648, %v2685_v5  ;;  %vm2736_vm9 = vweird.f32 %v2685_v5  ;;  %v2740_v18 = vand.u32 2147483647, %v2685_v5 }
0x1a63   :  { %v2713_v34 = vor.u32 1.1754944e-38, %v2712_v26  ;;  %vm2711_vm14 = vcmp.eq.f32.partialorder %v2710_v28, 8.507059e+37 }
0x1a64   :  { %v2743_v4 = vor.u32 1.1754944e-38, %v2742_v11  ;;  %vm2741_vm15 = vcmp.eq.f32.partialorder %v2740_v18, 8.507059e+37 }
0x1a67   :  { %v4868_v8 = vpop.eup %4867 }
0x1a68   :  { %v4870_v16 = vpop.eup %4869  ;;  %v2702_v36 = vmul.f32 %v4868_v8, %v2683_v15  ;;  %vm2707_vm8 = vweird.f32 %v4868_v8 }
0x1a69   :  { %v2732_v19 = vmul.f32 %v4870_v16, %v2685_v5  ;;  %vm2737_vm11 = vweird.f32 %v4870_v16  ;;  %vm2708_vm7 = vmor %vm2706_vm12, %vm2707_vm8 }
0x1a6a   :  { %v2703_v33 = vsub.f32 1.0, %v2702_v36  ;;  %vm2738_vm13 = vmor %vm2736_vm9, %vm2737_vm11 }
0x1a6b   :  { %v2733_v57 = vsub.f32 1.0, %v2732_v19 }
0x1a6c   :  { %v2704_v27 = vmul.f32 %v4868_v8, %v2703_v33 }
0x1a6d   :  { %v2734_v40 = vmul.f32 %v4870_v16, %v2733_v57 }
0x1a6e   :  { %v2705_v44 = vadd.f32 %v4868_v8, %v2704_v27 }
0x1a6f   :  { %v2735_v51 = vadd.f32 %v4870_v16, %v2734_v40 }
0x1a70   :  { %v2709_v0 = vsel %vm2708_vm7, %v4868_v8, %v2705_v44 }
0x1a71   :  { %v2739_v7 = vsel %vm2738_vm13, %v4870_v16, %v2735_v51  ;;  %v2714_v21 = vsel %vm2711_vm14, %v2713_v34, %v2709_v0 }
0x1a72   :  { %v2744_v31 = vsel %vm2741_vm15, %v2743_v4, %v2739_v7 }
0x1ab7   :  { %v2781_v35 = vpop.permute.xlu1 %2780 }
0x1ab8   :  { %v2783_v43 = vpop.permute.xlu2 %2782  ;;  %v2786_v41 = vmul.f32 %v2781_v35, %v2714_v21 }
0x1ab9   :  { %v2787_v50 = vmul.f32 %v2783_v43, %v2744_v31 }
0x1aba   :  { %v6049_v45 = vpack.c.bf16 %v2786_v41, %v2786_v41 }
0x1abb   :  { %v6051_v55 = vpack.c.bf16 %v2787_v50, %v2787_v50 }
0x1abc   :  { %v2792_v52 = vunpack.c.l.b16 %v6049_v45  ;;  %v3160_v30 = vsel %vm5605_vm0, %v6010_v38, %v6049_v45 }
0x1abd   :  { %v2793_v37 = vunpack.c.l.b16 %v6051_v55  ;;  %v3161_v29 = vsel %vm5605_vm0, %v6018_v13, %v6051_v55 }
0x1abe   :  { %v4417_v63 = vunpack.i.l.s16 %v2792_v52 }
0x1abf   :  { %v4418_v14 = vunpack.i.l.s16 %v2793_v37 }
0x1ac0   :  { %v2798_v46 = vrot.slane %v4417_v63, 5 }
0x1ac1   :  { %v2799_v47 = vrot.slane %v4418_v14, 4  ;;  %v2925_v14 = vrot.slane %v6038_v60, 7 }
0x1ac3   :  { %v2800_v48 = vsel %vm370_vm3, %v2799_v47, %v2798_v46 }
0x1ac4   :  { %v2801_v49 = vpack.c.b16 %v2800_v48, %v2800_v48 }
0x1ac6   :  { %4419 = vmatmul.msk.bf16.vlgmr.msra.gmra.mxu0 %vm205_vm4, %v2801_v49  ;;  %4420 = vmatmul.msk.bf16.vlgmr.msra.gmra.mxu1 %vm205_vm4, %v2801_v49 }
0x1b43   :  { %v2814_v58 = vpop.f32.mrf.mxu0  ;;  %v2827_v42 = vpop.f32.mrf.mxu1 }
0x1b44   :  { %v2834_v53 = vrot.slane %v2827_v42, 2  ;;  %v2836_v22 = vrot.slane %v2827_v42, 3  ;;  %v2833_v3 = vrot.slane %v2814_v58, 2  ;;  %v2835_v20 = vrot.slane %v2814_v58, 3 }
0x1b45   :  { %v2926_v58 = vrot.slane %v6043_v17, 7 }
0x1b46   :  { %v6067_v6 = vadd.f32 %v2834_v53, %v5792_v24  ;;  %v6070_v59 = vadd.f32 %v2836_v22, %v5798_v25  ;;  %v2841_v56 = vadd.f32 %v2833_v3, %v5806_v1  ;;  %v2843_v23 = vadd.f32 %v2835_v20, %v5809_v39 }
0x1b48   :  { %4871 = vtanh.f32 %v6067_v6  ;;  %v4421_v61 = vmul.f32 -1.442695, %v2841_v56  ;;  %v4423_v15 = vmul.f32 -1.442695, %v2843_v23  ;;  %v4422_v60 = vmul.f32 -1.442695, %v6067_v6 }
0x1b49   :  { %4873 = vtanh.f32 %v6070_v59 }
0x1b4a   :  { %4875 = vpow2.f32 %v4421_v61 }
0x1b4b   :  { %v2816_v9 = vpop.f32.mrf.mxu0  ;;  %v2829_v12 = vpop.f32.mrf.mxu1  ;;  %4877 = vpow2.f32 %v4423_v15 }
0x1b4c   :  { %v4424_v12 = vmul.f32 -1.442695, %v6070_v59 }
0x1b4e   :  { %v4872_v2 = vpop.eup %4871 }
0x1b4f   :  { %v4874_v54 = vpop.eup %4873  ;;  %2933 = vrot.lane.b32.xlu0 %v4872_v2, %s5181_s23 }
0x1b50   :  { %2935 = vrot.lane.b32.xlu1 %v4874_v54, %s5181_s23  ;;  %v4876_v5 = vpop.eup %4875 }
0x1b51   :  { %v4878_v8 = vpop.eup %4877  ;;  %v2857_v16 = vadd.f32 1.0, %v4876_v5 }
0x1b52   :  { %v2859_v36 = vadd.f32 1.0, %v4878_v8 }
0x1b53   :  { %4879 = vrcp.f32 %v2857_v16  ;;  %v2872_v18 = vand.u32 2147483648, %v2857_v16  ;;  %vm2866_vm5 = vweird.f32 %v2857_v16  ;;  %v2870_v7 = vand.u32 2147483647, %v2857_v16 }
0x1b54   :  { %4881 = vrcp.f32 %v2859_v36  ;;  %v2902_v0 = vand.u32 2147483648, %v2859_v36  ;;  %vm2896_vm6 = vweird.f32 %v2859_v36  ;;  %v2900_v34 = vand.u32 2147483647, %v2859_v36 }
0x1b55   :  { %v2873_v35 = vor.u32 1.1754944e-38, %v2872_v18  ;;  %vm2871_vm12 = vcmp.eq.f32.partialorder %v2870_v7, 8.507059e+37 }
0x1b56   :  { %v2903_v31 = vor.u32 1.1754944e-38, %v2902_v0  ;;  %vm2901_vm9 = vcmp.eq.f32.partialorder %v2900_v34, 8.507059e+37 }
0x1b59   :  { %v4880_v19 = vpop.eup %4879 }
0x1b5a   :  { %v4882_v33 = vpop.eup %4881  ;;  %v2862_v57 = vmul.f32 %v4880_v19, %v2857_v16  ;;  %vm2867_vm1 = vweird.f32 %v4880_v19 }
0x1b5b   :  { %v2892_v27 = vmul.f32 %v4882_v33, %v2859_v36  ;;  %vm2897_vm2 = vweird.f32 %v4882_v33  ;;  %vm2868_vm8 = vmor %vm2866_vm5, %vm2867_vm1 }
0x1b5c   :  { %v2863_v40 = vsub.f32 1.0, %v2862_v57  ;;  %vm2898_vm11 = vmor %vm2896_vm6, %vm2897_vm2 }
0x1b5d   :  { %v2893_v44 = vsub.f32 1.0, %v2892_v27 }
0x1b5e   :  { %v2864_v51 = vmul.f32 %v4880_v19, %v2863_v40 }
0x1b5f   :  { %v2894_v26 = vmul.f32 %v4882_v33, %v2893_v44 }
0x1b60   :  { %v2865_v11 = vadd.f32 %v4880_v19, %v2864_v51 }
0x1b61   :  { %v2895_v28 = vadd.f32 %v4882_v33, %v2894_v26 }
0x1b62   :  { %v2869_v4 = vsel %vm2868_vm8, %v4880_v19, %v2865_v11  ;;  %vm6339_vm8 = vcmask 1042432  }
0x1b63   :  { %v2899_v21 = vsel %vm2898_vm11, %v4882_v33, %v2895_v28  ;;  %v2874_v41 = vsel %vm2871_vm12, %v2873_v35, %v2869_v4  ;;  %vm6340_vm11 = vmmov %vm6339_vm8 }
0x1b64   :  { %v2904_v52 = vsel %vm2901_vm9, %v2903_v31, %v2899_v21  ;;  %v2929_v46 = vmul.f32 %v2925_v14, %v2874_v41 }
0x1b65   :  { %v2930_v42 = vmul.f32 %v2926_v58, %v2904_v52 }
0x1bc1   :  { %v2934_v43 = vpop.permute.xlu0 %2933 }
0x1bc2   :  { %v2936_v50 = vpop.permute.xlu1 %2935  ;;  %v2939_v37 = vmul.f32 %v2934_v43, %v2874_v41 }
0x1bc3   :  { %v2940_v63 = vmul.f32 %v2936_v50, %v2904_v52 }
0x1bc4   :  { %2943 = vrot.lane.b32.xlu2 %v2939_v37, %s5181_s23 }
0x1bc5   :  { %2945 = vrot.lane.b32.xlu0 %v2940_v63, %s5181_s23 }
0x1c1e   :  { %v2944_v47 = vpop.permute.xlu2 %2943 }
0x1c1f   :  { %v6081_v48 = vadd.f32 %v2944_v47, %v2929_v46 }
0x1c21   :  { %4883 = vtanh.f32 %v6081_v48 }
0x1c27   :  { %v4884_v49 = vpop.eup %4883 }
0x1c28   :  { %2955 = vrot.lane.b32.xlu1 %v4884_v49, %s5181_s23 }
0x1c37   :  { %v2946_v53 = vpop.permute.xlu0 %2945 }
0x1c38   :  { %v6086_v22 = vadd.f32 %v2946_v53, %v2930_v42 }
0x1c3a   :  { %4885 = vtanh.f32 %v6086_v22 }
0x1c3b   :  { %4887 = vpow2.f32 %v4422_v60 }
0x1c3c   :  { %4889 = vpow2.f32 %v4424_v12 }
0x1c40   :  { %v4886_v9 = vpop.eup %4885 }
0x1c41   :  { %2957 = vrot.lane.b32.xlu2 %v4886_v9, %s5181_s23  ;;  %v4888_v2 = vpop.eup %4887 }
0x1c42   :  { %v4890_v54 = vpop.eup %4889  ;;  %v2858_v3 = vadd.f32 1.0, %v4888_v2 }
0x1c43   :  { %v2860_v20 = vadd.f32 1.0, %v4890_v54 }
0x1c44   :  { %4891 = vrcp.f32 %v2858_v3  ;;  %v2887_v59 = vand.u32 2147483648, %v2858_v3  ;;  %vm2881_vm14 = vweird.f32 %v2858_v3  ;;  %v2885_v33 = vand.u32 2147483647, %v2858_v3 }
0x1c45   :  { %4893 = vrcp.f32 %v2860_v20  ;;  %v2917_v19 = vand.u32 2147483648, %v2860_v20  ;;  %vm2911_vm15 = vweird.f32 %v2860_v20  ;;  %v2915_v57 = vand.u32 2147483647, %v2860_v20 }
0x1c46   :  { %v2888_v44 = vor.u32 1.1754944e-38, %v2887_v59  ;;  %vm2886_vm5 = vcmp.eq.f32.partialorder %v2885_v33, 8.507059e+37 }
0x1c47   :  { %v2918_v51 = vor.u32 1.1754944e-38, %v2917_v19  ;;  %vm2916_vm6 = vcmp.eq.f32.partialorder %v2915_v57, 8.507059e+37 }
0x1c4a   :  { %v4892_v17 = vpop.eup %4891 }
0x1c4b   :  { %v4894_v56 = vpop.eup %4893  ;;  %v2877_v23 = vmul.f32 %v4892_v17, %v2858_v3  ;;  %vm2882_vm7 = vweird.f32 %v4892_v17 }
0x1c4c   :  { %v2907_v61 = vmul.f32 %v4894_v56, %v2860_v20  ;;  %vm2912_vm13 = vweird.f32 %v4894_v56  ;;  %vm2883_vm1 = vmor %vm2881_vm14, %vm2882_vm7 }
0x1c4d   :  { %v2878_v15 = vsub.f32 1.0, %v2877_v23  ;;  %vm2913_vm2 = vmor %vm2911_vm15, %vm2912_vm13 }
0x1c4e   :  { %v2908_v5 = vsub.f32 1.0, %v2907_v61 }
0x1c4f   :  { %v2879_v8 = vmul.f32 %v4892_v17, %v2878_v15 }
0x1c50   :  { %v2909_v16 = vmul.f32 %v4894_v56, %v2908_v5 }
0x1c51   :  { %v2880_v36 = vadd.f32 %v4892_v17, %v2879_v8 }
0x1c52   :  { %v2910_v6 = vadd.f32 %v4894_v56, %v2909_v16 }
0x1c53   :  { %v2884_v27 = vsel %vm2883_vm1, %v4892_v17, %v2880_v36 }
0x1c54   :  { %v2914_v40 = vsel %vm2913_vm2, %v4894_v56, %v2910_v6  ;;  %v2889_v26 = vsel %vm2886_vm5, %v2888_v44, %v2884_v27 }
0x1c55   :  { %v2919_v28 = vsel %vm2916_vm6, %v2918_v51, %v2914_v40 }
0x1c9a   :  { %v2956_v11 = vpop.permute.xlu1 %2955 }
0x1c9b   :  { %v2958_v18 = vpop.permute.xlu2 %2957  ;;  %v2961_v0 = vmul.f32 %v2956_v11, %v2889_v26 }
0x1c9c   :  { %v2962_v7 = vmul.f32 %v2958_v18, %v2919_v28  ;;  %v3100_v28 = vrot.slane %v6081_v48, 7 }
0x1c9d   :  { %v2963_v34 = vpack.c.bf16 %v2961_v0, %v2961_v0 }
0x1c9e   :  { %v2964_v4 = vpack.c.bf16 %v2962_v7, %v2962_v7 }
0x1c9f   :  { %v2967_v21 = vunpack.c.l.b16 %v2963_v34  ;;  %v6098_v35 = vsel %vm6339_vm8, %v3160_v30, %v2963_v34  ;;  %v4517_v34 = vld [vmem:[%s6321_s7 + $0x18] sm:$0xff] }
0x1ca0   :  { %v2968_v31 = vunpack.c.l.b16 %v2964_v4  ;;  %v6106_v43 = vsel %vm6340_vm11, %v3161_v29, %v2964_v4  ;;  %3220 = vmatpush.bf16.msrb.mxu0 %v4517_v34  ;;  %v4516_v4 = vld [vmem:[%s6321_s7 + $0x10] sm:$0xff] }
0x1ca1   :  { %v4425_v41 = vunpack.i.l.s16 %v2967_v21 }
0x1ca2   :  { %v4426_v50 = vunpack.i.l.s16 %v2968_v31  ;;  %v3101_v31 = vrot.slane %v6086_v22, 7  ;;  %v4515_v22 = vld [vmem:[%s6321_s7 + $0x8] sm:$0xff] }
0x1ca3   :  { %v2973_v52 = vrot.slane %v4425_v41, 6 }
0x1ca4   :  { %v2974_v37 = vrot.slane %v4426_v50, 5  ;;  %3221 = vmatpush.bf16.msrb.mxu0 %v4516_v4 }
0x1ca6   :  { %v2975_v63 = vsel %vm370_vm3, %v2974_v37, %v2973_v52 }
0x1ca7   :  { %v2976_v14 = vpack.c.b16 %v2975_v63, %v2975_v63 }
0x1ca8   :  { %3222 = vmatpush.bf16.msrb.mxu0 %v4515_v22 }
0x1ca9   :  { %4427 = vmatmul.msk.bf16.vlgmr.msra.gmra.mxu2 %vm205_vm4, %v2976_v14  ;;  %4428 = vmatmul.msk.bf16.vlgmr.msra.gmra.mxu3 %vm205_vm4, %v2976_v14 }
0x1d2c   :  { %v2989_v38 = vpop.f32.mrf.mxu2  ;;  %v3002_v45 = vpop.f32.mrf.mxu3 }
0x1d2d   :  { %v3009_v10 = vrot.slane %v3002_v45, 1  ;;  %v3011_v30 = vrot.slane %v3002_v45, 2  ;;  %v3008_v58 = vrot.slane %v2989_v38, 1  ;;  %v3010_v42 = vrot.slane %v2989_v38, 2 }
0x1d2f   :  { %v6112_v13 = vadd.f32 %v3009_v10, %v5792_v24  ;;  %v6115_v55 = vadd.f32 %v3011_v30, %v5798_v25  ;;  %v3016_v24 = vadd.f32 %v3008_v58, %v5806_v1  ;;  %v3018_v53 = vadd.f32 %v3010_v42, %v5809_v39  ;;  %v4519_v30 = vld [vmem:[#allocation8 + $0x8] sm:$0xff] }
0x1d30   :  { %3255 = vmatpush.bf16.msrb.mxu1 %v4519_v30  ;;  %3362 = vmatpush.bf16.msrb.mxu2 %v4519_v30 }
0x1d31   :  { %4895 = vtanh.f32 %v6112_v13  ;;  %v4429_v25 = vmul.f32 -1.442695, %v3016_v24  ;;  %v4431_v9 = vmul.f32 -1.442695, %v3018_v53  ;;  %v4430_v37 = vmul.f32 -1.442695, %v6112_v13  ;;  %3475 = vmatpush.bf16.msrb.mxu3 %v4519_v30 }
0x1d32   :  { %4897 = vtanh.f32 %v6115_v55  ;;  %v4432_v63 = vmul.f32 -1.442695, %v6115_v55  ;;  %v4514_v13 = vld [vmem:[%s6321_s7] sm:$0xff]  ;;  %v4518_v55 = vld [vmem:[#allocation8] sm:$0xff] }
0x1d33   :  { %4899 = vpow2.f32 %v4429_v25  ;;  %3223 = vmatpush.bf16.msrb.mxu0 %v4514_v13 }
0x1d34   :  { %v2991_v29 = vpop.f32.mrf.mxu2  ;;  %v3004_v46 = vpop.f32.mrf.mxu3  ;;  %4901 = vpow2.f32 %v4431_v9  ;;  %3256 = vmatpush.bf16.msrb.mxu1 %v4518_v55  ;;  %3363 = vmatpush.bf16.msrb.mxu2 %v4518_v55 }
0x1d35   :  { %3476 = vmatpush.bf16.msrb.mxu3 %v4518_v55 }
0x1d37   :  { %v4896_v47 = vpop.eup %4895  ;;  %3590 = vmatpush.bf16.msra.mxu0 %v4519_v30  ;;  %3257 = vmatmul.bf16.vlgmr.msrb.gmra.mxu1 %v5183_v32 }
0x1d38   :  { %v4898_v49 = vpop.eup %4897  ;;  %3108 = vrot.lane.b32.xlu0 %v4896_v47, %s5181_s23  ;;  %3705 = vmatpush.bf16.msra.mxu1 %v4519_v30 }
0x1d39   :  { %3110 = vrot.lane.b32.xlu1 %v4898_v49, %s5181_s23  ;;  %v4900_v60 = vpop.eup %4899  ;;  %3820 = vmatpush.bf16.msra.mxu2 %v4519_v30 }
0x1d3a   :  { %v4902_v12 = vpop.eup %4901  ;;  %v3032_v2 = vadd.f32 1.0, %v4900_v60  ;;  %3935 = vmatpush.bf16.msra.mxu3 %v4519_v30 }
0x1d3b   :  { %v3034_v54 = vadd.f32 1.0, %v4902_v12  ;;  %3591 = vmatpush.bf16.msra.mxu0 %v4518_v55 }
0x1d3c   :  { %4903 = vrcp.f32 %v3032_v2  ;;  %v3047_v8 = vand.u32 2147483648, %v3032_v2  ;;  %vm3041_vm9 = vweird.f32 %v3032_v2  ;;  %v3045_v36 = vand.u32 2147483647, %v3032_v2  ;;  %3706 = vmatpush.bf16.msra.mxu1 %v4518_v55 }
0x1d3d   :  { %4905 = vrcp.f32 %v3034_v54  ;;  %v3077_v16 = vand.u32 2147483648, %v3034_v54  ;;  %vm3071_vm7 = vweird.f32 %v3034_v54  ;;  %v3075_v6 = vand.u32 2147483647, %v3034_v54  ;;  %3821 = vmatpush.bf16.msra.mxu2 %v4518_v55 }
0x1d3e   :  { %v3048_v33 = vor.u32 1.1754944e-38, %v3047_v8  ;;  %vm3046_vm15 = vcmp.eq.f32.partialorder %v3045_v36, 8.507059e+37  ;;  %3936 = vmatpush.bf16.msra.mxu3 %v4518_v55 }
0x1d3f   :  { %v3078_v57 = vor.u32 1.1754944e-38, %v3077_v16  ;;  %vm3076_vm1 = vcmp.eq.f32.partialorder %v3075_v6, 8.507059e+37 }
0x1d42   :  { %v4904_v3 = vpop.eup %4903 }
0x1d43   :  { %v4906_v20 = vpop.eup %4905  ;;  %v3037_v17 = vmul.f32 %v4904_v3, %v3032_v2  ;;  %vm3042_vm0 = vweird.f32 %v4904_v3 }
0x1d44   :  { %v3067_v56 = vmul.f32 %v4906_v20, %v3034_v54  ;;  %vm3072_vm12 = vweird.f32 %v4906_v20  ;;  %vm3043_vm13 = vmor %vm3041_vm9, %vm3042_vm0 }
0x1d45   :  { %v3038_v23 = vsub.f32 1.0, %v3037_v17  ;;  %vm3073_vm14 = vmor %vm3071_vm7, %vm3072_vm12 }
0x1d46   :  { %v3068_v61 = vsub.f32 1.0, %v3067_v56 }
0x1d47   :  { %v3039_v15 = vmul.f32 %v4904_v3, %v3038_v23 }
0x1d48   :  { %v3069_v1 = vmul.f32 %v4906_v20, %v3068_v61 }
0x1d49   :  { %v3040_v5 = vadd.f32 %v4904_v3, %v3039_v15 }
0x1d4a   :  { %v3070_v39 = vadd.f32 %v4906_v20, %v3069_v1 }
0x1d4b   :  { %v3044_v59 = vsel %vm3043_vm13, %v4904_v3, %v3040_v5 }
0x1d4c   :  { %v3074_v19 = vsel %vm3073_vm14, %v4906_v20, %v3070_v39  ;;  %v3049_v40 = vsel %vm3046_vm15, %v3048_v33, %v3044_v59 }
0x1d4d   :  { %v3079_v51 = vsel %vm3076_vm1, %v3078_v57, %v3074_v19  ;;  %v3104_v18 = vmul.f32 %v3100_v28, %v3049_v40 }
0x1d4e   :  { %v3105_v48 = vmul.f32 %v3101_v31, %v3079_v51 }
0x1daa   :  { %v3109_v27 = vpop.permute.xlu0 %3108 }
0x1dab   :  { %v3111_v44 = vpop.permute.xlu1 %3110  ;;  %v3114_v26 = vmul.f32 %v3109_v27, %v3049_v40  ;;  %v4533_v27 = vld [vmem:[%s6323_s9] ss:$0 sm:$0xff] }
0x1dac   :  { %v3115_v11 = vmul.f32 %v3111_v44, %v3079_v51 }
0x1dad   :  { %3118 = vrot.lane.b32.xlu2 %v3114_v26, %s5181_s23 }
0x1dae   :  { %3120 = vrot.lane.b32.xlu0 %v3115_v11, %s5181_s23 }
0x1db4   :  { %v3258_v33 = vpop.f32.mrf.mxu1 }
0x1db5   :  { %v3263_v62 = vrot.slane %v3258_v33, 1 }
0x1dbc   :  { %v3260_v57 = vpop.f32.mrf.mxu1 }
0x1e07   :  { %v3119_v0 = vpop.permute.xlu2 %3118 }
0x1e08   :  { %v3124_v7 = vadd.f32 %v3119_v0, %v3104_v18 }
0x1e0a   :  { %4907 = vtanh.f32 %v3124_v7 }
0x1e10   :  { %v4908_v21 = vpop.eup %4907 }
0x1e11   :  { %3130 = vrot.lane.b32.xlu1 %v4908_v21, %s5181_s23 }
0x1e20   :  { %v3121_v41 = vpop.permute.xlu0 %3120 }
0x1e21   :  { %v3125_v50 = vadd.f32 %v3121_v41, %v3105_v48 }
0x1e23   :  { %4909 = vtanh.f32 %v3125_v50 }
0x1e24   :  { %4911 = vpow2.f32 %v4430_v37 }
0x1e25   :  { %4913 = vpow2.f32 %v4432_v63 }
0x1e29   :  { %v4910_v52 = vpop.eup %4909 }
0x1e2a   :  { %3132 = vrot.lane.b32.xlu2 %v4910_v52, %s5181_s23  ;;  %v4912_v14 = vpop.eup %4911 }
0x1e2b   :  { %v4914_v38 = vpop.eup %4913  ;;  %v3033_v45 = vadd.f32 1.0, %v4912_v14 }
0x1e2c   :  { %v3035_v10 = vadd.f32 1.0, %v4914_v38 }
0x1e2d   :  { %4915 = vrcp.f32 %v3033_v45  ;;  %v3062_v60 = vand.u32 2147483648, %v3033_v45  ;;  %vm3056_vm6 = vweird.f32 %v3033_v45  ;;  %v3060_v2 = vand.u32 2147483647, %v3033_v45 }
0x1e2e   :  { %4917 = vrcp.f32 %v3035_v10  ;;  %v3092_v12 = vand.u32 2147483648, %v3035_v10  ;;  %vm3086_vm8 = vweird.f32 %v3035_v10  ;;  %v3090_v32 = vand.u32 2147483647, %v3035_v10 }
0x1e2f   :  { %v3063_v20 = vor.u32 1.1754944e-38, %v3062_v60  ;;  %vm3061_vm12 = vcmp.eq.f32.partialorder %v3060_v2, 8.507059e+37 }
0x1e30   :  { %v3093_v17 = vor.u32 1.1754944e-38, %v3092_v12  ;;  %vm3091_vm9 = vcmp.eq.f32.partialorder %v3090_v32, 8.507059e+37 }
0x1e33   :  { %v4916_v29 = vpop.eup %4915 }
0x1e34   :  { %v4918_v46 = vpop.eup %4917  ;;  %v3052_v47 = vmul.f32 %v4916_v29, %v3033_v45  ;;  %vm3057_vm2 = vweird.f32 %v4916_v29 }
0x1e35   :  { %v3082_v49 = vmul.f32 %v4918_v46, %v3035_v10  ;;  %vm3087_vm5 = vweird.f32 %v4918_v46  ;;  %vm3058_vm11 = vmor %vm3056_vm6, %vm3057_vm2 }
0x1e36   :  { %v3053_v58 = vsub.f32 1.0, %v3052_v47  ;;  %vm3088_vm0 = vmor %vm3086_vm8, %vm3087_vm5  ;;  %vm3246_vm5 = vcmask 261120  }
0x1e37   :  { %v3083_v42 = vsub.f32 1.0, %v3082_v49 }
0x1e38   :  { %v3054_v24 = vmul.f32 %v4916_v29, %v3053_v58 }
0x1e39   :  { %v3084_v53 = vmul.f32 %v4918_v46, %v3083_v42 }
0x1e3a   :  { %v3055_v25 = vadd.f32 %v4916_v29, %v3054_v24 }
0x1e3b   :  { %v3085_v9 = vadd.f32 %v4918_v46, %v3084_v53 }
0x1e3c   :  { %v3059_v54 = vsel %vm3058_vm11, %v4916_v29, %v3055_v25 }
0x1e3d   :  { %v3089_v3 = vsel %vm3088_vm0, %v4918_v46, %v3085_v9  ;;  %v3064_v56 = vsel %vm3061_vm12, %v3063_v20, %v3059_v54 }
0x1e3e   :  { %v3094_v61 = vsel %vm3091_vm9, %v3093_v17, %v3089_v3 }
0x1e83   :  { %v3131_v23 = vpop.permute.xlu1 %3130 }
0x1e84   :  { %v3133_v15 = vpop.permute.xlu2 %3132  ;;  %v3136_v1 = vmul.f32 %v3131_v23, %v3064_v56 }
0x1e85   :  { %v3137_v5 = vmul.f32 %v3133_v15, %v3094_v61 }
0x1e86   :  { %v3138_v39 = vpack.c.bf16 %v3136_v1, %v3136_v1 }
0x1e87   :  { %v3139_v8 = vpack.c.bf16 %v3137_v5, %v3137_v5 }
0x1e88   :  { %v3170_v16 = vsel %vm5761_vm10, %v6098_v35, %v3138_v39 }
0x1e89   :  { %v3171_v36 = vsel %vm5761_vm10, %v6106_v43, %v3139_v8  ;;  %v3186_v6 = vunpack.c.l.b16 %v3170_v16 }
0x1e8a   :  { %v3187_v59 = vunpack.c.l.b16 %v3171_v36 }
0x1e8c   :  { %v3188_v19 = vpack.c.b16 %v3187_v59, %v3186_v6 }
0x1e8e   :  { %4449 = vmatmul.msk.bf16.vlgmr.msrb.gmra.mxu0 %vm205_vm4, %v3188_v19 }
0x1e8f   :  { %4050 = vmatpush.bf16.msrb.mxu0 %v4519_v30 }
0x1e93   :  { %4051 = vmatpush.bf16.msrb.mxu0 %v4518_v55 }
0x1f0b   :  { %v3225_v40 = vpop.f32.mrf.mxu0 }
0x1f0c   :  { %v6154_v44 = vadd.f32 %v4533_v27, %v3225_v40 }
0x1f0e   :  { %v3266_v35 = vadd.f32 %v3258_v33, %v6154_v44 }
0x1f10   :  { %4919 = vtanh.f32 %v3266_v35  ;;  %v4458_v18 = vmul.f32 -1.442695, %v3266_v35 }
0x1f13   :  { %v3227_v43 = vpop.f32.mrf.mxu0 }
0x1f14   :  { %v6157_v51 = vadd.f32 %v4533_v27, %v3227_v43 }
0x1f16   :  { %v4920_v26 = vpop.eup %4919  ;;  %v3267_v11 = vadd.f32 %v3263_v62, %v6157_v51 }
0x1f17   :  { %3312 = vrot.lane.b32.xlu1 %v4920_v26, %s5184_s19 }
0x1f18   :  { %4921 = vtanh.f32 %v3267_v11  ;;  %v4459_v0 = vmul.f32 -1.442695, %v3267_v11 }
0x1f19   :  { %4923 = vpow2.f32 %v4458_v18 }
0x1f1a   :  { %4925 = vpow2.f32 %v4459_v0 }
0x1f1e   :  { %v4922_v28 = vpop.eup %4921 }
0x1f1f   :  { %3314 = vrot.lane.b32.xlu0 %v4922_v28, %s5184_s19  ;;  %v4924_v7 = vpop.eup %4923 }
0x1f20   :  { %v3274_v34 = vadd.f32 1.0, %v4924_v7  ;;  %v4926_v4 = vpop.eup %4925 }
0x1f21   :  { %v3275_v21 = vadd.f32 1.0, %v4926_v4 }
0x1f22   :  { %4927 = vrcp.f32 %v3274_v34  ;;  %v3287_v38 = vand.u32 2147483648, %v3274_v34  ;;  %vm3281_vm10 = vweird.f32 %v3274_v34  ;;  %v3285_v45 = vand.u32 2147483647, %v3274_v34 }
0x1f23   :  { %4929 = vrcp.f32 %v3275_v21  ;;  %v3302_v47 = vand.u32 2147483648, %v3275_v21  ;;  %vm3296_vm15 = vweird.f32 %v3275_v21  ;;  %v3300_v49 = vand.u32 2147483647, %v3275_v21 }
0x1f24   :  { %v3288_v30 = vor.u32 1.1754944e-38, %v3287_v38  ;;  %vm3286_vm13 = vcmp.eq.f32.partialorder %v3285_v45, 8.507059e+37 }
0x1f25   :  { %v3303_v42 = vor.u32 1.1754944e-38, %v3302_v47  ;;  %vm3301_vm2 = vcmp.eq.f32.partialorder %v3300_v49, 8.507059e+37 }
0x1f28   :  { %v4928_v31 = vpop.eup %4927 }
0x1f29   :  { %v3277_v48 = vmul.f32 %v4928_v31, %v3274_v34  ;;  %v4930_v50 = vpop.eup %4929  ;;  %vm3282_vm4 = vweird.f32 %v4928_v31 }
0x1f2a   :  { %v3292_v37 = vmul.f32 %v4930_v50, %v3275_v21  ;;  %vm3283_vm7 = vmor %vm3281_vm10, %vm3282_vm4  ;;  %vm3297_vm14 = vweird.f32 %v4930_v50 }
0x1f2b   :  { %v3278_v41 = vsub.f32 1.0, %v3277_v48  ;;  %vm3298_vm1 = vmor %vm3296_vm15, %vm3297_vm14 }
0x1f2c   :  { %v3293_v14 = vsub.f32 1.0, %v3292_v37 }
0x1f2d   :  { %v3279_v52 = vmul.f32 %v4928_v31, %v3278_v41 }
0x1f2e   :  { %v3294_v22 = vmul.f32 %v4930_v50, %v3293_v14 }
0x1f2f   :  { %v3280_v63 = vadd.f32 %v4928_v31, %v3279_v52 }
0x1f30   :  { %v3295_v46 = vadd.f32 %v4930_v50, %v3294_v22 }
0x1f31   :  { %v3284_v10 = vsel %vm3283_vm7, %v4928_v31, %v3280_v63 }
0x1f32   :  { %v3289_v55 = vsel %vm3286_vm13, %v3288_v30, %v3284_v10  ;;  %v3299_v58 = vsel %vm3298_vm1, %v4930_v50, %v3295_v46 }
0x1f33   :  { %v3304_v53 = vsel %vm3301_vm2, %v3303_v42, %v3299_v58  ;;  %v3308_v32 = vmul.f32 0.0, %v3289_v55 }
0x1f34   :  { %v3309_v9 = vmul.f32 0.0, %v3304_v53 }
0x1f89   :  { %v3313_v13 = vpop.permute.xlu1 %3312 }
0x1f8a   :  { %v3318_v29 = vmul.f32 %v3313_v13, %v3289_v55 }
0x1f8c   :  { %3322 = vrot.lane.b32.xlu0 %v3318_v29, %s5184_s19 }
0x1f91   :  { %v3315_v24 = vpop.permute.xlu0 %3314 }
0x1f92   :  { %v3319_v25 = vmul.f32 %v3315_v24, %v3304_v53 }
0x1f94   :  { %3324 = vrot.lane.b32.xlu2 %v3319_v25, %s5184_s19 }
0x1fee   :  { %v3325_v60 = vpop.permute.xlu2 %3324 }
0x1fef   :  { %v6164_v12 = vadd.f32 %v3325_v60, %v3309_v9 }
0x1ff1   :  { %4931 = vtanh.f32 %v6164_v12  ;;  %v3418_v58 = vrot.slane %v6164_v12, 7 }
0x1ff7   :  { %v4932_v2 = vpop.eup %4931 }
0x1ff8   :  { %3336 = vrot.lane.b32.xlu1 %v4932_v2, %s5184_s19 }
0x1ffe   :  { %v3323_v54 = vpop.permute.xlu0 %3322 }
0x1fff   :  { %v6168_v3 = vadd.f32 %v3323_v54, %v3308_v32 }
0x2001   :  { %4933 = vtanh.f32 %v6168_v3  ;;  %v3417_v9 = vrot.slane %v6168_v3, 7 }
0x2007   :  { %v4934_v20 = vpop.eup %4933 }
0x2008   :  { %3334 = vrot.lane.b32.xlu2 %v4934_v20, %s5184_s19 }
0x2062   :  { %v3335_v17 = vpop.permute.xlu2 %3334 }
0x2063   :  { %v3340_v56 = vmul.f32 %v3335_v17, %v3289_v55 }
0x2065   :  { %v3342_v15 = vpack.c.bf16 %v3340_v56, %v3340_v56 }
0x2067   :  { %v3346_v39 = vunpack.c.l.b16 %v3342_v15 }
0x206a   :  { %v3337_v23 = vpop.permute.xlu1 %3336 }
0x206b   :  { %v3341_v61 = vmul.f32 %v3337_v23, %v3304_v53 }
0x206d   :  { %v3343_v1 = vpack.c.bf16 %v3341_v61, %v3341_v61 }
0x206f   :  { %v3347_v5 = vunpack.c.l.b16 %v3343_v1 }
0x2071   :  { %v3348_v8 = vrot.slane %v3347_v5, 7 }
0x2073   :  { %v3349_v16 = vsel %vm370_vm3, %v3348_v8, %v3346_v39 }
0x2074   :  { %v3350_v36 = vpack.c.b16 %v3349_v16, %v3349_v16 }
0x2076   :  { %3351 = vrot.lane.b32.xlu0 %v3350_v36, %s5181_s23 }
0x20e8   :  { %v3352_v6 = vpop.permute.xlu0 %3351 }
0x20e9   :  { %4460 = vmatmul.msk.bf16.vlgmr.msrb.gmra.mxu2 %vm3246_vm5, %v3352_v6 }
0x216c   :  { %v3365_v59 = vpop.f32.mrf.mxu2 }
0x216d   :  { %v3370_v19 = vrot.slane %v3365_v59, 7  ;;  %v3374_v33 = vadd.f32 %v3365_v59, %v6157_v51 }
0x216f   :  { %v3373_v57 = vadd.f32 %v3370_v19, %v6154_v44  ;;  %4935 = vtanh.f32 %v3374_v33  ;;  %v4462_v62 = vmul.f32 -1.442695, %v3374_v33 }
0x2171   :  { %4937 = vtanh.f32 %v3373_v57  ;;  %v4461_v18 = vmul.f32 -1.442695, %v3373_v57 }
0x2172   :  { %4939 = vpow2.f32 %v4462_v62 }
0x2174   :  { %v3367_v27 = vpop.f32.mrf.mxu2 }
0x2175   :  { %v4936_v40 = vpop.eup %4935 }
0x2176   :  { %3427 = vrot.lane.b32.xlu2 %v4936_v40, %s5184_s19 }
0x2177   :  { %v4938_v35 = vpop.eup %4937 }
0x2178   :  { %3425 = vrot.lane.b32.xlu1 %v4938_v35, %s5184_s19  ;;  %v4940_v43 = vpop.eup %4939 }
0x2179   :  { %v3382_v26 = vadd.f32 1.0, %v4940_v43 }
0x217b   :  { %4941 = vrcp.f32 %v3382_v26  ;;  %v3409_v21 = vand.u32 2147483648, %v3382_v26  ;;  %vm3403_vm8 = vweird.f32 %v3382_v26  ;;  %v3407_v48 = vand.u32 2147483647, %v3382_v26 }
0x217c   :  { %4943 = vpow2.f32 %v4461_v18 }
0x217d   :  { %v3410_v50 = vor.u32 1.1754944e-38, %v3409_v21  ;;  %vm3408_vm0 = vcmp.eq.f32.partialorder %v3407_v48, 8.507059e+37 }
0x2181   :  { %v4942_v11 = vpop.eup %4941 }
0x2182   :  { %v3399_v28 = vmul.f32 %v4942_v11, %v3382_v26  ;;  %v4944_v34 = vpop.eup %4943  ;;  %vm3404_vm6 = vweird.f32 %v4942_v11 }
0x2183   :  { %v3381_v31 = vadd.f32 1.0, %v4944_v34  ;;  %vm3405_vm11 = vmor %vm3403_vm8, %vm3404_vm6 }
0x2184   :  { %v3400_v0 = vsub.f32 1.0, %v3399_v28 }
0x2185   :  { %4945 = vrcp.f32 %v3381_v31  ;;  %v3394_v30 = vand.u32 2147483648, %v3381_v31  ;;  %vm3388_vm9 = vweird.f32 %v3381_v31  ;;  %v3392_v13 = vand.u32 2147483647, %v3381_v31 }
0x2186   :  { %v3401_v7 = vmul.f32 %v4942_v11, %v3400_v0 }
0x2187   :  { %v3395_v29 = vor.u32 1.1754944e-38, %v3394_v30  ;;  %vm3393_vm10 = vcmp.eq.f32.partialorder %v3392_v13, 8.507059e+37 }
0x2188   :  { %v3402_v4 = vadd.f32 %v4942_v11, %v3401_v7 }
0x218a   :  { %v3406_v41 = vsel %vm3405_vm11, %v4942_v11, %v3402_v4 }
0x218b   :  { %v3411_v37 = vsel %vm3408_vm0, %v3410_v50, %v3406_v41  ;;  %v4946_v14 = vpop.eup %4945 }
0x218c   :  { %v3384_v38 = vmul.f32 %v4946_v14, %v3381_v31  ;;  %vm3389_vm12 = vweird.f32 %v4946_v14  ;;  %v3422_v42 = vmul.f32 %v3418_v58, %v3411_v37 }
0x218d   :  { %vm3390_vm4 = vmor %vm3388_vm9, %vm3389_vm12 }
0x218e   :  { %v3385_v45 = vsub.f32 1.0, %v3384_v38 }
0x2190   :  { %v3386_v10 = vmul.f32 %v4946_v14, %v3385_v45 }
0x2192   :  { %v3387_v22 = vadd.f32 %v4946_v14, %v3386_v10 }
0x2194   :  { %v3391_v55 = vsel %vm3390_vm4, %v4946_v14, %v3387_v22 }
0x2195   :  { %v3396_v47 = vsel %vm3393_vm10, %v3395_v29, %v3391_v55 }
0x2196   :  { %v3421_v60 = vmul.f32 %v3417_v9, %v3396_v47 }
0x21d0   :  { %v3428_v52 = vpop.permute.xlu2 %3427 }
0x21d1   :  { %v3432_v63 = vmul.f32 %v3428_v52, %v3411_v37 }
0x21d3   :  { %3437 = vrot.lane.b32.xlu1 %v3432_v63, %s5184_s19 }
0x21ea   :  { %v3426_v46 = vpop.permute.xlu1 %3425 }
0x21eb   :  { %v3431_v49 = vmul.f32 %v3426_v46, %v3396_v47 }
0x21ed   :  { %3435 = vrot.lane.b32.xlu0 %v3431_v49, %s5184_s19 }
0x2245   :  { %v3438_v24 = vpop.permute.xlu1 %3437 }
0x2246   :  { %v6182_v53 = vadd.f32 %v3438_v24, %v3422_v42 }
0x2248   :  { %4947 = vtanh.f32 %v6182_v53  ;;  %v3532_v49 = vrot.slane %v6182_v53, 7 }
0x224e   :  { %v4948_v25 = vpop.eup %4947 }
0x224f   :  { %3449 = vrot.lane.b32.xlu0 %v4948_v25, %s5184_s19 }
0x225f   :  { %v3436_v2 = vpop.permute.xlu0 %3435 }
0x2260   :  { %v6187_v32 = vadd.f32 %v3436_v2, %v3421_v60 }
0x2262   :  { %4949 = vtanh.f32 %v6187_v32 }
0x2268   :  { %v4950_v54 = vpop.eup %4949 }
0x2269   :  { %3447 = vrot.lane.b32.xlu2 %v4950_v54, %s5184_s19 }
0x22c1   :  { %v3450_v12 = vpop.permute.xlu0 %3449 }
0x22c2   :  { %v3454_v20 = vmul.f32 %v3450_v12, %v3411_v37 }
0x22c3   :  { %v3448_v17 = vpop.permute.xlu2 %3447 }
0x22c4   :  { %v3453_v56 = vmul.f32 %v3448_v17, %v3396_v47  ;;  %v3456_v23 = vpack.c.bf16 %v3454_v20, %v3454_v20  ;;  %v3531_v47 = vrot.slane %v6187_v32, 7 }
0x22c6   :  { %v3455_v61 = vpack.c.bf16 %v3453_v56, %v3453_v56  ;;  %v3460_v1 = vunpack.c.l.b16 %v3456_v23 }
0x22c8   :  { %v3459_v15 = vunpack.c.l.b16 %v3455_v61 }
0x22ca   :  { %v3461_v5 = vrot.slane %v3459_v15, 1 }
0x22cc   :  { %v3462_v3 = vsel %vm370_vm3, %v3460_v1, %v3461_v5 }
0x22cd   :  { %v3463_v39 = vpack.c.b16 %v3462_v3, %v3462_v3 }
0x22cf   :  { %3464 = vrot.lane.b32.xlu1 %v3463_v39, %s5181_s23 }
0x2341   :  { %v3465_v8 = vpop.permute.xlu1 %3464 }
0x2342   :  { %4463 = vmatmul.msk.bf16.vlgmr.msrb.gmra.mxu3 %vm3246_vm5, %v3465_v8 }
0x23c5   :  { %v3478_v16 = vpop.f32.mrf.mxu3 }
0x23c6   :  { %v3483_v36 = vrot.slane %v3478_v16, 6  ;;  %v3484_v6 = vrot.slane %v3478_v16, 7 }
0x23c8   :  { %v3487_v59 = vadd.f32 %v3483_v36, %v6154_v44  ;;  %v3488_v19 = vadd.f32 %v3484_v6, %v6157_v51 }
0x23ca   :  { %4951 = vtanh.f32 %v3487_v59  ;;  %v4464_v40 = vmul.f32 -1.442695, %v3487_v59  ;;  %v4465_v26 = vmul.f32 -1.442695, %v3488_v19 }
0x23cb   :  { %4953 = vtanh.f32 %v3488_v19 }
0x23cc   :  { %4955 = vpow2.f32 %v4464_v40 }
0x23cd   :  { %v3480_v33 = vpop.f32.mrf.mxu3 }
0x23d0   :  { %v4952_v57 = vpop.eup %4951 }
0x23d1   :  { %v4954_v27 = vpop.eup %4953  ;;  %3539 = vrot.lane.b32.xlu2 %v4952_v57, %s5184_s19 }
0x23d2   :  { %3541 = vrot.lane.b32.xlu0 %v4954_v27, %s5184_s19  ;;  %v4956_v35 = vpop.eup %4955 }
0x23d3   :  { %v3495_v62 = vadd.f32 1.0, %v4956_v35 }
0x23d5   :  { %4957 = vrcp.f32 %v3495_v62  ;;  %v3508_v4 = vand.u32 2147483648, %v3495_v62  ;;  %vm3502_vm13 = vweird.f32 %v3495_v62  ;;  %v3506_v21 = vand.u32 2147483647, %v3495_v62 }
0x23d6   :  { %4959 = vpow2.f32 %v4465_v26 }
0x23d7   :  { %v3509_v48 = vor.u32 1.1754944e-38, %v3508_v4  ;;  %vm3507_vm15 = vcmp.eq.f32.partialorder %v3506_v21, 8.507059e+37 }
0x23db   :  { %v4958_v43 = vpop.eup %4957 }
0x23dc   :  { %v3498_v11 = vmul.f32 %v4958_v43, %v3495_v62  ;;  %v4960_v0 = vpop.eup %4959  ;;  %vm3503_vm7 = vweird.f32 %v4958_v43 }
0x23dd   :  { %v3496_v7 = vadd.f32 1.0, %v4960_v0  ;;  %vm3504_vm14 = vmor %vm3502_vm13, %vm3503_vm7 }
0x23de   :  { %v3499_v28 = vsub.f32 1.0, %v3498_v11 }
0x23df   :  { %4961 = vrcp.f32 %v3496_v7  ;;  %v3523_v10 = vand.u32 2147483648, %v3496_v7  ;;  %vm3517_vm2 = vweird.f32 %v3496_v7  ;;  %v3521_v22 = vand.u32 2147483647, %v3496_v7 }
0x23e0   :  { %v3500_v18 = vmul.f32 %v4958_v43, %v3499_v28 }
0x23e1   :  { %v3524_v13 = vor.u32 1.1754944e-38, %v3523_v10  ;;  %vm3522_vm8 = vcmp.eq.f32.partialorder %v3521_v22, 8.507059e+37 }
0x23e2   :  { %v3501_v34 = vadd.f32 %v4958_v43, %v3500_v18 }
0x23e4   :  { %v3505_v31 = vsel %vm3504_vm14, %v4958_v43, %v3501_v34 }
0x23e5   :  { %v3510_v50 = vsel %vm3507_vm15, %v3509_v48, %v3505_v31  ;;  %v4962_v37 = vpop.eup %4961 }
0x23e6   :  { %v3513_v63 = vmul.f32 %v4962_v37, %v3496_v7  ;;  %vm3518_vm1 = vweird.f32 %v4962_v37  ;;  %v3535_v58 = vmul.f32 %v3531_v47, %v3510_v50 }
0x23e7   :  { %vm3519_vm6 = vmor %vm3517_vm2, %vm3518_vm1 }
0x23e8   :  { %v3514_v14 = vsub.f32 1.0, %v3513_v63 }
0x23ea   :  { %v3515_v38 = vmul.f32 %v4962_v37, %v3514_v14 }
0x23ec   :  { %v3516_v45 = vadd.f32 %v4962_v37, %v3515_v38 }
0x23ee   :  { %v3520_v30 = vsel %vm3519_vm6, %v4962_v37, %v3516_v45 }
0x23ef   :  { %v3525_v29 = vsel %vm3522_vm8, %v3524_v13, %v3520_v30 }
0x23f0   :  { %v3536_v42 = vmul.f32 %v3532_v49, %v3525_v29 }
0x242b   :  { %v3540_v41 = vpop.permute.xlu2 %3539 }
0x242c   :  { %v3545_v52 = vmul.f32 %v3540_v41, %v3510_v50 }
0x242e   :  { %3549 = vrot.lane.b32.xlu1 %v3545_v52, %s5184_s19 }
0x2444   :  { %v3542_v55 = vpop.permute.xlu0 %3541 }
0x2445   :  { %v3546_v46 = vmul.f32 %v3542_v55, %v3525_v29 }
0x2447   :  { %3551 = vrot.lane.b32.xlu2 %v3546_v46, %s5184_s19 }
0x24a0   :  { %v3550_v24 = vpop.permute.xlu1 %3549 }
0x24a1   :  { %v3552_v25 = vpop.permute.xlu2 %3551  ;;  %v6202_v9 = vadd.f32 %v3550_v24, %v3535_v58 }
0x24a2   :  { %v6204_v60 = vadd.f32 %v3552_v25, %v3536_v42 }
0x24a3   :  { %4963 = vtanh.f32 %v6202_v9  ;;  %v3646_v46 = vrot.slane %v6202_v9, 7 }
0x24a4   :  { %4965 = vtanh.f32 %v6204_v60  ;;  %v3647_v24 = vrot.slane %v6204_v60, 7 }
0x24a9   :  { %v4964_v2 = vpop.eup %4963 }
0x24aa   :  { %v4966_v54 = vpop.eup %4965  ;;  %3561 = vrot.lane.b32.xlu0 %v4964_v2, %s5184_s19 }
0x24ab   :  { %3563 = vrot.lane.b32.xlu1 %v4966_v54, %s5184_s19 }
0x251c   :  { %v3562_v32 = vpop.permute.xlu0 %3561 }
0x251d   :  { %v3564_v53 = vpop.permute.xlu1 %3563  ;;  %v3567_v12 = vmul.f32 %v3562_v32, %v3510_v50 }
0x251e   :  { %v3568_v20 = vmul.f32 %v3564_v53, %v3525_v29 }
0x251f   :  { %v3569_v17 = vpack.c.bf16 %v3567_v12, %v3567_v12 }
0x2520   :  { %v3570_v56 = vpack.c.bf16 %v3568_v20, %v3568_v20 }
0x2521   :  { %v3573_v23 = vunpack.c.l.b16 %v3569_v17 }
0x2522   :  { %v3574_v61 = vunpack.c.l.b16 %v3570_v56 }
0x2523   :  { %v3575_v15 = vrot.slane %v3573_v23, 2 }
0x2524   :  { %v3576_v1 = vrot.slane %v3574_v61, 1 }
0x2526   :  { %v3577_v5 = vsel %vm370_vm3, %v3576_v1, %v3575_v15 }
0x2527   :  { %v3578_v3 = vpack.c.b16 %v3577_v5, %v3577_v5 }
0x2529   :  { %3579 = vrot.lane.b32.xlu2 %v3578_v3, %s5181_s23 }
0x2583   :  { %v3580_v39 = vpop.permute.xlu2 %3579 }
0x2584   :  { %4466 = vmatmul.msk.bf16.vlgmr.msra.gmra.mxu0 %vm3246_vm5, %v3580_v39 }
0x2601   :  { %v3593_v8 = vpop.f32.mrf.mxu0 }
0x2602   :  { %v3598_v16 = vrot.slane %v3593_v8, 5  ;;  %v3599_v36 = vrot.slane %v3593_v8, 6 }
0x2604   :  { %v3602_v6 = vadd.f32 %v3598_v16, %v6154_v44  ;;  %v3603_v59 = vadd.f32 %v3599_v36, %v6157_v51 }
0x2606   :  { %4967 = vtanh.f32 %v3602_v6  ;;  %v4467_v27 = vmul.f32 -1.442695, %v3602_v6  ;;  %v4468_v40 = vmul.f32 -1.442695, %v3603_v59 }
0x2607   :  { %4969 = vtanh.f32 %v3603_v59 }
0x2608   :  { %4971 = vpow2.f32 %v4467_v27 }
0x2609   :  { %v3595_v19 = vpop.f32.mrf.mxu0  ;;  %4973 = vpow2.f32 %v4468_v40 }
0x260c   :  { %v4968_v33 = vpop.eup %4967 }
0x260d   :  { %v4970_v57 = vpop.eup %4969  ;;  %3654 = vrot.lane.b32.xlu0 %v4968_v33, %s5184_s19 }
0x260e   :  { %3656 = vrot.lane.b32.xlu1 %v4970_v57, %s5184_s19  ;;  %v4972_v35 = vpop.eup %4971 }
0x260f   :  { %v4974_v62 = vpop.eup %4973  ;;  %v3610_v43 = vadd.f32 1.0, %v4972_v35 }
0x2610   :  { %v3611_v26 = vadd.f32 1.0, %v4974_v62 }
0x2611   :  { %4975 = vrcp.f32 %v3610_v43  ;;  %v3623_v41 = vand.u32 2147483648, %v3610_v43  ;;  %vm3617_vm12 = vweird.f32 %v3610_v43  ;;  %v3621_v52 = vand.u32 2147483647, %v3610_v43 }
0x2612   :  { %4977 = vrcp.f32 %v3611_v26  ;;  %v3638_v50 = vand.u32 2147483648, %v3611_v26  ;;  %vm3632_vm9 = vweird.f32 %v3611_v26  ;;  %v3636_v37 = vand.u32 2147483647, %v3611_v26 }
0x2613   :  { %v3624_v38 = vor.u32 1.1754944e-38, %v3623_v41  ;;  %vm3622_vm7 = vcmp.eq.f32.partialorder %v3621_v52, 8.507059e+37 }
0x2614   :  { %v3639_v45 = vor.u32 1.1754944e-38, %v3638_v50  ;;  %vm3637_vm13 = vcmp.eq.f32.partialorder %v3636_v37, 8.507059e+37 }
0x2617   :  { %v4976_v11 = vpop.eup %4975 }
0x2618   :  { %v4978_v28 = vpop.eup %4977  ;;  %v3613_v18 = vmul.f32 %v4976_v11, %v3610_v43  ;;  %vm3618_vm11 = vweird.f32 %v4976_v11 }
0x2619   :  { %v3628_v0 = vmul.f32 %v4978_v28, %v3611_v26  ;;  %vm3633_vm0 = vweird.f32 %v4978_v28  ;;  %vm3619_vm4 = vmor %vm3617_vm12, %vm3618_vm11 }
0x261a   :  { %v3614_v7 = vsub.f32 1.0, %v3613_v18  ;;  %vm3634_vm10 = vmor %vm3632_vm9, %vm3633_vm0 }
0x261b   :  { %v3629_v34 = vsub.f32 1.0, %v3628_v0 }
0x261c   :  { %v3615_v4 = vmul.f32 %v4976_v11, %v3614_v7 }
0x261d   :  { %v3630_v21 = vmul.f32 %v4978_v28, %v3629_v34 }
0x261e   :  { %v3616_v31 = vadd.f32 %v4976_v11, %v3615_v4 }
0x261f   :  { %v3631_v48 = vadd.f32 %v4978_v28, %v3630_v21 }
0x2620   :  { %v3620_v63 = vsel %vm3619_vm4, %v4976_v11, %v3616_v31 }
0x2621   :  { %v3635_v14 = vsel %vm3634_vm10, %v4978_v28, %v3631_v48  ;;  %v3625_v22 = vsel %vm3622_vm7, %v3624_v38, %v3620_v63 }
0x2622   :  { %v3640_v13 = vsel %vm3637_vm13, %v3639_v45, %v3635_v14  ;;  %v3650_v47 = vmul.f32 %v3646_v46, %v3625_v22 }
0x2623   :  { %v3651_v25 = vmul.f32 %v3647_v24, %v3640_v13 }
0x267f   :  { %v3655_v10 = vpop.permute.xlu0 %3654 }
0x2680   :  { %v3657_v30 = vpop.permute.xlu1 %3656  ;;  %v3660_v55 = vmul.f32 %v3655_v10, %v3625_v22 }
0x2681   :  { %v3661_v29 = vmul.f32 %v3657_v30, %v3640_v13 }
0x2682   :  { %3664 = vrot.lane.b32.xlu2 %v3660_v55, %s5184_s19 }
0x2683   :  { %3666 = vrot.lane.b32.xlu0 %v3661_v29, %s5184_s19 }
0x26dc   :  { %v3665_v49 = vpop.permute.xlu2 %3664 }
0x26dd   :  { %v6220_v58 = vadd.f32 %v3665_v49, %v3650_v47 }
0x26df   :  { %4979 = vtanh.f32 %v6220_v58  ;;  %v3761_v24 = vrot.slane %v6220_v58, 7 }
0x26e5   :  { %v4980_v42 = vpop.eup %4979 }
0x26e6   :  { %3676 = vrot.lane.b32.xlu1 %v4980_v42, %s5184_s19 }
0x26f5   :  { %v3667_v2 = vpop.permute.xlu0 %3666 }
0x26f6   :  { %v6225_v54 = vadd.f32 %v3667_v2, %v3651_v25 }
0x26f8   :  { %4981 = vtanh.f32 %v6225_v54  ;;  %v3762_v29 = vrot.slane %v6225_v54, 7 }
0x26fe   :  { %v4982_v32 = vpop.eup %4981 }
0x26ff   :  { %3678 = vrot.lane.b32.xlu2 %v4982_v32, %s5184_s19 }
0x2758   :  { %v3677_v9 = vpop.permute.xlu1 %3676 }
0x2759   :  { %v3679_v53 = vpop.permute.xlu2 %3678  ;;  %v3682_v12 = vmul.f32 %v3677_v9, %v3625_v22 }
0x275a   :  { %v3683_v20 = vmul.f32 %v3679_v53, %v3640_v13 }
0x275b   :  { %v3684_v17 = vpack.c.bf16 %v3682_v12, %v3682_v12 }
0x275c   :  { %v3685_v56 = vpack.c.bf16 %v3683_v20, %v3683_v20 }
0x275d   :  { %v3688_v23 = vunpack.c.l.b16 %v3684_v17 }
0x275e   :  { %v3689_v61 = vunpack.c.l.b16 %v3685_v56 }
0x275f   :  { %v3690_v15 = vrot.slane %v3688_v23, 3 }
0x2760   :  { %v3691_v1 = vrot.slane %v3689_v61, 2 }
0x2762   :  { %v3692_v60 = vsel %vm370_vm3, %v3691_v1, %v3690_v15 }
0x2763   :  { %v3693_v5 = vpack.c.b16 %v3692_v60, %v3692_v60 }
0x2765   :  { %3694 = vrot.lane.b32.xlu0 %v3693_v5, %s5181_s23 }
0x27d7   :  { %v3695_v3 = vpop.permute.xlu0 %3694 }
0x27d8   :  { %4469 = vmatmul.msk.bf16.vlgmr.msra.gmra.mxu1 %vm3246_vm5, %v3695_v3 }
0x2855   :  { %v3708_v39 = vpop.f32.mrf.mxu1 }
0x2856   :  { %v3713_v8 = vrot.slane %v3708_v39, 4  ;;  %v3714_v16 = vrot.slane %v3708_v39, 5 }
0x2858   :  { %v3717_v36 = vadd.f32 %v3713_v8, %v6154_v44  ;;  %v3718_v6 = vadd.f32 %v3714_v16, %v6157_v51 }
0x285a   :  { %4983 = vtanh.f32 %v3717_v36  ;;  %v4471_v57 = vmul.f32 -1.442695, %v3718_v6  ;;  %v4470_v62 = vmul.f32 -1.442695, %v3717_v36 }
0x285b   :  { %4985 = vtanh.f32 %v3718_v6 }
0x285c   :  { %4987 = vpow2.f32 %v4471_v57 }
0x285d   :  { %v3710_v59 = vpop.f32.mrf.mxu1 }
0x2860   :  { %v4984_v19 = vpop.eup %4983 }
0x2861   :  { %v4986_v33 = vpop.eup %4985  ;;  %3769 = vrot.lane.b32.xlu1 %v4984_v19, %s5184_s19 }
0x2862   :  { %3771 = vrot.lane.b32.xlu2 %v4986_v33, %s5184_s19  ;;  %v4988_v27 = vpop.eup %4987 }
0x2863   :  { %v3726_v40 = vadd.f32 1.0, %v4988_v27 }
0x2865   :  { %4989 = vrcp.f32 %v3726_v40  ;;  %v3753_v7 = vand.u32 2147483648, %v3726_v40  ;;  %vm3747_vm15 = vweird.f32 %v3726_v40  ;;  %v3751_v34 = vand.u32 2147483647, %v3726_v40 }
0x2866   :  { %4991 = vpow2.f32 %v4470_v62 }
0x2867   :  { %v3754_v21 = vor.u32 1.1754944e-38, %v3753_v7  ;;  %vm3752_vm2 = vcmp.eq.f32.partialorder %v3751_v34, 8.507059e+37 }
0x286b   :  { %v4990_v35 = vpop.eup %4989 }
0x286c   :  { %v3743_v43 = vmul.f32 %v4990_v35, %v3726_v40  ;;  %v4992_v11 = vpop.eup %4991  ;;  %vm3748_vm14 = vweird.f32 %v4990_v35 }
0x286d   :  { %v3725_v18 = vadd.f32 1.0, %v4992_v11  ;;  %vm3749_vm1 = vmor %vm3747_vm15, %vm3748_vm14 }
0x286e   :  { %v3744_v26 = vsub.f32 1.0, %v3743_v43 }
0x286f   :  { %4993 = vrcp.f32 %v3725_v18  ;;  %v3738_v38 = vand.u32 2147483648, %v3725_v18  ;;  %vm3732_vm8 = vweird.f32 %v3725_v18  ;;  %v3736_v45 = vand.u32 2147483647, %v3725_v18 }
0x2870   :  { %v3745_v28 = vmul.f32 %v4990_v35, %v3744_v26 }
0x2871   :  { %v3739_v22 = vor.u32 1.1754944e-38, %v3738_v38  ;;  %vm3737_vm0 = vcmp.eq.f32.partialorder %v3736_v45, 8.507059e+37 }
0x2872   :  { %v3746_v0 = vadd.f32 %v4990_v35, %v3745_v28 }
0x2874   :  { %v3750_v4 = vsel %vm3749_vm1, %v4990_v35, %v3746_v0 }
0x2875   :  { %v3755_v48 = vsel %vm3752_vm2, %v3754_v21, %v3750_v4  ;;  %v4994_v41 = vpop.eup %4993 }
0x2876   :  { %v3728_v52 = vmul.f32 %v4994_v41, %v3725_v18  ;;  %vm3733_vm6 = vweird.f32 %v4994_v41  ;;  %v3766_v46 = vmul.f32 %v3762_v29, %v3755_v48 }
0x2877   :  { %vm3734_vm11 = vmor %vm3732_vm8, %vm3733_vm6 }
0x2878   :  { %v3729_v37 = vsub.f32 1.0, %v3728_v52 }
0x287a   :  { %v3730_v63 = vmul.f32 %v4994_v41, %v3729_v37 }
0x287c   :  { %v3731_v14 = vadd.f32 %v4994_v41, %v3730_v63 }
0x287e   :  { %v3735_v10 = vsel %vm3734_vm11, %v4994_v41, %v3731_v14 }
0x287f   :  { %v3740_v13 = vsel %vm3737_vm0, %v3739_v22, %v3735_v10 }
0x2880   :  { %v3765_v25 = vmul.f32 %v3761_v24, %v3740_v13 }
0x28bc   :  { %v3772_v31 = vpop.permute.xlu2 %3771 }
0x28bd   :  { %v3776_v50 = vmul.f32 %v3772_v31, %v3755_v48 }
0x28bf   :  { %3781 = vrot.lane.b32.xlu1 %v3776_v50, %s5184_s19 }
0x28d3   :  { %v3770_v30 = vpop.permute.xlu1 %3769 }
0x28d4   :  { %v3775_v55 = vmul.f32 %v3770_v30, %v3740_v13 }
0x28d6   :  { %3779 = vrot.lane.b32.xlu0 %v3775_v55, %s5184_s19 }
0x2931   :  { %v3782_v47 = vpop.permute.xlu1 %3781 }
0x2932   :  { %v6239_v49 = vadd.f32 %v3782_v47, %v3766_v46 }
0x2934   :  { %4995 = vtanh.f32 %v6239_v49  ;;  %v3877_v29 = vrot.slane %v6239_v49, 7 }
0x293a   :  { %v4996_v42 = vpop.eup %4995 }
0x293b   :  { %3793 = vrot.lane.b32.xlu0 %v4996_v42, %s5184_s19 }
0x2948   :  { %v3780_v2 = vpop.permute.xlu0 %3779 }
0x2949   :  { %v6244_v32 = vadd.f32 %v3780_v2, %v3765_v25 }
0x294b   :  { %4997 = vtanh.f32 %v6244_v32  ;;  %v3876_v55 = vrot.slane %v6244_v32, 7 }
0x2951   :  { %v4998_v9 = vpop.eup %4997 }
0x2952   :  { %3791 = vrot.lane.b32.xlu2 %v4998_v9, %s5184_s19 }
0x29ac   :  { %v3792_v54 = vpop.permute.xlu2 %3791 }
0x29ad   :  { %v3794_v53 = vpop.permute.xlu0 %3793  ;;  %v3797_v12 = vmul.f32 %v3792_v54, %v3740_v13 }
0x29ae   :  { %v3798_v20 = vmul.f32 %v3794_v53, %v3755_v48 }
0x29af   :  { %v3799_v17 = vpack.c.bf16 %v3797_v12, %v3797_v12 }
0x29b0   :  { %v3800_v56 = vpack.c.bf16 %v3798_v20, %v3798_v20 }
0x29b1   :  { %v3803_v23 = vunpack.c.l.b16 %v3799_v17 }
0x29b2   :  { %v3804_v61 = vunpack.c.l.b16 %v3800_v56 }
0x29b3   :  { %v3805_v15 = vrot.slane %v3803_v23, 4 }
0x29b4   :  { %v3806_v1 = vrot.slane %v3804_v61, 3 }
0x29b6   :  { %v3807_v58 = vsel %vm370_vm3, %v3806_v1, %v3805_v15 }
0x29b7   :  { %v3808_v60 = vpack.c.b16 %v3807_v58, %v3807_v58 }
0x29b9   :  { %3809 = vrot.lane.b32.xlu1 %v3808_v60, %s5181_s23 }
0x2a2b   :  { %v3810_v5 = vpop.permute.xlu1 %3809 }
0x2a2c   :  { %4472 = vmatmul.msk.bf16.vlgmr.msra.gmra.mxu2 %vm3246_vm5, %v3810_v5 }
0x2aaf   :  { %v3823_v3 = vpop.f32.mrf.mxu2 }
0x2ab0   :  { %v3828_v39 = vrot.slane %v3823_v3, 3  ;;  %v3829_v8 = vrot.slane %v3823_v3, 4 }
0x2ab2   :  { %v3832_v16 = vadd.f32 %v3828_v39, %v6154_v44  ;;  %v3833_v36 = vadd.f32 %v3829_v8, %v6157_v51 }
0x2ab4   :  { %4999 = vtanh.f32 %v3832_v16  ;;  %v4473_v33 = vmul.f32 -1.442695, %v3832_v16  ;;  %v4474_v35 = vmul.f32 -1.442695, %v3833_v36 }
0x2ab5   :  { %5001 = vtanh.f32 %v3833_v36 }
0x2ab6   :  { %5003 = vpow2.f32 %v4473_v33 }
0x2ab7   :  { %v3825_v6 = vpop.f32.mrf.mxu2 }
0x2aba   :  { %v5000_v59 = vpop.eup %4999 }
0x2abb   :  { %v5002_v19 = vpop.eup %5001  ;;  %3884 = vrot.lane.b32.xlu2 %v5000_v59, %s5184_s19 }
0x2abc   :  { %3886 = vrot.lane.b32.xlu0 %v5002_v19, %s5184_s19  ;;  %v5004_v57 = vpop.eup %5003 }
0x2abd   :  { %v3840_v27 = vadd.f32 1.0, %v5004_v57 }
0x2abf   :  { %5005 = vrcp.f32 %v3840_v27  ;;  %v3853_v0 = vand.u32 2147483648, %v3840_v27  ;;  %vm3847_vm9 = vweird.f32 %v3840_v27  ;;  %v3851_v7 = vand.u32 2147483647, %v3840_v27 }
0x2ac0   :  { %5007 = vpow2.f32 %v4474_v35 }
0x2ac1   :  { %v3854_v4 = vor.u32 1.1754944e-38, %v3853_v0  ;;  %vm3852_vm10 = vcmp.eq.f32.partialorder %v3851_v7, 8.507059e+37 }
0x2ac5   :  { %v5006_v40 = vpop.eup %5005 }
0x2ac6   :  { %v3843_v62 = vmul.f32 %v5006_v40, %v3840_v27  ;;  %v5008_v11 = vpop.eup %5007  ;;  %vm3848_vm12 = vweird.f32 %v5006_v40 }
0x2ac7   :  { %v3841_v28 = vadd.f32 1.0, %v5008_v11  ;;  %vm3849_vm4 = vmor %vm3847_vm9, %vm3848_vm12 }
0x2ac8   :  { %v3844_v43 = vsub.f32 1.0, %v3843_v62 }
0x2ac9   :  { %5009 = vrcp.f32 %v3841_v28  ;;  %v3868_v14 = vand.u32 2147483648, %v3841_v28  ;;  %vm3862_vm13 = vweird.f32 %v3841_v28  ;;  %v3866_v38 = vand.u32 2147483647, %v3841_v28 }
0x2aca   :  { %v3845_v26 = vmul.f32 %v5006_v40, %v3844_v43 }
0x2acb   :  { %v3869_v10 = vor.u32 1.1754944e-38, %v3868_v14  ;;  %vm3867_vm15 = vcmp.eq.f32.partialorder %v3866_v38, 8.507059e+37 }
0x2acc   :  { %v3846_v18 = vadd.f32 %v5006_v40, %v3845_v26 }
0x2ace   :  { %v3850_v34 = vsel %vm3849_vm4, %v5006_v40, %v3846_v18 }
0x2acf   :  { %v3855_v31 = vsel %vm3852_vm10, %v3854_v4, %v3850_v34  ;;  %v5010_v41 = vpop.eup %5009 }
0x2ad0   :  { %v3858_v50 = vmul.f32 %v5010_v41, %v3841_v28  ;;  %vm3863_vm7 = vweird.f32 %v5010_v41  ;;  %v3880_v46 = vmul.f32 %v3876_v55, %v3855_v31 }
0x2ad1   :  { %vm3864_vm14 = vmor %vm3862_vm13, %vm3863_vm7 }
0x2ad2   :  { %v3859_v52 = vsub.f32 1.0, %v3858_v50 }
0x2ad4   :  { %v3860_v37 = vmul.f32 %v5010_v41, %v3859_v52 }
0x2ad6   :  { %v3861_v63 = vadd.f32 %v5010_v41, %v3860_v37 }
0x2ad8   :  { %v3865_v45 = vsel %vm3864_vm14, %v5010_v41, %v3861_v63 }
0x2ad9   :  { %v3870_v30 = vsel %vm3867_vm15, %v3869_v10, %v3865_v45 }
0x2ada   :  { %v3881_v47 = vmul.f32 %v3877_v29, %v3870_v30 }
0x2b15   :  { %v3885_v21 = vpop.permute.xlu2 %3884 }
0x2b16   :  { %v3890_v48 = vmul.f32 %v3885_v21, %v3855_v31 }
0x2b18   :  { %3894 = vrot.lane.b32.xlu1 %v3890_v48, %s5184_s19 }
0x2b2e   :  { %v3887_v22 = vpop.permute.xlu0 %3886 }
0x2b2f   :  { %v3891_v13 = vmul.f32 %v3887_v22, %v3870_v30 }
0x2b31   :  { %3896 = vrot.lane.b32.xlu2 %v3891_v13, %s5184_s19 }
0x2b8a   :  { %v3895_v42 = vpop.permute.xlu1 %3894 }
0x2b8b   :  { %v3897_v24 = vpop.permute.xlu2 %3896  ;;  %v6259_v25 = vadd.f32 %v3895_v42, %v3880_v46 }
0x2b8c   :  { %v6261_v2 = vadd.f32 %v3897_v24, %v3881_v47 }
0x2b8d   :  { %5011 = vtanh.f32 %v6259_v25  ;;  %v3991_v13 = vrot.slane %v6259_v25, 7 }
0x2b8e   :  { %5013 = vtanh.f32 %v6261_v2  ;;  %v3992_v42 = vrot.slane %v6261_v2, 7 }
0x2b93   :  { %v5012_v9 = vpop.eup %5011 }
0x2b94   :  { %v5014_v54 = vpop.eup %5013  ;;  %3906 = vrot.lane.b32.xlu0 %v5012_v9, %s5184_s19 }
0x2b95   :  { %3908 = vrot.lane.b32.xlu1 %v5014_v54, %s5184_s19 }
0x2c06   :  { %v3907_v32 = vpop.permute.xlu0 %3906 }
0x2c07   :  { %v3909_v49 = vpop.permute.xlu1 %3908  ;;  %v3912_v53 = vmul.f32 %v3907_v32, %v3855_v31 }
0x2c08   :  { %v3913_v12 = vmul.f32 %v3909_v49, %v3870_v30 }
0x2c09   :  { %v3914_v20 = vpack.c.bf16 %v3912_v53, %v3912_v53 }
0x2c0a   :  { %v3915_v17 = vpack.c.bf16 %v3913_v12, %v3913_v12 }
0x2c0b   :  { %v3918_v56 = vunpack.c.l.b16 %v3914_v20 }
0x2c0c   :  { %v3919_v23 = vunpack.c.l.b16 %v3915_v17 }
0x2c0d   :  { %v3920_v61 = vrot.slane %v3918_v56, 5 }
0x2c0e   :  { %v3921_v15 = vrot.slane %v3919_v23, 4 }
0x2c10   :  { %v3922_v1 = vsel %vm370_vm3, %v3921_v15, %v3920_v61 }
0x2c11   :  { %v3923_v58 = vpack.c.b16 %v3922_v1, %v3922_v1 }
0x2c13   :  { %3924 = vrot.lane.b32.xlu2 %v3923_v58, %s5181_s23 }
0x2c6d   :  { %v3925_v60 = vpop.permute.xlu2 %3924 }
0x2c6e   :  { %4475 = vmatmul.msk.bf16.vlgmr.msra.gmra.mxu3 %vm3246_vm5, %v3925_v60 }
0x2cf1   :  { %v3938_v5 = vpop.f32.mrf.mxu3 }
0x2cf2   :  { %v3943_v3 = vrot.slane %v3938_v5, 2  ;;  %v3944_v39 = vrot.slane %v3938_v5, 3 }
0x2cf4   :  { %v3947_v8 = vadd.f32 %v3943_v3, %v6154_v44  ;;  %v3948_v16 = vadd.f32 %v3944_v39, %v6157_v51 }
0x2cf6   :  { %5015 = vtanh.f32 %v3947_v8  ;;  %v4476_v19 = vmul.f32 -1.442695, %v3947_v8  ;;  %v4477_v33 = vmul.f32 -1.442695, %v3948_v16 }
0x2cf7   :  { %5017 = vtanh.f32 %v3948_v16 }
0x2cf8   :  { %5019 = vpow2.f32 %v4476_v19 }
0x2cf9   :  { %v3940_v36 = vpop.f32.mrf.mxu3  ;;  %5021 = vpow2.f32 %v4477_v33 }
0x2cfc   :  { %v5016_v6 = vpop.eup %5015 }
0x2cfd   :  { %v5018_v59 = vpop.eup %5017  ;;  %3999 = vrot.lane.b32.xlu0 %v5016_v6, %s5184_s19 }
0x2cfe   :  { %4001 = vrot.lane.b32.xlu1 %v5018_v59, %s5184_s19  ;;  %v5020_v57 = vpop.eup %5019 }
0x2cff   :  { %v5022_v27 = vpop.eup %5021  ;;  %v3955_v40 = vadd.f32 1.0, %v5020_v57 }
0x2d00   :  { %v3956_v35 = vadd.f32 1.0, %v5022_v27 }
0x2d01   :  { %5023 = vrcp.f32 %v3955_v40  ;;  %v3968_v21 = vand.u32 2147483648, %v3955_v40  ;;  %vm3962_vm6 = vweird.f32 %v3955_v40  ;;  %v3966_v48 = vand.u32 2147483647, %v3955_v40 }
0x2d02   :  { %5025 = vrcp.f32 %v3956_v35  ;;  %v3983_v31 = vand.u32 2147483648, %v3956_v35  ;;  %vm3977_vm8 = vweird.f32 %v3956_v35  ;;  %v3981_v41 = vand.u32 2147483647, %v3956_v35 }
0x2d03   :  { %v3969_v37 = vor.u32 1.1754944e-38, %v3968_v21  ;;  %vm3967_vm12 = vcmp.eq.f32.partialorder %v3966_v48, 8.507059e+37 }
0x2d04   :  { %v3984_v63 = vor.u32 1.1754944e-38, %v3983_v31  ;;  %vm3982_vm9 = vcmp.eq.f32.partialorder %v3981_v41, 8.507059e+37 }
0x2d07   :  { %v5024_v62 = vpop.eup %5023 }
0x2d08   :  { %v5026_v43 = vpop.eup %5025  ;;  %v3958_v26 = vmul.f32 %v5024_v62, %v3955_v40  ;;  %vm3963_vm1 = vweird.f32 %v5024_v62 }
0x2d09   :  { %v3973_v11 = vmul.f32 %v5026_v43, %v3956_v35  ;;  %vm3978_vm2 = vweird.f32 %v5026_v43  ;;  %vm3964_vm11 = vmor %vm3962_vm6, %vm3963_vm1  ;;  %vm4192_vm6 = vcmask 123904  }
0x2d0a   :  { %v3959_v28 = vsub.f32 1.0, %v3958_v26  ;;  %vm3979_vm0 = vmor %vm3977_vm8, %vm3978_vm2 }
0x2d0b   :  { %v3974_v18 = vsub.f32 1.0, %v3973_v11 }
0x2d0c   :  { %v3960_v0 = vmul.f32 %v5024_v62, %v3959_v28 }
0x2d0d   :  { %v3975_v7 = vmul.f32 %v5026_v43, %v3974_v18 }
0x2d0e   :  { %v3961_v34 = vadd.f32 %v5024_v62, %v3960_v0 }
0x2d0f   :  { %v3976_v4 = vadd.f32 %v5026_v43, %v3975_v7 }
0x2d10   :  { %v3965_v50 = vsel %vm3964_vm11, %v5024_v62, %v3961_v34 }
0x2d11   :  { %v3980_v52 = vsel %vm3979_vm0, %v5026_v43, %v3976_v4  ;;  %v3970_v38 = vsel %vm3967_vm12, %v3969_v37, %v3965_v50 }
0x2d12   :  { %v3985_v10 = vsel %vm3982_vm9, %v3984_v63, %v3980_v52  ;;  %v3995_v55 = vmul.f32 %v3991_v13, %v3970_v38 }
0x2d13   :  { %v3996_v24 = vmul.f32 %v3992_v42, %v3985_v10 }
0x2d6f   :  { %v4000_v14 = vpop.permute.xlu0 %3999 }
0x2d70   :  { %v4002_v45 = vpop.permute.xlu1 %4001  ;;  %v4005_v22 = vmul.f32 %v4000_v14, %v3970_v38 }
0x2d71   :  { %v4006_v30 = vmul.f32 %v4002_v45, %v3985_v10 }
0x2d72   :  { %4009 = vrot.lane.b32.xlu2 %v4005_v22, %s5184_s19 }
0x2d73   :  { %4011 = vrot.lane.b32.xlu0 %v4006_v30, %s5184_s19 }
0x2dcc   :  { %v4010_v29 = vpop.permute.xlu2 %4009 }
0x2dcd   :  { %v6277_v46 = vadd.f32 %v4010_v29, %v3995_v55 }
0x2dcf   :  { %5027 = vtanh.f32 %v6277_v46  ;;  %v4106_v29 = vrot.slane %v6277_v46, 7 }
0x2dd5   :  { %v5028_v47 = vpop.eup %5027 }
0x2dd6   :  { %4021 = vrot.lane.b32.xlu1 %v5028_v47, %s5184_s19 }
0x2de5   :  { %v4012_v9 = vpop.permute.xlu0 %4011 }
0x2de6   :  { %v6282_v54 = vadd.f32 %v4012_v9, %v3996_v24 }
0x2de8   :  { %5029 = vtanh.f32 %v6282_v54 }
0x2dee   :  { %v5030_v32 = vpop.eup %5029 }
0x2def   :  { %4023 = vrot.lane.b32.xlu2 %v5030_v32, %s5184_s19  ;;  %v4520_v32 = vld [vmem:[%s6324_s10] sm:$0xff] }
0x2e48   :  { %v4022_v25 = vpop.permute.xlu1 %4021 }
0x2e49   :  { %v4024_v49 = vpop.permute.xlu2 %4023  ;;  %v4027_v53 = vmul.f32 %v4022_v25, %v3970_v38 }
0x2e4a   :  { %v4028_v12 = vmul.f32 %v4024_v49, %v3985_v10  ;;  %v4107_v10 = vrot.slane %v6282_v54, 7  ;;  %v4521_v54 = vld [vmem:[%s6324_s10 + $0x8] sm:$0xff] }
0x2e4b   :  { %v4029_v20 = vpack.c.bf16 %v4027_v53, %v4027_v53  ;;  %4185 = vmatpush.bf16.msrb.mxu1 %v4521_v54 }
0x2e4c   :  { %v4030_v17 = vpack.c.bf16 %v4028_v12, %v4028_v12 }
0x2e4d   :  { %v4033_v56 = vunpack.c.l.b16 %v4029_v20 }
0x2e4e   :  { %v4034_v23 = vunpack.c.l.b16 %v4030_v17 }
0x2e4f   :  { %v4035_v61 = vrot.slane %v4033_v56, 6  ;;  %4186 = vmatpush.bf16.msrb.mxu1 %v4520_v32 }
0x2e50   :  { %v4036_v15 = vrot.slane %v4034_v23, 5 }
0x2e52   :  { %v4037_v2 = vsel %vm370_vm3, %v4036_v15, %v4035_v61 }
0x2e53   :  { %v4038_v1 = vpack.c.b16 %v4037_v2, %v4037_v2 }
0x2e55   :  { %4039 = vrot.lane.b32.xlu0 %v4038_v1, %s5181_s23 }
0x2ec7   :  { %v4040_v58 = vpop.permute.xlu0 %4039 }
0x2ec8   :  { %4478 = vmatmul.msk.bf16.vlgmr.msrb.gmra.mxu0 %vm3246_vm5, %v4040_v58  ;;  %v4534_v58 = vld [vmem:[%s6325_s11] ss:$0 sm:$0xff] }
0x2f45   :  { %v4053_v60 = vpop.f32.mrf.mxu0 }
0x2f46   :  { %v4058_v5 = vrot.slane %v4053_v60, 1  ;;  %v4059_v3 = vrot.slane %v4053_v60, 2 }
0x2f48   :  { %v4062_v39 = vadd.f32 %v4058_v5, %v6154_v44  ;;  %v4063_v8 = vadd.f32 %v4059_v3, %v6157_v51 }
0x2f4a   :  { %5031 = vtanh.f32 %v4062_v39  ;;  %v4480_v59 = vmul.f32 -1.442695, %v4063_v8  ;;  %v4479_v27 = vmul.f32 -1.442695, %v4062_v39 }
0x2f4b   :  { %5033 = vtanh.f32 %v4063_v8 }
0x2f4c   :  { %5035 = vpow2.f32 %v4480_v59 }
0x2f4d   :  { %v4055_v16 = vpop.f32.mrf.mxu0 }
0x2f50   :  { %v5032_v36 = vpop.eup %5031 }
0x2f51   :  { %v5034_v6 = vpop.eup %5033  ;;  %4114 = vrot.lane.b32.xlu1 %v5032_v36, %s5184_s19 }
0x2f52   :  { %4116 = vrot.lane.b32.xlu2 %v5034_v6, %s5184_s19  ;;  %v5036_v19 = vpop.eup %5035 }
0x2f53   :  { %v4071_v33 = vadd.f32 1.0, %v5036_v19 }
0x2f55   :  { %5037 = vrcp.f32 %v4071_v33  ;;  %v4098_v26 = vand.u32 2147483648, %v4071_v33  ;;  %vm4092_vm10 = vweird.f32 %v4071_v33  ;;  %v4096_v11 = vand.u32 2147483647, %v4071_v33 }
0x2f56   :  { %5039 = vpow2.f32 %v4479_v27 }
0x2f57   :  { %v4099_v18 = vor.u32 1.1754944e-38, %v4098_v26  ;;  %vm4097_vm13 = vcmp.eq.f32.partialorder %v4096_v11, 8.507059e+37 }
0x2f5b   :  { %v5038_v57 = vpop.eup %5037 }
0x2f5c   :  { %v4088_v40 = vmul.f32 %v5038_v57, %v4071_v33  ;;  %v5040_v51 = vpop.eup %5039  ;;  %vm4093_vm4 = vweird.f32 %v5038_v57 }
0x2f5d   :  { %v4070_v62 = vadd.f32 1.0, %v5040_v51  ;;  %vm4094_vm7 = vmor %vm4092_vm10, %vm4093_vm4 }
0x2f5e   :  { %v4089_v44 = vsub.f32 1.0, %v4088_v40 }
0x2f5f   :  { %5041 = vrcp.f32 %v4070_v62  ;;  %v4083_v50 = vand.u32 2147483648, %v4070_v62  ;;  %vm4077_vm15 = vweird.f32 %v4070_v62  ;;  %v4081_v52 = vand.u32 2147483647, %v4070_v62 }
0x2f60   :  { %v4090_v35 = vmul.f32 %v5038_v57, %v4089_v44 }
0x2f61   :  { %v4084_v63 = vor.u32 1.1754944e-38, %v4083_v50  ;;  %vm4082_vm2 = vcmp.eq.f32.partialorder %v4081_v52, 8.507059e+37 }
0x2f62   :  { %v4091_v43 = vadd.f32 %v5038_v57, %v4090_v35 }
0x2f64   :  { %v4095_v28 = vsel %vm4094_vm7, %v5038_v57, %v4091_v43 }
0x2f65   :  { %v4100_v7 = vsel %vm4097_vm13, %v4099_v18, %v4095_v28  ;;  %v5042_v34 = vpop.eup %5041 }
0x2f66   :  { %v4073_v21 = vmul.f32 %v5042_v34, %v4070_v62  ;;  %vm4078_vm14 = vweird.f32 %v5042_v34  ;;  %v4111_v22 = vmul.f32 %v4107_v10, %v4100_v7 }
0x2f67   :  { %vm4079_vm1 = vmor %vm4077_vm15, %vm4078_vm14 }
0x2f68   :  { %v4074_v31 = vsub.f32 1.0, %v4073_v21 }
0x2f6a   :  { %v4075_v48 = vmul.f32 %v5042_v34, %v4074_v31 }
0x2f6c   :  { %v4076_v41 = vadd.f32 %v5042_v34, %v4075_v48 }
0x2f6e   :  { %v4080_v37 = vsel %vm4079_vm1, %v5042_v34, %v4076_v41 }
0x2f6f   :  { %v4085_v38 = vsel %vm4082_vm2, %v4084_v63, %v4080_v37 }
0x2f70   :  { %v4110_v47 = vmul.f32 %v4106_v29, %v4085_v38 }
0x2fac   :  { %v4117_v0 = vpop.permute.xlu2 %4116 }
0x2fad   :  { %v4121_v4 = vmul.f32 %v4117_v0, %v4100_v7 }
0x2faf   :  { %4126 = vrot.lane.b32.xlu1 %v4121_v4, %s5184_s19 }
0x2fc3   :  { %v4115_v14 = vpop.permute.xlu1 %4114 }
0x2fc4   :  { %v4120_v45 = vmul.f32 %v4115_v14, %v4085_v38 }
0x2fc6   :  { %4124 = vrot.lane.b32.xlu0 %v4120_v45, %s5184_s19 }
0x3021   :  { %v4127_v30 = vpop.permute.xlu1 %4126 }
0x3022   :  { %v4131_v13 = vadd.f32 %v4127_v30, %v4111_v22 }
0x3024   :  { %5043 = vtanh.f32 %v4131_v13 }
0x302a   :  { %v5044_v55 = vpop.eup %5043 }
0x302b   :  { %4138 = vrot.lane.b32.xlu0 %v5044_v55, %s5184_s19 }
0x3038   :  { %v4125_v42 = vpop.permute.xlu0 %4124 }
0x3039   :  { %v4130_v24 = vadd.f32 %v4125_v42, %v4110_v47 }
0x303b   :  { %5045 = vtanh.f32 %v4130_v24 }
0x3041   :  { %v5046_v9 = vpop.eup %5045 }
0x3042   :  { %4136 = vrot.lane.b32.xlu2 %v5046_v9, %s5184_s19 }
0x309c   :  { %v4137_v25 = vpop.permute.xlu2 %4136 }
0x309d   :  { %v4139_v49 = vpop.permute.xlu0 %4138  ;;  %v4142_v46 = vmul.f32 %v4137_v25, %v4085_v38 }
0x309e   :  { %v4143_v53 = vmul.f32 %v4139_v49, %v4100_v7 }
0x309f   :  { %v4144_v12 = vpack.c.bf16 %v4142_v46, %v4142_v46 }
0x30a0   :  { %v4145_v20 = vpack.c.bf16 %v4143_v53, %v4143_v53 }
0x30a1   :  { %v4156_v17 = vunpack.c.l.b16 %v4144_v12 }
0x30a2   :  { %v4157_v56 = vunpack.c.l.b16 %v4145_v20 }
0x30a3   :  { %v4158_v23 = vrot.slane %v4156_v17, 7 }
0x30a4   :  { %v4159_v61 = vrot.slane %v4157_v56, 6 }
0x30a6   :  { %v4160_v15 = vsel %vm370_vm3, %v4159_v61, %v4158_v23 }
0x30a7   :  { %v4161_v2 = vpack.c.b16 %v4160_v15, %v4160_v15 }
0x30a9   :  { %4162 = vrot.lane.b32.xlu1 %v4161_v2, %s5181_s23 }
0x311b   :  { %v4163_v1 = vpop.permute.xlu1 %4162 }
0x311c   :  { %4489 = vmatmul.msk.bf16.vlgmr.msrb.gmra.mxu1 %vm3246_vm5, %v4163_v1 }
0x3199   :  { %v4188_v60 = vpop.f32.mrf.mxu1 }
0x319a   :  { %v4189_v5 = vadd.f32 %v4534_v58, %v4188_v60 }
0x319c   :  { %4193 = vst.msk [vmem:[#allocation10] sm:$0x3] %vm4192_vm6, %v4189_v5 }
0x319d   :  { %4204 = dma.vmem_to_hbm [thread:$0]  %s4200_s5, 32, %s4202_s26, [#allocation4]  }
0x31a1   :  { %v4190_v3 = vpop.f32.mrf.mxu1 }
0x31a2   :  { %5173 = dma.done.wait [#allocation4], 32  }
0x31a3   :  { %5174 = vsyncadd [#allocation4], 4294967264 }
0x31a4   :  { %4209 = vsyncpa [#allocation3], 1 }
0x31a5   :  { %4210 = vsyncpa [#allocation6], 1 }
0x31a6   :  { %4211 = vsyncpa [#allocation9], 1 }
0x31a7   :  { %4212 = vsyncpa [#allocation4], 1 }

</bundles_post_ra>
